<compile_context>
chip_gen: v5e
topology: v5e:2x2
jax: 0.10.0
libtpu: 0.0.40
codegen_flags: <defaults>
</compile_context>

<pallas_src>
import numpy as np
import jax
import jax.numpy as jnp
from jax.experimental import pallas as pl
from jax.experimental.pallas import tpu as pltpu

HIDDEN = 32                     # LSTM hidden size
IN_FEATS = 18                   # LSTM1 input size
K1, STRIDE1, OC1 = 5, 2, 64     # conv1: kernel (1,5), stride (1,2), 64 out-ch
K2, OC2 = 3, 128                # conv2: kernel (1,3), 128 out-ch
NUM_CLASSES = 2
BN_EPS = 1e-5

CONV_IN_W = HIDDEN                        # conv input width = LSTM hidden = 32
W1OUT = (CONV_IN_W - K1) // STRIDE1 + 1   # 14
WP = W1OUT // 2                           # 7  (width after 2x2 max-pool)
W2OUT = WP - K2 + 1                       # 5
CP = 512                                  # Wp*OC1 = 448 zero-padded to 512 lanes


# ------------------------------ fused kernel ---------------------------------
def _fused_kernel(x_ref, wih1_ref, whh1_ref, bl1_ref,
                  wih2_ref, whh2_ref, bl2_ref,
                  w1c_ref, b1c_ref, w2b_ref, b2c_ref,
                  avg_ref, wtail_ref, cst_ref,
                  out_ref, y1_ref, y2_ref):
    f32, bf16 = jnp.float32, jnp.bfloat16
    B = out_ref.shape[0]
    T = x_ref.shape[0] // B
    H = whh1_ref.shape[0]
    Th = T // 2
    R = B * Th
    CPh = w1c_ref.shape[1] // 2           # padded Wp*OC1 (=512)

    def run_lstm(gx, whh, store_ref, row_of_t):
        # gx: (T*B, 4H) f32 = x @ W_ih.T + (b_ih + b_hh), time-major rows.
        # Fully unrolled (T is small & static) -> static slices, LLO can overlap
        # the tiny recurrent MXU pushes with the EUP sigmoid/tanh work.
        h = jnp.zeros((B, H), f32)
        c = jnp.zeros((B, H), f32)
        for t in range(T):
            g = gx[t * B:(t + 1) * B, :] + jnp.dot(
                h.astype(bf16), whh, preferred_element_type=f32)
            i = jax.nn.sigmoid(g[:, 0 * H:1 * H])
            f = jax.nn.sigmoid(g[:, 1 * H:2 * H])
            gg = jnp.tanh(g[:, 2 * H:3 * H])
            o = jax.nn.sigmoid(g[:, 3 * H:4 * H])
            c = f * c + i * gg
            h = o * jnp.tanh(c)
            store_ref[pl.ds(row_of_t(t), B), :] = h     # stays in VMEM

    # ---- LSTM layer 1: hoisted input projection + serial recurrence ----
    gx1 = jnp.dot(x_ref[...].astype(bf16), wih1_ref[...],
                  preferred_element_type=f32) + bl1_ref[...]
    run_lstm(gx1, whh1_ref[...], y1_ref, lambda t: t * B)

    # ---- LSTM layer 2 (input projection hoisted over the whole sequence) ----
    gx2 = jnp.dot(y1_ref[...].astype(bf16), wih2_ref[...],
                  preferred_element_type=f32) + bl2_ref[...]
    # Store layer-2 hidden states directly in the max-pool parity layout the
    # CNN head consumes: row (t%2)*R + (t//2)*B + b  -> no transposes later.
    run_lstm(gx2, whh2_ref[...], y2_ref,
             lambda t: (t % 2) * R + (t // 2) * B)

    # ---- CNN head: conv1 + bias/ReLU/2x2-maxpool folded, conv2, GAP/BN/FC ----
    xcat = y2_ref[...].astype(bf16)                     # (2*R, H)
    big = jnp.dot(xcat, w1c_ref[...],                   # (2*R, 2*CPh): one MXU
                  preferred_element_type=f32)           # push for 4 pool taps
    pre = jnp.maximum(
        jnp.maximum(big[:R, :CPh], big[:R, CPh:]),      # width-parity max
        jnp.maximum(big[R:, :CPh], big[R:, CPh:]))      # time-parity max
    pooled = jnp.maximum(pre + b1c_ref[...], 0.0)       # (R, CPh)
    h2c = jnp.maximum(
        jnp.dot(pooled.astype(bf16), w2b_ref[...],
                preferred_element_type=f32) + b2c_ref[...], 0.0)   # (R, 640)
    # Global average pool over time via avg matrix; width-sum + BatchNorm(eval)
    # + Linear are pre-folded into wtail / cst.
    red = jnp.dot(avg_ref[...], h2c, preferred_element_type=f32)   # (B, 640)
    out_ref[...] = (jnp.dot(red, wtail_ref[...],
                            preferred_element_type=f32) + cst_ref[...])


# --------------------- constant preparation (numpy glue, once) ----------------
def build_constants(P, B, T):
    H4 = 4 * HIDDEN
    Th = T // 2

    def t32(a):
        return np.asarray(a, np.float32)

    wih1_t = t32(P['w_ih1']).T                      # (18, 128)
    whh1_t = t32(P['w_hh1']).T                      # (32, 128)
    bl1 = (t32(P['b_ih1']) + t32(P['b_hh1'])).reshape(1, H4)
    wih2_t = t32(P['w_ih2']).T                      # (32, 128)
    whh2_t = t32(P['w_hh2']).T                      # (32, 128)
    bl2 = (t32(P['b_ih2']) + t32(P['b_hh2'])).reshape(1, H4)

    # conv1 scattered into one (32, 2*CP) matrix: halves = width parity inside
    # the 2x2 max-pool window; each half zero-padded 448 -> 512 columns.
    w1 = t32(P['w1'])                               # (64, 1, 1, 5)
    w1cat = np.zeros((CONV_IN_W, 2 * CP), np.float32)
    for p in range(2):
        for wh in range(WP):
            for k in range(K1):
                j = STRIDE1 * (2 * wh + p) + k
                w1cat[j, p * CP + wh * OC1: p * CP + (wh + 1) * OC1] = w1[:, 0, 0, k]
    b1c = np.zeros((1, CP), np.float32)
    b1c[0, :WP * OC1] = np.tile(t32(P['b1']), WP)

    # conv2 as a dense (CP, W2OUT*OC2) matmul matrix (pad rows are zero).
    w2 = t32(P['w2'])                               # (128, 64, 1, 3)
    w2big = np.zeros((CP, W2OUT * OC2), np.float32)
    for wo in range(W2OUT):
        for k in range(K2):
            w2big[(wo + k) * OC1:(wo + k + 1) * OC1,
                  wo * OC2:(wo + 1) * OC2] = w2[:, :, 0, k].T
    b2c = np.tile(t32(P['b2']), W2OUT).reshape(1, W2OUT * OC2)

    # time-average matrix for the (th, b) row layout produced by the kernel.
    avgM = np.zeros((B, B * Th), np.float32)
    for b in range(B):
        for th in range(Th):
            avgM[b, th * B + b] = 1.0 / (Th * W2OUT)

    # Fold width-sum of the GAP + BatchNorm2d (eval) + Linear into wtail / cst.
    bn_scale = t32(P['gamma']) / np.sqrt(t32(P['rvar']) + BN_EPS)
    bn_shift = t32(P['beta']) - t32(P['rmean']) * bn_scale
    wfc = t32(P['wfc'])                             # (2, 128)
    wtail = np.tile(bn_scale[:, None] * wfc.T, (W2OUT, 1))   # (640, 2)
    cst = (bn_shift @ wfc.T + t32(P['bfc'])).reshape(1, NUM_CLASSES)

    bf = lambda a: jnp.asarray(a, jnp.bfloat16)
    fj = lambda a: jnp.asarray(a, jnp.float32)
    return (bf(wih1_t), bf(whh1_t), fj(bl1),
            bf(wih2_t), bf(whh2_t), fj(bl2),
            bf(w1cat), fj(b1c), bf(w2big), fj(b2c),
            fj(avgM), fj(wtail), fj(cst))


# ----------------------------------- wrapper ----------------------------------
def lstm_cnn_forward(X, consts):
    B, T, D = X.shape
    assert T % 2 == 0, "sequence length must be even (MaxPool2d kernel 2)"
    avgM = consts[10]
    assert avgM.shape == (B, B * (T // 2)), \
        "head constants were built for a different (batch, seq) shape"
    H = consts[1].shape[0]
    # single cheap XLA transpose so the kernel sees time-major (T*B, D) rows.
    x_flat = jnp.transpose(X.astype(jnp.float32), (1, 0, 2)).reshape(T * B, D)
    return pl.pallas_call(
        _fused_kernel,
        out_shape=jax.ShapeDtypeStruct((B, NUM_CLASSES), jnp.float32),
        scratch_shapes=[pltpu.VMEM((T * B, H), jnp.float32),   # layer-1 outputs
                        pltpu.VMEM((T * B, H), jnp.float32)],  # layer-2 outputs
    )(x_flat, *consts)


# ------------------------------ plain-JAX reference ---------------------------
def ref_forward(X, P):
    def lstm(x, w_ih, w_hh, b_ih, b_hh):
        B, T, _ = x.shape
        H = w_hh.shape[1]
        h = jnp.zeros((B, H), jnp.float32)
        c = jnp.zeros((B, H), jnp.float32)
        outs = []
        for t in range(T):
            g = x[:, t] @ w_ih.T + h @ w_hh.T + b_ih + b_hh
            i, f, gg, o = jnp.split(g, 4, axis=1)
            i, f, o = jax.nn.sigmoid(i), jax.nn.sigmoid(f), jax.nn.sigmoid(o)
            gg = jnp.tanh(gg)
            c = f * c + i * gg
            h = o * jnp.tanh(c)
            outs.append(h)
        return jnp.stack(outs, axis=1)

    y = lstm(X, P['w_ih1'], P['w_hh1'], P['b_ih1'], P['b_hh1'])
    y = lstm(y, P['w_ih2'], P['w_hh2'], P['b_ih2'], P['b_hh2'])
    B, T, F = y.shape
    W1out = (F - K1) // STRIDE1 + 1
    patches = jnp.stack([y[:, :, 2 * w:2 * w + K1] for w in range(W1out)], axis=2)
    c1 = jnp.einsum('btwk,ok->botw', patches, P['w1'][:, 0, 0, :]) \
        + P['b1'][None, :, None, None]
    c1 = jax.nn.relu(c1)                                    # (B, 64, T, 14)
    Th, Wp = T // 2, W1out // 2
    mp = c1.reshape(B, OC1, Th, 2, Wp, 2).max(axis=(3, 5))  # (B, 64, T/2, 7)
    W2out = Wp - K2 + 1
    p2 = jnp.stack([mp[:, :, :, w:w + K2] for w in range(W2out)], axis=3)
    c2 = jnp.einsum('bcthk,ock->both', p2, P['w2'][:, :, 0, :]) \
        + P['b2'][None, :, None, None]
    c2 = jax.nn.relu(c2)                                    # (B, 128, T/2, 5)
    gap = c2.mean(axis=(2, 3))
    bn = (gap - P['rmean']) / jnp.sqrt(P['rvar'] + BN_EPS) * P['gamma'] + P['beta']
    return bn @ P['wfc'].T + P['bfc']


# ------------------------------------ main ------------------------------------
def init_params(key):
    ks = jax.random.split(key, 18)
    H4 = 4 * HIDDEN

    def n(k, shape, s=0.1):
        return s * jax.random.normal(k, shape, jnp.float32)

    return dict(
        w_ih1=n(ks[0], (H4, IN_FEATS)), w_hh1=n(ks[1], (H4, HIDDEN)),
        b_ih1=n(ks[2], (H4,)), b_hh1=n(ks[3], (H4,)),
        w_ih2=n(ks[4], (H4, HIDDEN)), w_hh2=n(ks[5], (H4, HIDDEN)),
        b_ih2=n(ks[6], (H4,)), b_hh2=n(ks[7], (H4,)),
        w1=n(ks[8], (OC1, 1, 1, K1), 0.3), b1=n(ks[9], (OC1,)),
        w2=n(ks[10], (OC2, OC1, 1, K2), 0.08), b2=n(ks[11], (OC2,)),
        gamma=1.0 + n(ks[12], (OC2,)), beta=n(ks[13], (OC2,)),
        rmean=n(ks[14], (OC2,)),
        rvar=jax.random.uniform(ks[15], (OC2,), jnp.float32, 0.5, 1.5),
        wfc=n(ks[16], (NUM_CLASSES, OC2)), bfc=n(ks[17], (NUM_CLASSES,)),
    )


if __name__ == "__main__":
    key = jax.random.PRNGKey(0)
    pkey, xkey = jax.random.split(key)
    P = init_params(pkey)
    B, T = 2, 8                      # X: (batch, seq, 18); seq even for MaxPool2d
    X = jax.random.normal(xkey, (B, T, IN_FEATS), jnp.float32)

    consts = build_constants(P, B, T)
    out = lstm_cnn_forward(X, consts)
    out = jax.block_until_ready(out)

    ref = jax.block_until_ready(ref_forward(X, P))
    assert out.shape == (B, NUM_CLASSES)
    err = float(jnp.max(jnp.abs(out - ref)))
    assert err < 5e-2, f"mismatch vs reference: max abs diff {err}"
    print("KERNEL_OK")
</pallas_src>

<mosaic_0001>
module attributes {stable_mosaic.version = 11 : i64} {
  func.func @_fused_kernel(%arg0: memref<16x18xf32, #tpu.memory_space<vmem>>, %arg1: memref<18x128xbf16, #tpu.memory_space<vmem>>, %arg2: memref<32x128xbf16, #tpu.memory_space<vmem>>, %arg3: memref<1x128xf32, #tpu.memory_space<vmem>>, %arg4: memref<32x128xbf16, #tpu.memory_space<vmem>>, %arg5: memref<32x128xbf16, #tpu.memory_space<vmem>>, %arg6: memref<1x128xf32, #tpu.memory_space<vmem>>, %arg7: memref<32x1024xbf16, #tpu.memory_space<vmem>>, %arg8: memref<1x512xf32, #tpu.memory_space<vmem>>, %arg9: memref<512x640xbf16, #tpu.memory_space<vmem>>, %arg10: memref<1x640xf32, #tpu.memory_space<vmem>>, %arg11: memref<2x8xf32, #tpu.memory_space<vmem>>, %arg12: memref<640x2xf32, #tpu.memory_space<vmem>>, %arg13: memref<1x2xf32, #tpu.memory_space<vmem>>, %arg14: memref<2x2xf32, #tpu.memory_space<vmem>>, %arg15: memref<16x32xf32, #tpu.memory_space<vmem>>, %arg16: memref<16x32xf32, #tpu.memory_space<vmem>>) attributes {dimension_semantics = [], scalar_prefetch = 0 : i64, scratch_operands = 2 : i64, tpu.core_type = #tpu.core_type<tc>} {
    %c0 = arith.constant 0 : index
    %c0_0 = arith.constant 0 : index
    %0 = vector.load %arg0[%c0, %c0_0] : memref<16x18xf32, #tpu.memory_space<vmem>>, vector<16x18xf32>
    %1 = arith.truncf %0 : vector<16x18xf32> to vector<16x18xbf16>
    %c0_1 = arith.constant 0 : index
    %c0_2 = arith.constant 0 : index
    %2 = vector.load %arg1[%c0_1, %c0_2] : memref<18x128xbf16, #tpu.memory_space<vmem>>, vector<18x128xbf16>
    %cst = arith.constant dense<0.000000e+00> : vector<16x128xf32>
    %3 = tpu.matmul %1, %2, %cst {dimension_numbers = #tpu.dot_dimension_numbers<[1], [0], [0], [1], [0, 0, 1, 1], [], []>} : vector<16x18xbf16>, vector<18x128xbf16>, vector<16x128xf32> -> vector<16x128xf32>
    %c0_3 = arith.constant 0 : index
    %c0_4 = arith.constant 0 : index
    %4 = vector.load %arg3[%c0_3, %c0_4] : memref<1x128xf32, #tpu.memory_space<vmem>>, vector<1x128xf32>
    %5 = vector.broadcast %4 : vector<1x128xf32> to vector<16x128xf32>
    %6 = arith.addf %3, %5 : vector<16x128xf32>
    %c0_5 = arith.constant 0 : index
    %c0_6 = arith.constant 0 : index
    %7 = vector.load %arg2[%c0_5, %c0_6] : memref<32x128xbf16, #tpu.memory_space<vmem>>, vector<32x128xbf16>
    %cst_7 = arith.constant 0.000000e+00 : f32
    %8 = vector.broadcast %cst_7 : f32 to vector<2x32xf32>
    %cst_8 = arith.constant 0.000000e+00 : f32
    %9 = vector.broadcast %cst_8 : f32 to vector<2x32xf32>
    %10 = vector.extract_strided_slice %6 {offsets = [0, 0], sizes = [2, 128], strides = [1, 1]} : vector<16x128xf32> to vector<2x128xf32>
    %11 = arith.truncf %8 : vector<2x32xf32> to vector<2x32xbf16>
    %cst_9 = arith.constant dense<0.000000e+00> : vector<2x128xf32>
    %12 = tpu.matmul %11, %7, %cst_9 {dimension_numbers = #tpu.dot_dimension_numbers<[1], [0], [0], [1], [0, 0, 1, 1], [], []>} : vector<2x32xbf16>, vector<32x128xbf16>, vector<2x128xf32> -> vector<2x128xf32>
    %13 = arith.addf %10, %12 : vector<2x128xf32>
    %14 = vector.extract_strided_slice %13 {offsets = [0, 0], sizes = [2, 32], strides = [1, 1]} : vector<2x128xf32> to vector<2x32xf32>
    %15 = arith.negf %14 : vector<2x32xf32>
    %16 = math.exp %15 : vector<2x32xf32>
    %cst_10 = arith.constant 1.000000e+00 : f32
    %17 = vector.broadcast %cst_10 : f32 to vector<2x32xf32>
    %18 = arith.addf %17, %16 : vector<2x32xf32>
    %19 = arith.divf %17, %18 : vector<2x32xf32>
    %20 = vector.extract_strided_slice %13 {offsets = [0, 32], sizes = [2, 32], strides = [1, 1]} : vector<2x128xf32> to vector<2x32xf32>
    %21 = arith.negf %20 : vector<2x32xf32>
    %22 = math.exp %21 : vector<2x32xf32>
    %cst_11 = arith.constant 1.000000e+00 : f32
    %23 = vector.broadcast %cst_11 : f32 to vector<2x32xf32>
    %24 = arith.addf %23, %22 : vector<2x32xf32>
    %25 = arith.divf %23, %24 : vector<2x32xf32>
    %26 = vector.extract_strided_slice %13 {offsets = [0, 64], sizes = [2, 32], strides = [1, 1]} : vector<2x128xf32> to vector<2x32xf32>
    %27 = math.tanh %26 : vector<2x32xf32>
    %28 = vector.extract_strided_slice %13 {offsets = [0, 96], sizes = [2, 32], strides = [1, 1]} : vector<2x128xf32> to vector<2x32xf32>
    %29 = arith.negf %28 : vector<2x32xf32>
    %30 = math.exp %29 : vector<2x32xf32>
    %cst_12 = arith.constant 1.000000e+00 : f32
    %31 = vector.broadcast %cst_12 : f32 to vector<2x32xf32>
    %32 = arith.addf %31, %30 : vector<2x32xf32>
    %33 = arith.divf %31, %32 : vector<2x32xf32>
    %34 = arith.mulf %25, %9 : vector<2x32xf32>
    %35 = arith.mulf %19, %27 : vector<2x32xf32>
    %36 = arith.addf %34, %35 : vector<2x32xf32>
    %37 = math.tanh %36 : vector<2x32xf32>
    %38 = arith.mulf %33, %37 : vector<2x32xf32>
    %c0_13 = arith.constant 0 : index
    %c0_14 = arith.constant 0 : index
    %39 = vector.load %arg15[%c0_13, %c0_14] : memref<16x32xf32, #tpu.memory_space<vmem>>, vector<2x32xf32>
    tpu.vector_store %arg15[%c0_13, %c0_14], %38 {strides = array<i32>} : memref<16x32xf32, #tpu.memory_space<vmem>>, vector<2x32xf32>,
    %40 = vector.extract_strided_slice %6 {offsets = [2, 0], sizes = [2, 128], strides = [1, 1]} : vector<16x128xf32> to vector<2x128xf32>
    %41 = arith.truncf %38 : vector<2x32xf32> to vector<2x32xbf16>
    %cst_15 = arith.constant dense<0.000000e+00> : vector<2x128xf32>
    %42 = tpu.matmul %41, %7, %cst_15 {dimension_numbers = #tpu.dot_dimension_numbers<[1], [0], [0], [1], [0, 0, 1, 1], [], []>} : vector<2x32xbf16>, vector<32x128xbf16>, vector<2x128xf32> -> vector<2x128xf32>
    %43 = arith.addf %40, %42 : vector<2x128xf32>
    %44 = vector.extract_strided_slice %43 {offsets = [0, 0], sizes = [2, 32], strides = [1, 1]} : vector<2x128xf32> to vector<2x32xf32>
    %45 = arith.negf %44 : vector<2x32xf32>
    %46 = math.exp %45 : vector<2x32xf32>
    %cst_16 = arith.constant 1.000000e+00 : f32
    %47 = vector.broadcast %cst_16 : f32 to vector<2x32xf32>
    %48 = arith.addf %47, %46 : vector<2x32xf32>
    %49 = arith.divf %47, %48 : vector<2x32xf32>
    %50 = vector.extract_strided_slice %43 {offsets = [0, 32], sizes = [2, 32], strides = [1, 1]} : vector<2x128xf32> to vector<2x32xf32>
    %51 = arith.negf %50 : vector<2x32xf32>
    %52 = math.exp %51 : vector<2x32xf32>
    %cst_17 = arith.constant 1.000000e+00 : f32
    %53 = vector.broadcast %cst_17 : f32 to vector<2x32xf32>
    %54 = arith.addf %53, %52 : vector<2x32xf32>
    %55 = arith.divf %53, %54 : vector<2x32xf32>
    %56 = vector.extract_strided_slice %43 {offsets = [0, 64], sizes = [2, 32], strides = [1, 1]} : vector<2x128xf32> to vector<2x32xf32>
    %57 = math.tanh %56 : vector<2x32xf32>
    %58 = vector.extract_strided_slice %43 {offsets = [0, 96], sizes = [2, 32], strides = [1, 1]} : vector<2x128xf32> to vector<2x32xf32>
    %59 = arith.negf %58 : vector<2x32xf32>
    %60 = math.exp %59 : vector<2x32xf32>
    %cst_18 = arith.constant 1.000000e+00 : f32
    %61 = vector.broadcast %cst_18 : f32 to vector<2x32xf32>
    %62 = arith.addf %61, %60 : vector<2x32xf32>
    %63 = arith.divf %61, %62 : vector<2x32xf32>
    %64 = arith.mulf %55, %36 : vector<2x32xf32>
    %65 = arith.mulf %49, %57 : vector<2x32xf32>
    %66 = arith.addf %64, %65 : vector<2x32xf32>
    %67 = math.tanh %66 : vector<2x32xf32>
    %68 = arith.mulf %63, %67 : vector<2x32xf32>
    %c2 = arith.constant 2 : index
    %c0_19 = arith.constant 0 : index
    %69 = vector.load %arg15[%c2, %c0_19] : memref<16x32xf32, #tpu.memory_space<vmem>>, vector<2x32xf32>
    tpu.vector_store %arg15[%c2, %c0_19], %68 {strides = array<i32>} : memref<16x32xf32, #tpu.memory_space<vmem>>, vector<2x32xf32>,
    %70 = vector.extract_strided_slice %6 {offsets = [4, 0], sizes = [2, 128], strides = [1, 1]} : vector<16x128xf32> to vector<2x128xf32>
    %71 = arith.truncf %68 : vector<2x32xf32> to vector<2x32xbf16>
    %cst_20 = arith.constant dense<0.000000e+00> : vector<2x128xf32>
    %72 = tpu.matmul %71, %7, %cst_20 {dimension_numbers = #tpu.dot_dimension_numbers<[1], [0], [0], [1], [0, 0, 1, 1], [], []>} : vector<2x32xbf16>, vector<32x128xbf16>, vector<2x128xf32> -> vector<2x128xf32>
    %73 = arith.addf %70, %72 : vector<2x128xf32>
    %74 = vector.extract_strided_slice %73 {offsets = [0, 0], sizes = [2, 32], strides = [1, 1]} : vector<2x128xf32> to vector<2x32xf32>
    %75 = arith.negf %74 : vector<2x32xf32>
    %76 = math.exp %75 : vector<2x32xf32>
    %cst_21 = arith.constant 1.000000e+00 : f32
    %77 = vector.broadcast %cst_21 : f32 to vector<2x32xf32>
    %78 = arith.addf %77, %76 : vector<2x32xf32>
    %79 = arith.divf %77, %78 : vector<2x32xf32>
    %80 = vector.extract_strided_slice %73 {offsets = [0, 32], sizes = [2, 32], strides = [1, 1]} : vector<2x128xf32> to vector<2x32xf32>
    %81 = arith.negf %80 : vector<2x32xf32>
    %82 = math.exp %81 : vector<2x32xf32>
    %cst_22 = arith.constant 1.000000e+00 : f32
    %83 = vector.broadcast %cst_22 : f32 to vector<2x32xf32>
    %84 = arith.addf %83, %82 : vector<2x32xf32>
    %85 = arith.divf %83, %84 : vector<2x32xf32>
    %86 = vector.extract_strided_slice %73 {offsets = [0, 64], sizes = [2, 32], strides = [1, 1]} : vector<2x128xf32> to vector<2x32xf32>
    %87 = math.tanh %86 : vector<2x32xf32>
    %88 = vector.extract_strided_slice %73 {offsets = [0, 96], sizes = [2, 32], strides = [1, 1]} : vector<2x128xf32> to vector<2x32xf32>
    %89 = arith.negf %88 : vector<2x32xf32>
    %90 = math.exp %89 : vector<2x32xf32>
    %cst_23 = arith.constant 1.000000e+00 : f32
    %91 = vector.broadcast %cst_23 : f32 to vector<2x32xf32>
    %92 = arith.addf %91, %90 : vector<2x32xf32>
    %93 = arith.divf %91, %92 : vector<2x32xf32>
    %94 = arith.mulf %85, %66 : vector<2x32xf32>
    %95 = arith.mulf %79, %87 : vector<2x32xf32>
    %96 = arith.addf %94, %95 : vector<2x32xf32>
    %97 = math.tanh %96 : vector<2x32xf32>
    %98 = arith.mulf %93, %97 : vector<2x32xf32>
    %c4 = arith.constant 4 : index
    %c0_24 = arith.constant 0 : index
    %99 = vector.load %arg15[%c4, %c0_24] : memref<16x32xf32, #tpu.memory_space<vmem>>, vector<2x32xf32>
    tpu.vector_store %arg15[%c4, %c0_24], %98 {strides = array<i32>} : memref<16x32xf32, #tpu.memory_space<vmem>>, vector<2x32xf32>,
    %100 = vector.extract_strided_slice %6 {offsets = [6, 0], sizes = [2, 128], strides = [1, 1]} : vector<16x128xf32> to vector<2x128xf32>
    %101 = arith.truncf %98 : vector<2x32xf32> to vector<2x32xbf16>
    %cst_25 = arith.constant dense<0.000000e+00> : vector<2x128xf32>
    %102 = tpu.matmul %101, %7, %cst_25 {dimension_numbers = #tpu.dot_dimension_numbers<[1], [0], [0], [1], [0, 0, 1, 1], [], []>} : vector<2x32xbf16>, vector<32x128xbf16>, vector<2x128xf32> -> vector<2x128xf32>
    %103 = arith.addf %100, %102 : vector<2x128xf32>
    %104 = vector.extract_strided_slice %103 {offsets = [0, 0], sizes = [2, 32], strides = [1, 1]} : vector<2x128xf32> to vector<2x32xf32>
    %105 = arith.negf %104 : vector<2x32xf32>
    %106 = math.exp %105 : vector<2x32xf32>
    %cst_26 = arith.constant 1.000000e+00 : f32
    %107 = vector.broadcast %cst_26 : f32 to vector<2x32xf32>
    %108 = arith.addf %107, %106 : vector<2x32xf32>
    %109 = arith.divf %107, %108 : vector<2x32xf32>
    %110 = vector.extract_strided_slice %103 {offsets = [0, 32], sizes = [2, 32], strides = [1, 1]} : vector<2x128xf32> to vector<2x32xf32>
    %111 = arith.negf %110 : vector<2x32xf32>
    %112 = math.exp %111 : vector<2x32xf32>
    %cst_27 = arith.constant 1.000000e+00 : f32
    %113 = vector.broadcast %cst_27 : f32 to vector<2x32xf32>
    %114 = arith.addf %113, %112 : vector<2x32xf32>
    %115 = arith.divf %113, %114 : vector<2x32xf32>
    %116 = vector.extract_strided_slice %103 {offsets = [0, 64], sizes = [2, 32], strides = [1, 1]} : vector<2x128xf32> to vector<2x32xf32>
    %117 = math.tanh %116 : vector<2x32xf32>
    %118 = vector.extract_strided_slice %103 {offsets = [0, 96], sizes = [2, 32], strides = [1, 1]} : vector<2x128xf32> to vector<2x32xf32>
    %119 = arith.negf %118 : vector<2x32xf32>
    %120 = math.exp %119 : vector<2x32xf32>
    %cst_28 = arith.constant 1.000000e+00 : f32
    %121 = vector.broadcast %cst_28 : f32 to vector<2x32xf32>
    %122 = arith.addf %121, %120 : vector<2x32xf32>
    %123 = arith.divf %121, %122 : vector<2x32xf32>
    %124 = arith.mulf %115, %96 : vector<2x32xf32>
    %125 = arith.mulf %109, %117 : vector<2x32xf32>
    %126 = arith.addf %124, %125 : vector<2x32xf32>
    %127 = math.tanh %126 : vector<2x32xf32>
    %128 = arith.mulf %123, %127 : vector<2x32xf32>
    %c6 = arith.constant 6 : index
    %c0_29 = arith.constant 0 : index
    %129 = vector.load %arg15[%c6, %c0_29] : memref<16x32xf32, #tpu.memory_space<vmem>>, vector<2x32xf32>
    tpu.vector_store %arg15[%c6, %c0_29], %128 {strides = array<i32>} : memref<16x32xf32, #tpu.memory_space<vmem>>, vector<2x32xf32>,
    %130 = vector.extract_strided_slice %6 {offsets = [8, 0], sizes = [2, 128], strides = [1, 1]} : vector<16x128xf32> to vector<2x128xf32>
    %131 = arith.truncf %128 : vector<2x32xf32> to vector<2x32xbf16>
    %cst_30 = arith.constant dense<0.000000e+00> : vector<2x128xf32>
    %132 = tpu.matmul %131, %7, %cst_30 {dimension_numbers = #tpu.dot_dimension_numbers<[1], [0], [0], [1], [0, 0, 1, 1], [], []>} : vector<2x32xbf16>, vector<32x128xbf16>, vector<2x128xf32> -> vector<2x128xf32>
    %133 = arith.addf %130, %132 : vector<2x128xf32>
    %134 = vector.extract_strided_slice %133 {offsets = [0, 0], sizes = [2, 32], strides = [1, 1]} : vector<2x128xf32> to vector<2x32xf32>
    %135 = arith.negf %134 : vector<2x32xf32>
    %136 = math.exp %135 : vector<2x32xf32>
    %cst_31 = arith.constant 1.000000e+00 : f32
    %137 = vector.broadcast %cst_31 : f32 to vector<2x32xf32>
    %138 = arith.addf %137, %136 : vector<2x32xf32>
    %139 = arith.divf %137, %138 : vector<2x32xf32>
    %140 = vector.extract_strided_slice %133 {offsets = [0, 32], sizes = [2, 32], strides = [1, 1]} : vector<2x128xf32> to vector<2x32xf32>
    %141 = arith.negf %140 : vector<2x32xf32>
    %142 = math.exp %141 : vector<2x32xf32>
    %cst_32 = arith.constant 1.000000e+00 : f32
    %143 = vector.broadcast %cst_32 : f32 to vector<2x32xf32>
    %144 = arith.addf %143, %142 : vector<2x32xf32>
    %145 = arith.divf %143, %144 : vector<2x32xf32>
    %146 = vector.extract_strided_slice %133 {offsets = [0, 64], sizes = [2, 32], strides = [1, 1]} : vector<2x128xf32> to vector<2x32xf32>
    %147 = math.tanh %146 : vector<2x32xf32>
    %148 = vector.extract_strided_slice %133 {offsets = [0, 96], sizes = [2, 32], strides = [1, 1]} : vector<2x128xf32> to vector<2x32xf32>
    %149 = arith.negf %148 : vector<2x32xf32>
    %150 = math.exp %149 : vector<2x32xf32>
    %cst_33 = arith.constant 1.000000e+00 : f32
    %151 = vector.broadcast %cst_33 : f32 to vector<2x32xf32>
    %152 = arith.addf %151, %150 : vector<2x32xf32>
    %153 = arith.divf %151, %152 : vector<2x32xf32>
    %154 = arith.mulf %145, %126 : vector<2x32xf32>
    %155 = arith.mulf %139, %147 : vector<2x32xf32>
    %156 = arith.addf %154, %155 : vector<2x32xf32>
    %157 = math.tanh %156 : vector<2x32xf32>
    %158 = arith.mulf %153, %157 : vector<2x32xf32>
    %c8 = arith.constant 8 : index
    %c0_34 = arith.constant 0 : index
    %159 = vector.load %arg15[%c8, %c0_34] : memref<16x32xf32, #tpu.memory_space<vmem>>, vector<2x32xf32>
    tpu.vector_store %arg15[%c8, %c0_34], %158 {strides = array<i32>} : memref<16x32xf32, #tpu.memory_space<vmem>>, vector<2x32xf32>,
    %160 = vector.extract_strided_slice %6 {offsets = [10, 0], sizes = [2, 128], strides = [1, 1]} : vector<16x128xf32> to vector<2x128xf32>
    %161 = arith.truncf %158 : vector<2x32xf32> to vector<2x32xbf16>
    %cst_35 = arith.constant dense<0.000000e+00> : vector<2x128xf32>
    %162 = tpu.matmul %161, %7, %cst_35 {dimension_numbers = #tpu.dot_dimension_numbers<[1], [0], [0], [1], [0, 0, 1, 1], [], []>} : vector<2x32xbf16>, vector<32x128xbf16>, vector<2x128xf32> -> vector<2x128xf32>
    %163 = arith.addf %160, %162 : vector<2x128xf32>
    %164 = vector.extract_strided_slice %163 {offsets = [0, 0], sizes = [2, 32], strides = [1, 1]} : vector<2x128xf32> to vector<2x32xf32>
    %165 = arith.negf %164 : vector<2x32xf32>
    %166 = math.exp %165 : vector<2x32xf32>
    %cst_36 = arith.constant 1.000000e+00 : f32
    %167 = vector.broadcast %cst_36 : f32 to vector<2x32xf32>
    %168 = arith.addf %167, %166 : vector<2x32xf32>
    %169 = arith.divf %167, %168 : vector<2x32xf32>
    %170 = vector.extract_strided_slice %163 {offsets = [0, 32], sizes = [2, 32], strides = [1, 1]} : vector<2x128xf32> to vector<2x32xf32>
    %171 = arith.negf %170 : vector<2x32xf32>
    %172 = math.exp %171 : vector<2x32xf32>
    %cst_37 = arith.constant 1.000000e+00 : f32
    %173 = vector.broadcast %cst_37 : f32 to vector<2x32xf32>
    %174 = arith.addf %173, %172 : vector<2x32xf32>
    %175 = arith.divf %173, %174 : vector<2x32xf32>
    %176 = vector.extract_strided_slice %163 {offsets = [0, 64], sizes = [2, 32], strides = [1, 1]} : vector<2x128xf32> to vector<2x32xf32>
    %177 = math.tanh %176 : vector<2x32xf32>
    %178 = vector.extract_strided_slice %163 {offsets = [0, 96], sizes = [2, 32], strides = [1, 1]} : vector<2x128xf32> to vector<2x32xf32>
    %179 = arith.negf %178 : vector<2x32xf32>
    %180 = math.exp %179 : vector<2x32xf32>
    %cst_38 = arith.constant 1.000000e+00 : f32
    %181 = vector.broadcast %cst_38 : f32 to vector<2x32xf32>
    %182 = arith.addf %181, %180 : vector<2x32xf32>
    %183 = arith.divf %181, %182 : vector<2x32xf32>
    %184 = arith.mulf %175, %156 : vector<2x32xf32>
    %185 = arith.mulf %169, %177 : vector<2x32xf32>
    %186 = arith.addf %184, %185 : vector<2x32xf32>
    %187 = math.tanh %186 : vector<2x32xf32>
    %188 = arith.mulf %183, %187 : vector<2x32xf32>
    %c10 = arith.constant 10 : index
    %c0_39 = arith.constant 0 : index
    %189 = vector.load %arg15[%c10, %c0_39] : memref<16x32xf32, #tpu.memory_space<vmem>>, vector<2x32xf32>
    tpu.vector_store %arg15[%c10, %c0_39], %188 {strides = array<i32>} : memref<16x32xf32, #tpu.memory_space<vmem>>, vector<2x32xf32>,
    %190 = vector.extract_strided_slice %6 {offsets = [12, 0], sizes = [2, 128], strides = [1, 1]} : vector<16x128xf32> to vector<2x128xf32>
    %191 = arith.truncf %188 : vector<2x32xf32> to vector<2x32xbf16>
    %cst_40 = arith.constant dense<0.000000e+00> : vector<2x128xf32>
    %192 = tpu.matmul %191, %7, %cst_40 {dimension_numbers = #tpu.dot_dimension_numbers<[1], [0], [0], [1], [0, 0, 1, 1], [], []>} : vector<2x32xbf16>, vector<32x128xbf16>, vector<2x128xf32> -> vector<2x128xf32>
    %193 = arith.addf %190, %192 : vector<2x128xf32>
    %194 = vector.extract_strided_slice %193 {offsets = [0, 0], sizes = [2, 32], strides = [1, 1]} : vector<2x128xf32> to vector<2x32xf32>
    %195 = arith.negf %194 : vector<2x32xf32>
    %196 = math.exp %195 : vector<2x32xf32>
    %cst_41 = arith.constant 1.000000e+00 : f32
    %197 = vector.broadcast %cst_41 : f32 to vector<2x32xf32>
    %198 = arith.addf %197, %196 : vector<2x32xf32>
    %199 = arith.divf %197, %198 : vector<2x32xf32>
    %200 = vector.extract_strided_slice %193 {offsets = [0, 32], sizes = [2, 32], strides = [1, 1]} : vector<2x128xf32> to vector<2x32xf32>
    %201 = arith.negf %200 : vector<2x32xf32>
    %202 = math.exp %201 : vector<2x32xf32>
    %cst_42 = arith.constant 1.000000e+00 : f32
    %203 = vector.broadcast %cst_42 : f32 to vector<2x32xf32>
    %204 = arith.addf %203, %202 : vector<2x32xf32>
    %205 = arith.divf %203, %204 : vector<2x32xf32>
    %206 = vector.extract_strided_slice %193 {offsets = [0, 64], sizes = [2, 32], strides = [1, 1]} : vector<2x128xf32> to vector<2x32xf32>
    %207 = math.tanh %206 : vector<2x32xf32>
    %208 = vector.extract_strided_slice %193 {offsets = [0, 96], sizes = [2, 32], strides = [1, 1]} : vector<2x128xf32> to vector<2x32xf32>
    %209 = arith.negf %208 : vector<2x32xf32>
    %210 = math.exp %209 : vector<2x32xf32>
    %cst_43 = arith.constant 1.000000e+00 : f32
    %211 = vector.broadcast %cst_43 : f32 to vector<2x32xf32>
    %212 = arith.addf %211, %210 : vector<2x32xf32>
    %213 = arith.divf %211, %212 : vector<2x32xf32>
    %214 = arith.mulf %205, %186 : vector<2x32xf32>
    %215 = arith.mulf %199, %207 : vector<2x32xf32>
    %216 = arith.addf %214, %215 : vector<2x32xf32>
    %217 = math.tanh %216 : vector<2x32xf32>
    %218 = arith.mulf %213, %217 : vector<2x32xf32>
    %c12 = arith.constant 12 : index
    %c0_44 = arith.constant 0 : index
    %219 = vector.load %arg15[%c12, %c0_44] : memref<16x32xf32, #tpu.memory_space<vmem>>, vector<2x32xf32>
    tpu.vector_store %arg15[%c12, %c0_44], %218 {strides = array<i32>} : memref<16x32xf32, #tpu.memory_space<vmem>>, vector<2x32xf32>,
    %220 = vector.extract_strided_slice %6 {offsets = [14, 0], sizes = [2, 128], strides = [1, 1]} : vector<16x128xf32> to vector<2x128xf32>
    %221 = arith.truncf %218 : vector<2x32xf32> to vector<2x32xbf16>
    %cst_45 = arith.constant dense<0.000000e+00> : vector<2x128xf32>
    %222 = tpu.matmul %221, %7, %cst_45 {dimension_numbers = #tpu.dot_dimension_numbers<[1], [0], [0], [1], [0, 0, 1, 1], [], []>} : vector<2x32xbf16>, vector<32x128xbf16>, vector<2x128xf32> -> vector<2x128xf32>
    %223 = arith.addf %220, %222 : vector<2x128xf32>
    %224 = vector.extract_strided_slice %223 {offsets = [0, 0], sizes = [2, 32], strides = [1, 1]} : vector<2x128xf32> to vector<2x32xf32>
    %225 = arith.negf %224 : vector<2x32xf32>
    %226 = math.exp %225 : vector<2x32xf32>
    %cst_46 = arith.constant 1.000000e+00 : f32
    %227 = vector.broadcast %cst_46 : f32 to vector<2x32xf32>
    %228 = arith.addf %227, %226 : vector<2x32xf32>
    %229 = arith.divf %227, %228 : vector<2x32xf32>
    %230 = vector.extract_strided_slice %223 {offsets = [0, 32], sizes = [2, 32], strides = [1, 1]} : vector<2x128xf32> to vector<2x32xf32>
    %231 = arith.negf %230 : vector<2x32xf32>
    %232 = math.exp %231 : vector<2x32xf32>
    %cst_47 = arith.constant 1.000000e+00 : f32
    %233 = vector.broadcast %cst_47 : f32 to vector<2x32xf32>
    %234 = arith.addf %233, %232 : vector<2x32xf32>
    %235 = arith.divf %233, %234 : vector<2x32xf32>
    %236 = vector.extract_strided_slice %223 {offsets = [0, 64], sizes = [2, 32], strides = [1, 1]} : vector<2x128xf32> to vector<2x32xf32>
    %237 = math.tanh %236 : vector<2x32xf32>
    %238 = vector.extract_strided_slice %223 {offsets = [0, 96], sizes = [2, 32], strides = [1, 1]} : vector<2x128xf32> to vector<2x32xf32>
    %239 = arith.negf %238 : vector<2x32xf32>
    %240 = math.exp %239 : vector<2x32xf32>
    %cst_48 = arith.constant 1.000000e+00 : f32
    %241 = vector.broadcast %cst_48 : f32 to vector<2x32xf32>
    %242 = arith.addf %241, %240 : vector<2x32xf32>
    %243 = arith.divf %241, %242 : vector<2x32xf32>
    %244 = arith.mulf %235, %216 : vector<2x32xf32>
    %245 = arith.mulf %229, %237 : vector<2x32xf32>
    %246 = arith.addf %244, %245 : vector<2x32xf32>
    %247 = math.tanh %246 : vector<2x32xf32>
    %248 = arith.mulf %243, %247 : vector<2x32xf32>
    %c14 = arith.constant 14 : index
    %c0_49 = arith.constant 0 : index
    %249 = vector.load %arg15[%c14, %c0_49] : memref<16x32xf32, #tpu.memory_space<vmem>>, vector<2x32xf32>
    tpu.vector_store %arg15[%c14, %c0_49], %248 {strides = array<i32>} : memref<16x32xf32, #tpu.memory_space<vmem>>, vector<2x32xf32>,
    %c0_50 = arith.constant 0 : index
    %c0_51 = arith.constant 0 : index
    %250 = vector.load %arg15[%c0_50, %c0_51] : memref<16x32xf32, #tpu.memory_space<vmem>>, vector<16x32xf32>
    %251 = arith.truncf %250 : vector<16x32xf32> to vector<16x32xbf16>
    %c0_52 = arith.constant 0 : index
    %c0_53 = arith.constant 0 : index
    %252 = vector.load %arg4[%c0_52, %c0_53] : memref<32x128xbf16, #tpu.memory_space<vmem>>, vector<32x128xbf16>
    %cst_54 = arith.constant dense<0.000000e+00> : vector<16x128xf32>
    %253 = tpu.matmul %251, %252, %cst_54 {dimension_numbers = #tpu.dot_dimension_numbers<[1], [0], [0], [1], [0, 0, 1, 1], [], []>} : vector<16x32xbf16>, vector<32x128xbf16>, vector<16x128xf32> -> vector<16x128xf32>
    %c0_55 = arith.constant 0 : index
    %c0_56 = arith.constant 0 : index
    %254 = vector.load %arg6[%c0_55, %c0_56] : memref<1x128xf32, #tpu.memory_space<vmem>>, vector<1x128xf32>
    %255 = vector.broadcast %254 : vector<1x128xf32> to vector<16x128xf32>
    %256 = arith.addf %253, %255 : vector<16x128xf32>
    %c0_57 = arith.constant 0 : index
    %c0_58 = arith.constant 0 : index
    %257 = vector.load %arg5[%c0_57, %c0_58] : memref<32x128xbf16, #tpu.memory_space<vmem>>, vector<32x128xbf16>
    %cst_59 = arith.constant 0.000000e+00 : f32
    %258 = vector.broadcast %cst_59 : f32 to vector<2x32xf32>
    %cst_60 = arith.constant 0.000000e+00 : f32
    %259 = vector.broadcast %cst_60 : f32 to vector<2x32xf32>
    %260 = vector.extract_strided_slice %256 {offsets = [0, 0], sizes = [2, 128], strides = [1, 1]} : vector<16x128xf32> to vector<2x128xf32>
    %261 = arith.truncf %258 : vector<2x32xf32> to vector<2x32xbf16>
    %cst_61 = arith.constant dense<0.000000e+00> : vector<2x128xf32>
    %262 = tpu.matmul %261, %257, %cst_61 {dimension_numbers = #tpu.dot_dimension_numbers<[1], [0], [0], [1], [0, 0, 1, 1], [], []>} : vector<2x32xbf16>, vector<32x128xbf16>, vector<2x128xf32> -> vector<2x128xf32>
    %263 = arith.addf %260, %262 : vector<2x128xf32>
    %264 = vector.extract_strided_slice %263 {offsets = [0, 0], sizes = [2, 32], strides = [1, 1]} : vector<2x128xf32> to vector<2x32xf32>
    %265 = arith.negf %264 : vector<2x32xf32>
    %266 = math.exp %265 : vector<2x32xf32>
    %cst_62 = arith.constant 1.000000e+00 : f32
    %267 = vector.broadcast %cst_62 : f32 to vector<2x32xf32>
    %268 = arith.addf %267, %266 : vector<2x32xf32>
    %269 = arith.divf %267, %268 : vector<2x32xf32>
    %270 = vector.extract_strided_slice %263 {offsets = [0, 32], sizes = [2, 32], strides = [1, 1]} : vector<2x128xf32> to vector<2x32xf32>
    %271 = arith.negf %270 : vector<2x32xf32>
    %272 = math.exp %271 : vector<2x32xf32>
    %cst_63 = arith.constant 1.000000e+00 : f32
    %273 = vector.broadcast %cst_63 : f32 to vector<2x32xf32>
    %274 = arith.addf %273, %272 : vector<2x32xf32>
    %275 = arith.divf %273, %274 : vector<2x32xf32>
    %276 = vector.extract_strided_slice %263 {offsets = [0, 64], sizes = [2, 32], strides = [1, 1]} : vector<2x128xf32> to vector<2x32xf32>
    %277 = math.tanh %276 : vector<2x32xf32>
    %278 = vector.extract_strided_slice %263 {offsets = [0, 96], sizes = [2, 32], strides = [1, 1]} : vector<2x128xf32> to vector<2x32xf32>
    %279 = arith.negf %278 : vector<2x32xf32>
    %280 = math.exp %279 : vector<2x32xf32>
    %cst_64 = arith.constant 1.000000e+00 : f32
    %281 = vector.broadcast %cst_64 : f32 to vector<2x32xf32>
    %282 = arith.addf %281, %280 : vector<2x32xf32>
    %283 = arith.divf %281, %282 : vector<2x32xf32>
    %284 = arith.mulf %275, %259 : vector<2x32xf32>
    %285 = arith.mulf %269, %277 : vector<2x32xf32>
    %286 = arith.addf %284, %285 : vector<2x32xf32>
    %287 = math.tanh %286 : vector<2x32xf32>
    %288 = arith.mulf %283, %287 : vector<2x32xf32>
    %c0_65 = arith.constant 0 : index
    %c0_66 = arith.constant 0 : index
    %289 = vector.load %arg16[%c0_65, %c0_66] : memref<16x32xf32, #tpu.memory_space<vmem>>, vector<2x32xf32>
    tpu.vector_store %arg16[%c0_65, %c0_66], %288 {strides = array<i32>} : memref<16x32xf32, #tpu.memory_space<vmem>>, vector<2x32xf32>,
    %290 = vector.extract_strided_slice %256 {offsets = [2, 0], sizes = [2, 128], strides = [1, 1]} : vector<16x128xf32> to vector<2x128xf32>
    %291 = arith.truncf %288 : vector<2x32xf32> to vector<2x32xbf16>
    %cst_67 = arith.constant dense<0.000000e+00> : vector<2x128xf32>
    %292 = tpu.matmul %291, %257, %cst_67 {dimension_numbers = #tpu.dot_dimension_numbers<[1], [0], [0], [1], [0, 0, 1, 1], [], []>} : vector<2x32xbf16>, vector<32x128xbf16>, vector<2x128xf32> -> vector<2x128xf32>
    %293 = arith.addf %290, %292 : vector<2x128xf32>
    %294 = vector.extract_strided_slice %293 {offsets = [0, 0], sizes = [2, 32], strides = [1, 1]} : vector<2x128xf32> to vector<2x32xf32>
    %295 = arith.negf %294 : vector<2x32xf32>
    %296 = math.exp %295 : vector<2x32xf32>
    %cst_68 = arith.constant 1.000000e+00 : f32
    %297 = vector.broadcast %cst_68 : f32 to vector<2x32xf32>
    %298 = arith.addf %297, %296 : vector<2x32xf32>
    %299 = arith.divf %297, %298 : vector<2x32xf32>
    %300 = vector.extract_strided_slice %293 {offsets = [0, 32], sizes = [2, 32], strides = [1, 1]} : vector<2x128xf32> to vector<2x32xf32>
    %301 = arith.negf %300 : vector<2x32xf32>
    %302 = math.exp %301 : vector<2x32xf32>
    %cst_69 = arith.constant 1.000000e+00 : f32
    %303 = vector.broadcast %cst_69 : f32 to vector<2x32xf32>
    %304 = arith.addf %303, %302 : vector<2x32xf32>
    %305 = arith.divf %303, %304 : vector<2x32xf32>
    %306 = vector.extract_strided_slice %293 {offsets = [0, 64], sizes = [2, 32], strides = [1, 1]} : vector<2x128xf32> to vector<2x32xf32>
    %307 = math.tanh %306 : vector<2x32xf32>
    %308 = vector.extract_strided_slice %293 {offsets = [0, 96], sizes = [2, 32], strides = [1, 1]} : vector<2x128xf32> to vector<2x32xf32>
    %309 = arith.negf %308 : vector<2x32xf32>
    %310 = math.exp %309 : vector<2x32xf32>
    %cst_70 = arith.constant 1.000000e+00 : f32
    %311 = vector.broadcast %cst_70 : f32 to vector<2x32xf32>
    %312 = arith.addf %311, %310 : vector<2x32xf32>
    %313 = arith.divf %311, %312 : vector<2x32xf32>
    %314 = arith.mulf %305, %286 : vector<2x32xf32>
    %315 = arith.mulf %299, %307 : vector<2x32xf32>
    %316 = arith.addf %314, %315 : vector<2x32xf32>
    %317 = math.tanh %316 : vector<2x32xf32>
    %318 = arith.mulf %313, %317 : vector<2x32xf32>
    %c8_71 = arith.constant 8 : index
    %c0_72 = arith.constant 0 : index
    %319 = vector.load %arg16[%c8_71, %c0_72] : memref<16x32xf32, #tpu.memory_space<vmem>>, vector<2x32xf32>
    tpu.vector_store %arg16[%c8_71, %c0_72], %318 {strides = array<i32>} : memref<16x32xf32, #tpu.memory_space<vmem>>, vector<2x32xf32>,
    %320 = vector.extract_strided_slice %256 {offsets = [4, 0], sizes = [2, 128], strides = [1, 1]} : vector<16x128xf32> to vector<2x128xf32>
    %321 = arith.truncf %318 : vector<2x32xf32> to vector<2x32xbf16>
    %cst_73 = arith.constant dense<0.000000e+00> : vector<2x128xf32>
    %322 = tpu.matmul %321, %257, %cst_73 {dimension_numbers = #tpu.dot_dimension_numbers<[1], [0], [0], [1], [0, 0, 1, 1], [], []>} : vector<2x32xbf16>, vector<32x128xbf16>, vector<2x128xf32> -> vector<2x128xf32>
    %323 = arith.addf %320, %322 : vector<2x128xf32>
    %324 = vector.extract_strided_slice %323 {offsets = [0, 0], sizes = [2, 32], strides = [1, 1]} : vector<2x128xf32> to vector<2x32xf32>
    %325 = arith.negf %324 : vector<2x32xf32>
    %326 = math.exp %325 : vector<2x32xf32>
    %cst_74 = arith.constant 1.000000e+00 : f32
    %327 = vector.broadcast %cst_74 : f32 to vector<2x32xf32>
    %328 = arith.addf %327, %326 : vector<2x32xf32>
    %329 = arith.divf %327, %328 : vector<2x32xf32>
    %330 = vector.extract_strided_slice %323 {offsets = [0, 32], sizes = [2, 32], strides = [1, 1]} : vector<2x128xf32> to vector<2x32xf32>
    %331 = arith.negf %330 : vector<2x32xf32>
    %332 = math.exp %331 : vector<2x32xf32>
    %cst_75 = arith.constant 1.000000e+00 : f32
    %333 = vector.broadcast %cst_75 : f32 to vector<2x32xf32>
    %334 = arith.addf %333, %332 : vector<2x32xf32>
    %335 = arith.divf %333, %334 : vector<2x32xf32>
    %336 = vector.extract_strided_slice %323 {offsets = [0, 64], sizes = [2, 32], strides = [1, 1]} : vector<2x128xf32> to vector<2x32xf32>
    %337 = math.tanh %336 : vector<2x32xf32>
    %338 = vector.extract_strided_slice %323 {offsets = [0, 96], sizes = [2, 32], strides = [1, 1]} : vector<2x128xf32> to vector<2x32xf32>
    %339 = arith.negf %338 : vector<2x32xf32>
    %340 = math.exp %339 : vector<2x32xf32>
    %cst_76 = arith.constant 1.000000e+00 : f32
    %341 = vector.broadcast %cst_76 : f32 to vector<2x32xf32>
    %342 = arith.addf %341, %340 : vector<2x32xf32>
    %343 = arith.divf %341, %342 : vector<2x32xf32>
    %344 = arith.mulf %335, %316 : vector<2x32xf32>
    %345 = arith.mulf %329, %337 : vector<2x32xf32>
    %346 = arith.addf %344, %345 : vector<2x32xf32>
    %347 = math.tanh %346 : vector<2x32xf32>
    %348 = arith.mulf %343, %347 : vector<2x32xf32>
    %c2_77 = arith.constant 2 : index
    %c0_78 = arith.constant 0 : index
    %349 = vector.load %arg16[%c2_77, %c0_78] : memref<16x32xf32, #tpu.memory_space<vmem>>, vector<2x32xf32>
    tpu.vector_store %arg16[%c2_77, %c0_78], %348 {strides = array<i32>} : memref<16x32xf32, #tpu.memory_space<vmem>>, vector<2x32xf32>,
    %350 = vector.extract_strided_slice %256 {offsets = [6, 0], sizes = [2, 128], strides = [1, 1]} : vector<16x128xf32> to vector<2x128xf32>
    %351 = arith.truncf %348 : vector<2x32xf32> to vector<2x32xbf16>
    %cst_79 = arith.constant dense<0.000000e+00> : vector<2x128xf32>
    %352 = tpu.matmul %351, %257, %cst_79 {dimension_numbers = #tpu.dot_dimension_numbers<[1], [0], [0], [1], [0, 0, 1, 1], [], []>} : vector<2x32xbf16>, vector<32x128xbf16>, vector<2x128xf32> -> vector<2x128xf32>
    %353 = arith.addf %350, %352 : vector<2x128xf32>
    %354 = vector.extract_strided_slice %353 {offsets = [0, 0], sizes = [2, 32], strides = [1, 1]} : vector<2x128xf32> to vector<2x32xf32>
    %355 = arith.negf %354 : vector<2x32xf32>
    %356 = math.exp %355 : vector<2x32xf32>
    %cst_80 = arith.constant 1.000000e+00 : f32
    %357 = vector.broadcast %cst_80 : f32 to vector<2x32xf32>
    %358 = arith.addf %357, %356 : vector<2x32xf32>
    %359 = arith.divf %357, %358 : vector<2x32xf32>
    %360 = vector.extract_strided_slice %353 {offsets = [0, 32], sizes = [2, 32], strides = [1, 1]} : vector<2x128xf32> to vector<2x32xf32>
    %361 = arith.negf %360 : vector<2x32xf32>
    %362 = math.exp %361 : vector<2x32xf32>
    %cst_81 = arith.constant 1.000000e+00 : f32
    %363 = vector.broadcast %cst_81 : f32 to vector<2x32xf32>
    %364 = arith.addf %363, %362 : vector<2x32xf32>
    %365 = arith.divf %363, %364 : vector<2x32xf32>
    %366 = vector.extract_strided_slice %353 {offsets = [0, 64], sizes = [2, 32], strides = [1, 1]} : vector<2x128xf32> to vector<2x32xf32>
    %367 = math.tanh %366 : vector<2x32xf32>
    %368 = vector.extract_strided_slice %353 {offsets = [0, 96], sizes = [2, 32], strides = [1, 1]} : vector<2x128xf32> to vector<2x32xf32>
    %369 = arith.negf %368 : vector<2x32xf32>
    %370 = math.exp %369 : vector<2x32xf32>
    %cst_82 = arith.constant 1.000000e+00 : f32
    %371 = vector.broadcast %cst_82 : f32 to vector<2x32xf32>
    %372 = arith.addf %371, %370 : vector<2x32xf32>
    %373 = arith.divf %371, %372 : vector<2x32xf32>
    %374 = arith.mulf %365, %346 : vector<2x32xf32>
    %375 = arith.mulf %359, %367 : vector<2x32xf32>
    %376 = arith.addf %374, %375 : vector<2x32xf32>
    %377 = math.tanh %376 : vector<2x32xf32>
    %378 = arith.mulf %373, %377 : vector<2x32xf32>
    %c10_83 = arith.constant 10 : index
    %c0_84 = arith.constant 0 : index
    %379 = vector.load %arg16[%c10_83, %c0_84] : memref<16x32xf32, #tpu.memory_space<vmem>>, vector<2x32xf32>
    tpu.vector_store %arg16[%c10_83, %c0_84], %378 {strides = array<i32>} : memref<16x32xf32, #tpu.memory_space<vmem>>, vector<2x32xf32>,
    %380 = vector.extract_strided_slice %256 {offsets = [8, 0], sizes = [2, 128], strides = [1, 1]} : vector<16x128xf32> to vector<2x128xf32>
    %381 = arith.truncf %378 : vector<2x32xf32> to vector<2x32xbf16>
    %cst_85 = arith.constant dense<0.000000e+00> : vector<2x128xf32>
    %382 = tpu.matmul %381, %257, %cst_85 {dimension_numbers = #tpu.dot_dimension_numbers<[1], [0], [0], [1], [0, 0, 1, 1], [], []>} : vector<2x32xbf16>, vector<32x128xbf16>, vector<2x128xf32> -> vector<2x128xf32>
    %383 = arith.addf %380, %382 : vector<2x128xf32>
    %384 = vector.extract_strided_slice %383 {offsets = [0, 0], sizes = [2, 32], strides = [1, 1]} : vector<2x128xf32> to vector<2x32xf32>
    %385 = arith.negf %384 : vector<2x32xf32>
    %386 = math.exp %385 : vector<2x32xf32>
    %cst_86 = arith.constant 1.000000e+00 : f32
    %387 = vector.broadcast %cst_86 : f32 to vector<2x32xf32>
    %388 = arith.addf %387, %386 : vector<2x32xf32>
    %389 = arith.divf %387, %388 : vector<2x32xf32>
    %390 = vector.extract_strided_slice %383 {offsets = [0, 32], sizes = [2, 32], strides = [1, 1]} : vector<2x128xf32> to vector<2x32xf32>
    %391 = arith.negf %390 : vector<2x32xf32>
    %392 = math.exp %391 : vector<2x32xf32>
    %cst_87 = arith.constant 1.000000e+00 : f32
    %393 = vector.broadcast %cst_87 : f32 to vector<2x32xf32>
    %394 = arith.addf %393, %392 : vector<2x32xf32>
    %395 = arith.divf %393, %394 : vector<2x32xf32>
    %396 = vector.extract_strided_slice %383 {offsets = [0, 64], sizes = [2, 32], strides = [1, 1]} : vector<2x128xf32> to vector<2x32xf32>
    %397 = math.tanh %396 : vector<2x32xf32>
    %398 = vector.extract_strided_slice %383 {offsets = [0, 96], sizes = [2, 32], strides = [1, 1]} : vector<2x128xf32> to vector<2x32xf32>
    %399 = arith.negf %398 : vector<2x32xf32>
    %400 = math.exp %399 : vector<2x32xf32>
    %cst_88 = arith.constant 1.000000e+00 : f32
    %401 = vector.broadcast %cst_88 : f32 to vector<2x32xf32>
    %402 = arith.addf %401, %400 : vector<2x32xf32>
    %403 = arith.divf %401, %402 : vector<2x32xf32>
    %404 = arith.mulf %395, %376 : vector<2x32xf32>
    %405 = arith.mulf %389, %397 : vector<2x32xf32>
    %406 = arith.addf %404, %405 : vector<2x32xf32>
    %407 = math.tanh %406 : vector<2x32xf32>
    %408 = arith.mulf %403, %407 : vector<2x32xf32>
    %c4_89 = arith.constant 4 : index
    %c0_90 = arith.constant 0 : index
    %409 = vector.load %arg16[%c4_89, %c0_90] : memref<16x32xf32, #tpu.memory_space<vmem>>, vector<2x32xf32>
    tpu.vector_store %arg16[%c4_89, %c0_90], %408 {strides = array<i32>} : memref<16x32xf32, #tpu.memory_space<vmem>>, vector<2x32xf32>,
    %410 = vector.extract_strided_slice %256 {offsets = [10, 0], sizes = [2, 128], strides = [1, 1]} : vector<16x128xf32> to vector<2x128xf32>
    %411 = arith.truncf %408 : vector<2x32xf32> to vector<2x32xbf16>
    %cst_91 = arith.constant dense<0.000000e+00> : vector<2x128xf32>
    %412 = tpu.matmul %411, %257, %cst_91 {dimension_numbers = #tpu.dot_dimension_numbers<[1], [0], [0], [1], [0, 0, 1, 1], [], []>} : vector<2x32xbf16>, vector<32x128xbf16>, vector<2x128xf32> -> vector<2x128xf32>
    %413 = arith.addf %410, %412 : vector<2x128xf32>
    %414 = vector.extract_strided_slice %413 {offsets = [0, 0], sizes = [2, 32], strides = [1, 1]} : vector<2x128xf32> to vector<2x32xf32>
    %415 = arith.negf %414 : vector<2x32xf32>
    %416 = math.exp %415 : vector<2x32xf32>
    %cst_92 = arith.constant 1.000000e+00 : f32
    %417 = vector.broadcast %cst_92 : f32 to vector<2x32xf32>
    %418 = arith.addf %417, %416 : vector<2x32xf32>
    %419 = arith.divf %417, %418 : vector<2x32xf32>
    %420 = vector.extract_strided_slice %413 {offsets = [0, 32], sizes = [2, 32], strides = [1, 1]} : vector<2x128xf32> to vector<2x32xf32>
    %421 = arith.negf %420 : vector<2x32xf32>
    %422 = math.exp %421 : vector<2x32xf32>
    %cst_93 = arith.constant 1.000000e+00 : f32
    %423 = vector.broadcast %cst_93 : f32 to vector<2x32xf32>
    %424 = arith.addf %423, %422 : vector<2x32xf32>
    %425 = arith.divf %423, %424 : vector<2x32xf32>
    %426 = vector.extract_strided_slice %413 {offsets = [0, 64], sizes = [2, 32], strides = [1, 1]} : vector<2x128xf32> to vector<2x32xf32>
    %427 = math.tanh %426 : vector<2x32xf32>
    %428 = vector.extract_strided_slice %413 {offsets = [0, 96], sizes = [2, 32], strides = [1, 1]} : vector<2x128xf32> to vector<2x32xf32>
    %429 = arith.negf %428 : vector<2x32xf32>
    %430 = math.exp %429 : vector<2x32xf32>
    %cst_94 = arith.constant 1.000000e+00 : f32
    %431 = vector.broadcast %cst_94 : f32 to vector<2x32xf32>
    %432 = arith.addf %431, %430 : vector<2x32xf32>
    %433 = arith.divf %431, %432 : vector<2x32xf32>
    %434 = arith.mulf %425, %406 : vector<2x32xf32>
    %435 = arith.mulf %419, %427 : vector<2x32xf32>
    %436 = arith.addf %434, %435 : vector<2x32xf32>
    %437 = math.tanh %436 : vector<2x32xf32>
    %438 = arith.mulf %433, %437 : vector<2x32xf32>
    %c12_95 = arith.constant 12 : index
    %c0_96 = arith.constant 0 : index
    %439 = vector.load %arg16[%c12_95, %c0_96] : memref<16x32xf32, #tpu.memory_space<vmem>>, vector<2x32xf32>
    tpu.vector_store %arg16[%c12_95, %c0_96], %438 {strides = array<i32>} : memref<16x32xf32, #tpu.memory_space<vmem>>, vector<2x32xf32>,
    %440 = vector.extract_strided_slice %256 {offsets = [12, 0], sizes = [2, 128], strides = [1, 1]} : vector<16x128xf32> to vector<2x128xf32>
    %441 = arith.truncf %438 : vector<2x32xf32> to vector<2x32xbf16>
    %cst_97 = arith.constant dense<0.000000e+00> : vector<2x128xf32>
    %442 = tpu.matmul %441, %257, %cst_97 {dimension_numbers = #tpu.dot_dimension_numbers<[1], [0], [0], [1], [0, 0, 1, 1], [], []>} : vector<2x32xbf16>, vector<32x128xbf16>, vector<2x128xf32> -> vector<2x128xf32>
    %443 = arith.addf %440, %442 : vector<2x128xf32>
    %444 = vector.extract_strided_slice %443 {offsets = [0, 0], sizes = [2, 32], strides = [1, 1]} : vector<2x128xf32> to vector<2x32xf32>
    %445 = arith.negf %444 : vector<2x32xf32>
    %446 = math.exp %445 : vector<2x32xf32>
    %cst_98 = arith.constant 1.000000e+00 : f32
    %447 = vector.broadcast %cst_98 : f32 to vector<2x32xf32>
    %448 = arith.addf %447, %446 : vector<2x32xf32>
    %449 = arith.divf %447, %448 : vector<2x32xf32>
    %450 = vector.extract_strided_slice %443 {offsets = [0, 32], sizes = [2, 32], strides = [1, 1]} : vector<2x128xf32> to vector<2x32xf32>
    %451 = arith.negf %450 : vector<2x32xf32>
    %452 = math.exp %451 : vector<2x32xf32>
    %cst_99 = arith.constant 1.000000e+00 : f32
    %453 = vector.broadcast %cst_99 : f32 to vector<2x32xf32>
    %454 = arith.addf %453, %452 : vector<2x32xf32>
    %455 = arith.divf %453, %454 : vector<2x32xf32>
    %456 = vector.extract_strided_slice %443 {offsets = [0, 64], sizes = [2, 32], strides = [1, 1]} : vector<2x128xf32> to vector<2x32xf32>
    %457 = math.tanh %456 : vector<2x32xf32>
    %458 = vector.extract_strided_slice %443 {offsets = [0, 96], sizes = [2, 32], strides = [1, 1]} : vector<2x128xf32> to vector<2x32xf32>
    %459 = arith.negf %458 : vector<2x32xf32>
    %460 = math.exp %459 : vector<2x32xf32>
    %cst_100 = arith.constant 1.000000e+00 : f32
    %461 = vector.broadcast %cst_100 : f32 to vector<2x32xf32>
    %462 = arith.addf %461, %460 : vector<2x32xf32>
    %463 = arith.divf %461, %462 : vector<2x32xf32>
    %464 = arith.mulf %455, %436 : vector<2x32xf32>
    %465 = arith.mulf %449, %457 : vector<2x32xf32>
    %466 = arith.addf %464, %465 : vector<2x32xf32>
    %467 = math.tanh %466 : vector<2x32xf32>
    %468 = arith.mulf %463, %467 : vector<2x32xf32>
    %c6_101 = arith.constant 6 : index
    %c0_102 = arith.constant 0 : index
    %469 = vector.load %arg16[%c6_101, %c0_102] : memref<16x32xf32, #tpu.memory_space<vmem>>, vector<2x32xf32>
    tpu.vector_store %arg16[%c6_101, %c0_102], %468 {strides = array<i32>} : memref<16x32xf32, #tpu.memory_space<vmem>>, vector<2x32xf32>,
    %470 = vector.extract_strided_slice %256 {offsets = [14, 0], sizes = [2, 128], strides = [1, 1]} : vector<16x128xf32> to vector<2x128xf32>
    %471 = arith.truncf %468 : vector<2x32xf32> to vector<2x32xbf16>
    %cst_103 = arith.constant dense<0.000000e+00> : vector<2x128xf32>
    %472 = tpu.matmul %471, %257, %cst_103 {dimension_numbers = #tpu.dot_dimension_numbers<[1], [0], [0], [1], [0, 0, 1, 1], [], []>} : vector<2x32xbf16>, vector<32x128xbf16>, vector<2x128xf32> -> vector<2x128xf32>
    %473 = arith.addf %470, %472 : vector<2x128xf32>
    %474 = vector.extract_strided_slice %473 {offsets = [0, 0], sizes = [2, 32], strides = [1, 1]} : vector<2x128xf32> to vector<2x32xf32>
    %475 = arith.negf %474 : vector<2x32xf32>
    %476 = math.exp %475 : vector<2x32xf32>
    %cst_104 = arith.constant 1.000000e+00 : f32
    %477 = vector.broadcast %cst_104 : f32 to vector<2x32xf32>
    %478 = arith.addf %477, %476 : vector<2x32xf32>
    %479 = arith.divf %477, %478 : vector<2x32xf32>
    %480 = vector.extract_strided_slice %473 {offsets = [0, 32], sizes = [2, 32], strides = [1, 1]} : vector<2x128xf32> to vector<2x32xf32>
    %481 = arith.negf %480 : vector<2x32xf32>
    %482 = math.exp %481 : vector<2x32xf32>
    %cst_105 = arith.constant 1.000000e+00 : f32
    %483 = vector.broadcast %cst_105 : f32 to vector<2x32xf32>
    %484 = arith.addf %483, %482 : vector<2x32xf32>
    %485 = arith.divf %483, %484 : vector<2x32xf32>
    %486 = vector.extract_strided_slice %473 {offsets = [0, 64], sizes = [2, 32], strides = [1, 1]} : vector<2x128xf32> to vector<2x32xf32>
    %487 = math.tanh %486 : vector<2x32xf32>
    %488 = vector.extract_strided_slice %473 {offsets = [0, 96], sizes = [2, 32], strides = [1, 1]} : vector<2x128xf32> to vector<2x32xf32>
    %489 = arith.negf %488 : vector<2x32xf32>
    %490 = math.exp %489 : vector<2x32xf32>
    %cst_106 = arith.constant 1.000000e+00 : f32
    %491 = vector.broadcast %cst_106 : f32 to vector<2x32xf32>
    %492 = arith.addf %491, %490 : vector<2x32xf32>
    %493 = arith.divf %491, %492 : vector<2x32xf32>
    %494 = arith.mulf %485, %466 : vector<2x32xf32>
    %495 = arith.mulf %479, %487 : vector<2x32xf32>
    %496 = arith.addf %494, %495 : vector<2x32xf32>
    %497 = math.tanh %496 : vector<2x32xf32>
    %498 = arith.mulf %493, %497 : vector<2x32xf32>
    %c14_107 = arith.constant 14 : index
    %c0_108 = arith.constant 0 : index
    %499 = vector.load %arg16[%c14_107, %c0_108] : memref<16x32xf32, #tpu.memory_space<vmem>>, vector<2x32xf32>
    tpu.vector_store %arg16[%c14_107, %c0_108], %498 {strides = array<i32>} : memref<16x32xf32, #tpu.memory_space<vmem>>, vector<2x32xf32>,
    %c0_109 = arith.constant 0 : index
    %c0_110 = arith.constant 0 : index
    %500 = vector.load %arg16[%c0_109, %c0_110] : memref<16x32xf32, #tpu.memory_space<vmem>>, vector<16x32xf32>
    %501 = arith.truncf %500 : vector<16x32xf32> to vector<16x32xbf16>
    %c0_111 = arith.constant 0 : index
    %c0_112 = arith.constant 0 : index
    %502 = vector.load %arg7[%c0_111, %c0_112] : memref<32x1024xbf16, #tpu.memory_space<vmem>>, vector<32x1024xbf16>
    %cst_113 = arith.constant dense<0.000000e+00> : vector<16x1024xf32>
    %503 = tpu.matmul %501, %502, %cst_113 {dimension_numbers = #tpu.dot_dimension_numbers<[1], [0], [0], [1], [0, 0, 1, 1], [], []>} : vector<16x32xbf16>, vector<32x1024xbf16>, vector<16x1024xf32> -> vector<16x1024xf32>
    %504 = vector.extract_strided_slice %503 {offsets = [0, 0], sizes = [8, 512], strides = [1, 1]} : vector<16x1024xf32> to vector<8x512xf32>
    %505 = vector.extract_strided_slice %503 {offsets = [0, 512], sizes = [8, 512], strides = [1, 1]} : vector<16x1024xf32> to vector<8x512xf32>
    %506 = arith.maximumf %504, %505 : vector<8x512xf32>
    %507 = vector.extract_strided_slice %503 {offsets = [8, 0], sizes = [8, 512], strides = [1, 1]} : vector<16x1024xf32> to vector<8x512xf32>
    %508 = vector.extract_strided_slice %503 {offsets = [8, 512], sizes = [8, 512], strides = [1, 1]} : vector<16x1024xf32> to vector<8x512xf32>
    %509 = arith.maximumf %507, %508 : vector<8x512xf32>
    %510 = arith.maximumf %506, %509 : vector<8x512xf32>
    %c0_114 = arith.constant 0 : index
    %c0_115 = arith.constant 0 : index
    %511 = vector.load %arg8[%c0_114, %c0_115] : memref<1x512xf32, #tpu.memory_space<vmem>>, vector<1x512xf32>
    %512 = vector.broadcast %511 : vector<1x512xf32> to vector<8x512xf32>
    %513 = arith.addf %510, %512 : vector<8x512xf32>
    %cst_116 = arith.constant 0.000000e+00 : f32
    %514 = vector.broadcast %cst_116 : f32 to vector<8x512xf32>
    %515 = arith.maximumf %513, %514 : vector<8x512xf32>
    %516 = arith.truncf %515 : vector<8x512xf32> to vector<8x512xbf16>
    %c0_117 = arith.constant 0 : index
    %c0_118 = arith.constant 0 : index
    %517 = vector.load %arg9[%c0_117, %c0_118] : memref<512x640xbf16, #tpu.memory_space<vmem>>, vector<512x640xbf16>
    %cst_119 = arith.constant dense<0.000000e+00> : vector<8x640xf32>
    %518 = tpu.matmul %516, %517, %cst_119 {dimension_numbers = #tpu.dot_dimension_numbers<[1], [0], [0], [1], [0, 0, 1, 1], [], []>} : vector<8x512xbf16>, vector<512x640xbf16>, vector<8x640xf32> -> vector<8x640xf32>
    %c0_120 = arith.constant 0 : index
    %c0_121 = arith.constant 0 : index
    %519 = vector.load %arg10[%c0_120, %c0_121] : memref<1x640xf32, #tpu.memory_space<vmem>>, vector<1x640xf32>
    %520 = vector.broadcast %519 : vector<1x640xf32> to vector<8x640xf32>
    %521 = arith.addf %518, %520 : vector<8x640xf32>
    %cst_122 = arith.constant 0.000000e+00 : f32
    %522 = vector.broadcast %cst_122 : f32 to vector<8x640xf32>
    %523 = arith.maximumf %521, %522 : vector<8x640xf32>
    %c0_123 = arith.constant 0 : index
    %c0_124 = arith.constant 0 : index
    %524 = vector.load %arg11[%c0_123, %c0_124] : memref<2x8xf32, #tpu.memory_space<vmem>>, vector<2x8xf32>
    %cst_125 = arith.constant dense<0.000000e+00> : vector<2x640xf32>
    %525 = tpu.matmul %524, %523, %cst_125 {dimension_numbers = #tpu.dot_dimension_numbers<[1], [0], [0], [1], [0, 0, 1, 1], [], []>} : vector<2x8xf32>, vector<8x640xf32>, vector<2x640xf32> -> vector<2x640xf32>
    %c0_126 = arith.constant 0 : index
    %c0_127 = arith.constant 0 : index
    %526 = vector.load %arg12[%c0_126, %c0_127] : memref<640x2xf32, #tpu.memory_space<vmem>>, vector<640x2xf32>
    %cst_128 = arith.constant dense<0.000000e+00> : vector<2x2xf32>
    %527 = tpu.matmul %525, %526, %cst_128 {dimension_numbers = #tpu.dot_dimension_numbers<[1], [0], [0], [1], [0, 0, 1, 1], [], []>} : vector<2x640xf32>, vector<640x2xf32>, vector<2x2xf32> -> vector<2x2xf32>
    %c0_129 = arith.constant 0 : index
    %c0_130 = arith.constant 0 : index
    %528 = vector.load %arg13[%c0_129, %c0_130] : memref<1x2xf32, #tpu.memory_space<vmem>>, vector<1x2xf32>
    %529 = vector.broadcast %528 : vector<1x2xf32> to vector<2x2xf32>
    %530 = arith.addf %527, %529 : vector<2x2xf32>
    %c0_131 = arith.constant 0 : index
    %c0_132 = arith.constant 0 : index
    %531 = vector.load %arg14[%c0_131, %c0_132] : memref<2x2xf32, #tpu.memory_space<vmem>>, vector<2x2xf32>
    tpu.vector_store %arg14[%c0_131, %c0_132], %530 {strides = array<i32>} : memref<2x2xf32, #tpu.memory_space<vmem>>, vector<2x2xf32>,
    return
  }
}

</mosaic_0001>

<bundles_post_ra>
// kernel: tpu_custom_call.1
= control target key start
LH: loop header
LB: loop body
LE: loop exit
PB: predicated region body
PF: predicated region fallthrough
CT: control target
= control target key end

     0   :  { %19 = vsyncpa [#allocation5], 0  ;;  %s5015_s0 = inlined_call_operand.vmem [shape: f32[16,18], index: 0, kind: input, shape index: {}]   ;;  %s5016_s1 = inlined_call_operand.vmem [shape: bf16[18,128], index: 1, kind: input, shape index: {}]   ;;  %s5017_s2 = inlined_call_operand.vmem [shape: bf16[32,128], index: 2, kind: input, shape index: {}]   ;;  %s5018_s3 = inlined_call_operand.vmem [shape: f32[1,128], index: 3, kind: input, shape index: {}]   ;;  %s5019_s4 = inlined_call_operand.vmem [shape: bf16[32,128], index: 4, kind: input, shape index: {}]   ;;  %s5020_s5 = inlined_call_operand.vmem [shape: bf16[32,128], index: 5, kind: input, shape index: {}]   ;;  %s5021_s6 = inlined_call_operand.vmem [shape: f32[1,128], index: 6, kind: input, shape index: {}]   ;;  %s5022_s7 = inlined_call_operand.vmem [shape: bf16[32,1024], index: 7, kind: input, shape index: {}]   ;;  %s5023_s8 = inlined_call_operand.vmem [shape: f32[1,512], index: 8, kind: input, shape index: {}]   ;;  %s5024_s9 = inlined_call_operand.hbm [shape: bf16[512,640], index: 9, kind: input, shape index: {}]   ;;  %s5025_s10 = inlined_call_operand.vmem [shape: f32[1,640], index: 10, kind: input, shape index: {}]   ;;  %s5026_s11 = inlined_call_operand.vmem [shape: f32[2,8], index: 11, kind: input, shape index: {}]   ;;  %s5027_s12 = inlined_call_operand.vmem [shape: f32[640,2], index: 12, kind: input, shape index: {}]   ;;  %s5028_s13 = inlined_call_operand.vmem [shape: f32[1,2], index: 13, kind: input, shape index: {}]   ;;  %s5029_s14 = inlined_call_operand.hbm [shape: f32[2,2], index: 14, kind: output, shape index: {}]  }
   0x1   :  { %20 = vsyncpa [#allocation6], 0  ;;  %s43_s15 = sshll.u32 %s5024_s9, 4  ;;  %s4275_s16 = smov [#allocation4]   ;;  %s44_s15 = int_to_ptr.hbm [resolvable:$true] %s43_s15 }
   0x2   :  { %s45_s17 = sshll.u32 %s4275_s16, 4  ;;  %s4276_s18 = smov 320   ;;  %s46_s17 = int_to_ptr.vmem [resolvable:$true] %s45_s17 }
   0x3   :  { %s4277_s19 = smov 20  }
   0x4   :  { %51 = dma.hbm_to_vmem [thread:$0]  %s44_s15, 20480, %s46_s17, [#allocation5], %s4276_s18, %s4276_s18, %s4277_s19  }
   0x5   :  { %4271 = dma.done.wait [#allocation5], 20480  }
   0x6   :  { %4272 = vsyncadd [#allocation5], 4294946816  ;;  %v3904_v0 = vld [vmem:[%s5017_s2 + $0x8] sm:$0xff]  ;;  %vm88_vm0 = vcmask 1040384   ;;  %v3903_v3 = vld [vmem:[%s5017_s2] sm:$0xff]  ;;  %v4278_v9 = vmov 0  }
   0x7   :  { %v70_v1 = vld [vmem:[%s5016_s1 + $0x8] sm:$0x1]  ;;  %132 = vmatpush.bf16.msra.mxu2 %v3904_v0  ;;  %267 = vmatpush.bf16.msra.mxu3 %v3904_v0  ;;  %v3902_v6 = vld [vmem:[%s5016_s1] sm:$0xff]  ;;  %vm84_vm1 = vcmask 146432   ;;  %s4279_s2 = smov 64   ;;  %vm122_vm6 = vcmask 261120  }
   0x8   :  { %v80_v2 = vunpack.c.l.b16 %v70_v1  ;;  %409 = vmatpush.bf16.msra.mxu1 %v3904_v0  ;;  %v65_v7 = vld [vmem:[%s5015_s0] sm:$0xff]  ;;  %v66_v8 = vld [vmem:[%s5015_s0 + $0x8] sm:$0xff]  ;;  %s3115_s18 = sshll.u32 %s5029_s14, 4  ;;  %s3116_s18 = int_to_ptr.hbm [resolvable:$true] %s3115_s18 }
   0x9   :  { %v67_v10 = vpack.c.bf16 %v66_v8, %v65_v7  ;;  %v4382_v11 = vld [vmem:[%s5018_s3] ss:$0 sm:$0xff]  ;;  %s4280_s3 = smov 32  }
   0xa   :  { %v82_v4 = vpack.c.b16 %v80_v2, %v80_v2 }
   0xb   :  { %133 = vmatpush.bf16.msra.mxu2 %v3903_v3  ;;  %268 = vmatpush.bf16.msra.mxu3 %v3903_v3 }
   0xc   :  { %v90_v5 = vsel %vm88_vm0, %v82_v4, 0  ;;  %410 = vmatpush.bf16.msra.mxu1 %v3903_v3 }
   0xd   :  { %98 = vmatpush.bf16.msra.mxu0 %v90_v5 }
   0xe   :  { %134 = vmatmul.bf16.vlgmr.msra.gmra.mxu2 %v4278_v9 }
   0xf   :  { %196 = vmatpush.bf16.msrb.mxu2 %v3904_v0  ;;  %545 = vmatpush.bf16.msrb.mxu3 %v3904_v0 }
  0x11   :  { %99 = vmatpush.bf16.msra.mxu0 %v3902_v6 }
  0x13   :  { %197 = vmatpush.bf16.msrb.mxu2 %v3903_v3  ;;  %546 = vmatpush.bf16.msrb.mxu3 %v3903_v3 }
  0x14   :  { %3129 = vmatmul.msk.bf16.vlgmr.msra.gmra.mxu0 %vm84_vm1, %v67_v10 }
  0x15   :  { %338 = vmatpush.bf16.msrb.mxu0 %v3904_v0 }
  0x17   :  { %475 = vmatpush.bf16.msra.mxu2 %v3904_v0 }
  0x19   :  { %339 = vmatpush.bf16.msrb.mxu0 %v3903_v3 }
  0x1b   :  { %476 = vmatpush.bf16.msra.mxu2 %v3903_v3 }
  0x1d   :  { %615 = vmatpush.bf16.msra.mxu0 %v3904_v0 }
  0x21   :  { %616 = vmatpush.bf16.msra.mxu0 %v3903_v3 }
  0x91   :  { %v101_v12 = vpop.f32.mrf.mxu0  ;;  %v135_v14 = vpop.f32.mrf.mxu2 }
  0x92   :  { %v4385_v13 = vadd.f32 %v4382_v11, %v101_v12 }
  0x94   :  { %v139_v15 = vadd.f32 %v135_v14, %v4385_v13 }
  0x96   :  { %4095 = vtanh.f32 %v139_v15  ;;  %v3138_v18 = vmul.f32 -1.442695, %v139_v15 }
  0x98   :  { %4097 = vpow2.f32 %v3138_v18 }
  0x99   :  { %v137_v16 = vpop.f32.mrf.mxu2 }
  0x9c   :  { %v4096_v17 = vpop.eup %4095 }
  0x9d   :  { %162 = vrot.lane.b32.xlu0 %v4096_v17, %s4279_s2 }
  0x9e   :  { %v4098_v19 = vpop.eup %4097 }
  0x9f   :  { %v143_v20 = vadd.f32 1.0, %v4098_v19 }
  0xa1   :  { %4099 = vrcp.f32 %v143_v20  ;;  %v155_v26 = vand.u32 2147483648, %v143_v20  ;;  %vm149_vm3 = vweird.f32 %v143_v20  ;;  %v153_v27 = vand.u32 2147483647, %v143_v20 }
  0xa3   :  { %v156_v29 = vor.u32 1.1754944e-38, %v155_v26  ;;  %vm154_vm5 = vcmp.eq.f32.partialorder %v153_v27, 8.507059e+37 }
  0xa7   :  { %v4100_v21 = vpop.eup %4099 }
  0xa8   :  { %v145_v22 = vmul.f32 %v4100_v21, %v143_v20  ;;  %vm150_vm2 = vweird.f32 %v4100_v21 }
  0xa9   :  { %vm151_vm4 = vmor %vm149_vm3, %vm150_vm2 }
  0xaa   :  { %v146_v23 = vsub.f32 1.0, %v145_v22 }
  0xac   :  { %v147_v24 = vmul.f32 %v4100_v21, %v146_v23 }
  0xae   :  { %v148_v25 = vadd.f32 %v4100_v21, %v147_v24 }
  0xb0   :  { %v152_v28 = vsel %vm151_vm4, %v4100_v21, %v148_v25 }
  0xb1   :  { %v157_v31 = vsel %vm154_vm5, %v156_v29, %v152_v28 }
  0xb2   :  { %v160_v33 = vmul.f32 0.0, %v157_v31 }
 0x10f   :  { %v163_v30 = vpop.permute.xlu0 %162 }
 0x110   :  { %v165_v32 = vmul.f32 %v163_v30, %v157_v31 }
 0x112   :  { %167 = vrot.lane.b32.xlu0 %v165_v32, %s4280_s3 }
 0x184   :  { %v168_v34 = vpop.permute.xlu0 %167 }
 0x185   :  { %v170_v35 = vadd.f32 %v168_v34, %v160_v33 }
 0x187   :  { %4101 = vtanh.f32 %v170_v35  ;;  %v228_v61 = vrot.slane %v170_v35, 6 }
 0x18d   :  { %v4102_v36 = vpop.eup %4101 }
 0x18e   :  { %173 = vrot.lane.b32.xlu1 %v4102_v36, %s4279_s2 }
 0x200   :  { %v174_v37 = vpop.permute.xlu1 %173 }
 0x201   :  { %v4391_v38 = vmul.f32 %v174_v37, %v157_v31 }
 0x203   :  { %v183_v39 = vpack.c.bf16 %v4391_v38, %v4391_v38 }
 0x205   :  { %185 = vrot.lane.b32.xlu1 %v183_v39, %s4280_s3 }
 0x277   :  { %v186_v40 = vpop.permute.xlu1 %185 }
 0x278   :  { %3139 = vmatmul.msk.bf16.vlgmr.msrb.gmra.mxu2 %vm122_vm6, %v186_v40 }
 0x2fb   :  { %v199_v41 = vpop.f32.mrf.mxu2 }
 0x2fc   :  { %v204_v42 = vrot.slane %v199_v41, 6  ;;  %v103_v41 = vpop.f32.mrf.mxu0 }
 0x2fe   :  { %v206_v43 = vadd.f32 %v204_v42, %v4385_v13 }
 0x300   :  { %4103 = vtanh.f32 %v206_v43  ;;  %v3140_v46 = vmul.f32 -1.442695, %v206_v43 }
 0x302   :  { %4105 = vpow2.f32 %v3140_v46 }
 0x303   :  { %v201_v44 = vpop.f32.mrf.mxu2 }
 0x306   :  { %v4104_v45 = vpop.eup %4103 }
 0x307   :  { %232 = vrot.lane.b32.xlu2 %v4104_v45, %s4279_s2 }
 0x308   :  { %v4106_v47 = vpop.eup %4105 }
 0x309   :  { %v210_v48 = vadd.f32 1.0, %v4106_v47 }
 0x30b   :  { %4107 = vrcp.f32 %v210_v48  ;;  %v222_v54 = vand.u32 2147483648, %v210_v48  ;;  %vm216_vm8 = vweird.f32 %v210_v48  ;;  %v220_v55 = vand.u32 2147483647, %v210_v48 }
 0x30d   :  { %v223_v57 = vor.u32 1.1754944e-38, %v222_v54  ;;  %vm221_vm10 = vcmp.eq.f32.partialorder %v220_v55, 8.507059e+37 }
 0x311   :  { %v4108_v49 = vpop.eup %4107 }
 0x312   :  { %v212_v50 = vmul.f32 %v4108_v49, %v210_v48  ;;  %vm217_vm7 = vweird.f32 %v4108_v49 }
 0x313   :  { %vm218_vm9 = vmor %vm216_vm8, %vm217_vm7 }
 0x314   :  { %v213_v51 = vsub.f32 1.0, %v212_v50 }
 0x316   :  { %v214_v52 = vmul.f32 %v4108_v49, %v213_v51 }
 0x318   :  { %v215_v53 = vadd.f32 %v4108_v49, %v214_v52 }
 0x31a   :  { %v219_v56 = vsel %vm218_vm9, %v4108_v49, %v215_v53 }
 0x31b   :  { %v224_v59 = vsel %vm221_vm10, %v223_v57, %v219_v56 }
 0x31c   :  { %v230_v62 = vmul.f32 %v228_v61, %v224_v59 }
 0x361   :  { %v233_v58 = vpop.permute.xlu2 %232 }
 0x362   :  { %v235_v60 = vmul.f32 %v233_v58, %v224_v59 }
 0x364   :  { %237 = vrot.lane.b32.xlu2 %v235_v60, %s4280_s3 }
 0x3be   :  { %v238_v63 = vpop.permute.xlu2 %237 }
 0x3bf   :  { %v240_v0 = vadd.f32 %v238_v63, %v230_v62 }
 0x3c1   :  { %4109 = vtanh.f32 %v240_v0  ;;  %v299_v30 = vrot.slane %v240_v0, 6 }
 0x3c7   :  { %v4110_v1 = vpop.eup %4109 }
 0x3c8   :  { %243 = vrot.lane.b32.xlu0 %v4110_v1, %s4279_s2 }
 0x43a   :  { %v244_v2 = vpop.permute.xlu0 %243 }
 0x43b   :  { %v4401_v3 = vmul.f32 %v244_v2, %v224_v59 }
 0x43d   :  { %v253_v4 = vpack.c.bf16 %v4401_v3, %v4401_v3 }
 0x43f   :  { %v255_v5 = vrot.slane %v253_v4, 1 }
 0x441   :  { %256 = vrot.lane.b32.xlu1 %v255_v5, %s4280_s3 }
 0x4b3   :  { %v257_v6 = vpop.permute.xlu1 %256 }
 0x4b4   :  { %3141 = vmatmul.msk.bf16.vlgmr.msra.gmra.mxu3 %vm122_vm6, %v257_v6 }
 0x537   :  { %v270_v7 = vpop.f32.mrf.mxu3 }
 0x538   :  { %v275_v8 = vrot.slane %v270_v7, 4 }
 0x53a   :  { %v277_v10 = vadd.f32 %v275_v8, %v4385_v13  ;;  %v4428_v8 = vadd.f32 %v4382_v11, %v103_v41 }
 0x53c   :  { %4111 = vtanh.f32 %v277_v10  ;;  %v3142_v15 = vmul.f32 -1.442695, %v277_v10 }
 0x53e   :  { %4113 = vpow2.f32 %v3142_v15 }
 0x53f   :  { %v272_v12 = vpop.f32.mrf.mxu3 }
 0x542   :  { %v4112_v14 = vpop.eup %4111 }
 0x543   :  { %303 = vrot.lane.b32.xlu2 %v4112_v14, %s4279_s2 }
 0x544   :  { %v4114_v16 = vpop.eup %4113 }
 0x545   :  { %v281_v17 = vadd.f32 1.0, %v4114_v16 }
 0x547   :  { %4115 = vrcp.f32 %v281_v17  ;;  %v293_v23 = vand.u32 2147483648, %v281_v17  ;;  %vm287_vm12 = vweird.f32 %v281_v17  ;;  %v291_v24 = vand.u32 2147483647, %v281_v17 }
 0x549   :  { %v294_v26 = vor.u32 1.1754944e-38, %v293_v23  ;;  %vm292_vm14 = vcmp.eq.f32.partialorder %v291_v24, 8.507059e+37 }
 0x54d   :  { %v4116_v18 = vpop.eup %4115 }
 0x54e   :  { %v283_v19 = vmul.f32 %v4116_v18, %v281_v17  ;;  %vm288_vm11 = vweird.f32 %v4116_v18 }
 0x54f   :  { %vm289_vm13 = vmor %vm287_vm12, %vm288_vm11 }
 0x550   :  { %v284_v20 = vsub.f32 1.0, %v283_v19 }
 0x552   :  { %v285_v21 = vmul.f32 %v4116_v18, %v284_v20 }
 0x554   :  { %v286_v22 = vadd.f32 %v4116_v18, %v285_v21 }
 0x556   :  { %v290_v25 = vsel %vm289_vm13, %v4116_v18, %v286_v22 }
 0x557   :  { %v295_v28 = vsel %vm292_vm14, %v294_v26, %v290_v25 }
 0x558   :  { %v301_v31 = vmul.f32 %v299_v30, %v295_v28 }
 0x59d   :  { %v304_v27 = vpop.permute.xlu2 %303 }
 0x59e   :  { %v306_v29 = vmul.f32 %v304_v27, %v295_v28 }
 0x5a0   :  { %308 = vrot.lane.b32.xlu0 %v306_v29, %s4280_s3 }
 0x612   :  { %v309_v32 = vpop.permute.xlu0 %308 }
 0x613   :  { %v311_v33 = vadd.f32 %v309_v32, %v301_v31 }
 0x615   :  { %4117 = vtanh.f32 %v311_v33  ;;  %v370_v61 = vrot.slane %v311_v33, 6 }
 0x61b   :  { %v4118_v34 = vpop.eup %4117 }
 0x61c   :  { %314 = vrot.lane.b32.xlu1 %v4118_v34, %s4279_s2 }
 0x68e   :  { %v315_v35 = vpop.permute.xlu1 %314 }
 0x68f   :  { %v4411_v36 = vmul.f32 %v315_v35, %v295_v28 }
 0x691   :  { %v324_v37 = vpack.c.bf16 %v4411_v36, %v4411_v36 }
 0x693   :  { %v326_v39 = vrot.slane %v324_v37, 2 }
 0x695   :  { %327 = vrot.lane.b32.xlu2 %v326_v39, %s4280_s3 }
 0x6ef   :  { %v328_v40 = vpop.permute.xlu2 %327 }
 0x6f0   :  { %3143 = vmatmul.msk.bf16.vlgmr.msrb.gmra.mxu0 %vm122_vm6, %v328_v40 }
 0x76d   :  { %v341_v42 = vpop.f32.mrf.mxu0 }
 0x76e   :  { %v346_v43 = vrot.slane %v341_v42, 2 }
 0x770   :  { %v348_v44 = vadd.f32 %v346_v43, %v4385_v13 }
 0x772   :  { %4119 = vtanh.f32 %v348_v44  ;;  %v3144_v47 = vmul.f32 -1.442695, %v348_v44 }
 0x774   :  { %4121 = vpow2.f32 %v3144_v47 }
 0x775   :  { %v343_v45 = vpop.f32.mrf.mxu0 }
 0x778   :  { %v4120_v46 = vpop.eup %4119 }
 0x779   :  { %374 = vrot.lane.b32.xlu0 %v4120_v46, %s4279_s2 }
 0x77a   :  { %v4122_v48 = vpop.eup %4121 }
 0x77b   :  { %v352_v49 = vadd.f32 1.0, %v4122_v48 }
 0x77d   :  { %4123 = vrcp.f32 %v352_v49  ;;  %v364_v55 = vand.u32 2147483648, %v352_v49  ;;  %vm358_vm0 = vweird.f32 %v352_v49  ;;  %v362_v56 = vand.u32 2147483647, %v352_v49 }
 0x77f   :  { %v365_v57 = vor.u32 1.1754944e-38, %v364_v55  ;;  %vm363_vm2 = vcmp.eq.f32.partialorder %v362_v56, 8.507059e+37 }
 0x783   :  { %v4124_v50 = vpop.eup %4123 }
 0x784   :  { %v354_v51 = vmul.f32 %v4124_v50, %v352_v49  ;;  %vm359_vm15 = vweird.f32 %v4124_v50 }
 0x785   :  { %vm360_vm1 = vmor %vm358_vm0, %vm359_vm15 }
 0x786   :  { %v355_v52 = vsub.f32 1.0, %v354_v51 }
 0x788   :  { %v356_v53 = vmul.f32 %v4124_v50, %v355_v52 }
 0x78a   :  { %v357_v54 = vadd.f32 %v4124_v50, %v356_v53 }
 0x78c   :  { %v361_v13 = vsel %vm360_vm1, %v4124_v50, %v357_v54 }
 0x78d   :  { %v366_v59 = vsel %vm363_vm2, %v365_v57, %v361_v13 }
 0x78e   :  { %v372_v62 = vmul.f32 %v370_v61, %v366_v59 }
 0x7eb   :  { %v375_v58 = vpop.permute.xlu0 %374 }
 0x7ec   :  { %v377_v60 = vmul.f32 %v375_v58, %v366_v59 }
 0x7ee   :  { %379 = vrot.lane.b32.xlu1 %v377_v60, %s4280_s3 }
 0x860   :  { %v380_v63 = vpop.permute.xlu1 %379 }
 0x861   :  { %v382_v0 = vadd.f32 %v380_v63, %v372_v62 }
 0x863   :  { %4125 = vtanh.f32 %v382_v0  ;;  %v438_v30 = vrot.slane %v382_v0, 6 }
 0x869   :  { %v4126_v1 = vpop.eup %4125 }
 0x86a   :  { %385 = vrot.lane.b32.xlu2 %v4126_v1, %s4279_s2 }
 0x8c4   :  { %v386_v2 = vpop.permute.xlu2 %385 }
 0x8c5   :  { %v4421_v4 = vmul.f32 %v386_v2, %v366_v59 }
 0x8c7   :  { %v395_v5 = vpack.c.bf16 %v4421_v4, %v4421_v4 }
 0x8c9   :  { %v397_v6 = vrot.slane %v395_v5, 3 }
 0x8cb   :  { %398 = vrot.lane.b32.xlu0 %v397_v6, %s4280_s3 }
 0x93d   :  { %v399_v7 = vpop.permute.xlu0 %398 }
 0x93e   :  { %3145 = vmatmul.msk.bf16.vlgmr.msra.gmra.mxu1 %vm122_vm6, %v399_v7 }
 0x9bb   :  { %v412_v10 = vpop.f32.mrf.mxu1 }
 0x9bc   :  { %v416_v12 = vadd.f32 %v412_v10, %v4428_v8 }
 0x9be   :  { %4127 = vtanh.f32 %v416_v12  ;;  %v3146_v16 = vmul.f32 -1.442695, %v416_v12 }
 0x9c0   :  { %4129 = vpow2.f32 %v3146_v16 }
 0x9c3   :  { %v414_v14 = vpop.f32.mrf.mxu1 }
 0x9c4   :  { %v4128_v15 = vpop.eup %4127 }
 0x9c5   :  { %442 = vrot.lane.b32.xlu1 %v4128_v15, %s4279_s2 }
 0x9c6   :  { %v4130_v17 = vpop.eup %4129 }
 0x9c7   :  { %v420_v18 = vadd.f32 1.0, %v4130_v17 }
 0x9c9   :  { %4131 = vrcp.f32 %v420_v18  ;;  %v432_v11 = vand.u32 2147483648, %v420_v18  ;;  %vm426_vm4 = vweird.f32 %v420_v18  ;;  %v430_v24 = vand.u32 2147483647, %v420_v18 }
 0x9cb   :  { %v433_v26 = vor.u32 1.1754944e-38, %v432_v11  ;;  %vm431_vm7 = vcmp.eq.f32.partialorder %v430_v24, 8.507059e+37 }
 0x9cf   :  { %v4132_v19 = vpop.eup %4131 }
 0x9d0   :  { %v422_v20 = vmul.f32 %v4132_v19, %v420_v18  ;;  %vm427_vm3 = vweird.f32 %v4132_v19 }
 0x9d1   :  { %vm428_vm5 = vmor %vm426_vm4, %vm427_vm3  ;;  %vm181_vm4 = vcmask 254976  }
 0x9d2   :  { %v423_v21 = vsub.f32 1.0, %v422_v20 }
 0x9d4   :  { %v424_v22 = vmul.f32 %v4132_v19, %v423_v21 }
 0x9d6   :  { %v425_v23 = vadd.f32 %v4132_v19, %v424_v22 }
 0x9d8   :  { %v429_v25 = vsel %vm428_vm5, %v4132_v19, %v425_v23  ;;  %vm393_vm5 = vcmask 261126  }
 0x9d9   :  { %v434_v28 = vsel %vm431_vm7, %v433_v26, %v429_v25  ;;  %vm322_vm7 = vcmask 259076  }
 0x9da   :  { %v440_v31 = vmul.f32 %v438_v30, %v434_v28 }
 0xa37   :  { %v443_v27 = vpop.permute.xlu1 %442 }
 0xa38   :  { %v445_v29 = vmul.f32 %v443_v27, %v434_v28 }
 0xa3a   :  { %447 = vrot.lane.b32.xlu2 %v445_v29, %s4280_s3 }
 0xa94   :  { %v448_v32 = vpop.permute.xlu2 %447 }
 0xa95   :  { %v450_v33 = vadd.f32 %v448_v32, %v440_v31 }
 0xa97   :  { %4133 = vtanh.f32 %v450_v33  ;;  %v507_v60 = vrot.slane %v450_v33, 6 }
 0xa9d   :  { %v4134_v34 = vpop.eup %4133 }
 0xa9e   :  { %453 = vrot.lane.b32.xlu0 %v4134_v34, %s4279_s2 }
 0xb10   :  { %v454_v35 = vpop.permute.xlu0 %453 }
 0xb11   :  { %v4434_v37 = vmul.f32 %v454_v35, %v434_v28 }
 0xb13   :  { %v462_v39 = vpack.c.bf16 %v4434_v37, %v4434_v37 }
 0xb15   :  { %464 = vrot.lane.b32.xlu1 %v462_v39, %s4280_s3 }
 0xb87   :  { %v465_v40 = vpop.permute.xlu1 %464 }
 0xb88   :  { %3147 = vmatmul.msk.bf16.vlgmr.msra.gmra.mxu2 %vm122_vm6, %v465_v40 }
 0xc0b   :  { %v478_v41 = vpop.f32.mrf.mxu2 }
 0xc0c   :  { %v483_v42 = vrot.slane %v478_v41, 6 }
 0xc0e   :  { %v485_v43 = vadd.f32 %v483_v42, %v4428_v8 }
 0xc10   :  { %4135 = vtanh.f32 %v485_v43  ;;  %v3148_v46 = vmul.f32 -1.442695, %v485_v43 }
 0xc12   :  { %4137 = vpow2.f32 %v3148_v46 }
 0xc13   :  { %v480_v44 = vpop.f32.mrf.mxu2 }
 0xc16   :  { %v4136_v45 = vpop.eup %4135 }
 0xc17   :  { %511 = vrot.lane.b32.xlu2 %v4136_v45, %s4279_s2 }
 0xc18   :  { %v4138_v47 = vpop.eup %4137 }
 0xc19   :  { %v489_v48 = vadd.f32 1.0, %v4138_v47 }
 0xc1b   :  { %4139 = vrcp.f32 %v489_v48  ;;  %v501_v54 = vand.u32 2147483648, %v489_v48  ;;  %vm495_vm9 = vweird.f32 %v489_v48  ;;  %v499_v55 = vand.u32 2147483647, %v489_v48 }
 0xc1d   :  { %v502_v13 = vor.u32 1.1754944e-38, %v501_v54  ;;  %vm500_vm11 = vcmp.eq.f32.partialorder %v499_v55, 8.507059e+37 }
 0xc21   :  { %v4140_v49 = vpop.eup %4139 }
 0xc22   :  { %v491_v50 = vmul.f32 %v4140_v49, %v489_v48  ;;  %vm496_vm8 = vweird.f32 %v4140_v49 }
 0xc23   :  { %vm497_vm10 = vmor %vm495_vm9, %vm496_vm8  ;;  %vm251_vm8 = vcmask 257026  }
 0xc24   :  { %v492_v51 = vsub.f32 1.0, %v491_v50 }
 0xc26   :  { %v493_v52 = vmul.f32 %v4140_v49, %v492_v51 }
 0xc28   :  { %v494_v53 = vadd.f32 %v4140_v49, %v493_v52 }
 0xc2a   :  { %v498_v56 = vsel %vm497_vm10, %v4140_v49, %v494_v53 }
 0xc2b   :  { %v503_v58 = vsel %vm500_vm11, %v502_v13, %v498_v56 }
 0xc2c   :  { %v509_v61 = vmul.f32 %v507_v60, %v503_v58 }
 0xc71   :  { %v512_v57 = vpop.permute.xlu2 %511 }
 0xc72   :  { %v514_v59 = vmul.f32 %v512_v57, %v503_v58 }
 0xc74   :  { %516 = vrot.lane.b32.xlu0 %v514_v59, %s4280_s3 }
 0xce6   :  { %v517_v62 = vpop.permute.xlu0 %516 }
 0xce7   :  { %v519_v63 = vadd.f32 %v517_v62, %v509_v61 }
 0xce9   :  { %4141 = vtanh.f32 %v519_v63  ;;  %v577_v31 = vrot.slane %v519_v63, 6 }
 0xcef   :  { %v4142_v0 = vpop.eup %4141 }
 0xcf0   :  { %522 = vrot.lane.b32.xlu1 %v4142_v0, %s4279_s2 }
 0xd62   :  { %v523_v1 = vpop.permute.xlu1 %522 }
 0xd63   :  { %v4444_v2 = vmul.f32 %v523_v1, %v503_v58 }
 0xd65   :  { %v531_v5 = vpack.c.bf16 %v4444_v2, %v4444_v2 }
 0xd67   :  { %v533_v6 = vrot.slane %v531_v5, 1 }
 0xd69   :  { %534 = vrot.lane.b32.xlu2 %v533_v6, %s4280_s3 }
 0xdc3   :  { %v535_v7 = vpop.permute.xlu2 %534 }
 0xdc4   :  { %3149 = vmatmul.msk.bf16.vlgmr.msrb.gmra.mxu3 %vm122_vm6, %v535_v7 }
 0xe47   :  { %v548_v10 = vpop.f32.mrf.mxu3 }
 0xe48   :  { %v553_v12 = vrot.slane %v548_v10, 4  ;;  %v3907_v10 = vld [vmem:[%s5020_s5] sm:$0xff] }
 0xe4a   :  { %v555_v14 = vadd.f32 %v553_v12, %v4428_v8 }
 0xe4c   :  { %4143 = vtanh.f32 %v555_v14  ;;  %v3150_v17 = vmul.f32 -1.442695, %v555_v14 }
 0xe4e   :  { %4145 = vpow2.f32 %v3150_v17 }
 0xe4f   :  { %v550_v15 = vpop.f32.mrf.mxu3 }
 0xe50   :  { %v3906_v15 = vld [vmem:[%s5019_s4 + $0x8] sm:$0xff] }
 0xe51   :  { %703 = vmatpush.bf16.msrb.mxu1 %v3906_v15 }
 0xe52   :  { %v4144_v16 = vpop.eup %4143 }
 0xe53   :  { %581 = vrot.lane.b32.xlu0 %v4144_v16, %s4279_s2 }
 0xe54   :  { %v4146_v18 = vpop.eup %4145 }
 0xe55   :  { %v559_v19 = vadd.f32 1.0, %v4146_v18 }
 0xe57   :  { %4147 = vrcp.f32 %v559_v19  ;;  %v571_v24 = vand.u32 2147483648, %v559_v19  ;;  %vm565_vm13 = vweird.f32 %v559_v19  ;;  %v569_v25 = vand.u32 2147483647, %v559_v19 }
 0xe59   :  { %v572_v27 = vor.u32 1.1754944e-38, %v571_v24  ;;  %vm570_vm15 = vcmp.eq.f32.partialorder %v569_v25, 8.507059e+37 }
 0xe5d   :  { %v4148_v20 = vpop.eup %4147 }
 0xe5e   :  { %v561_v21 = vmul.f32 %v4148_v20, %v559_v19  ;;  %vm566_vm12 = vweird.f32 %v4148_v20 }
 0xe5f   :  { %vm567_vm14 = vmor %vm565_vm13, %vm566_vm12 }
 0xe60   :  { %v562_v22 = vsub.f32 1.0, %v561_v21 }
 0xe62   :  { %v563_v23 = vmul.f32 %v4148_v20, %v562_v22  ;;  %v4499_v22 = vld [vmem:[%s5021_s6] ss:$0 sm:$0xff] }
 0xe64   :  { %v564_v11 = vadd.f32 %v4148_v20, %v563_v23 }
 0xe66   :  { %v568_v26 = vsel %vm567_vm14, %v4148_v20, %v564_v11 }
 0xe67   :  { %v573_v29 = vsel %vm570_vm15, %v572_v27, %v568_v26 }
 0xe68   :  { %v579_v32 = vmul.f32 %v577_v31, %v573_v29 }
 0xec5   :  { %v582_v28 = vpop.permute.xlu0 %581 }
 0xec6   :  { %v584_v30 = vmul.f32 %v582_v28, %v573_v29 }
 0xec8   :  { %586 = vrot.lane.b32.xlu1 %v584_v30, %s4280_s3 }
 0xf3a   :  { %v587_v33 = vpop.permute.xlu1 %586 }
 0xf3b   :  { %v589_v34 = vadd.f32 %v587_v33, %v579_v32 }
 0xf3d   :  { %4149 = vtanh.f32 %v589_v34  ;;  %v647_v63 = vrot.slane %v589_v34, 6 }
 0xf43   :  { %v4150_v35 = vpop.eup %4149 }
 0xf44   :  { %592 = vrot.lane.b32.xlu2 %v4150_v35, %s4279_s2 }
 0xf9e   :  { %v593_v39 = vpop.permute.xlu2 %592 }
 0xf9f   :  { %v595_v40 = vmul.f32 %v593_v39, %v573_v29 }
 0xfa1   :  { %v601_v41 = vpack.c.bf16 %v595_v40, %v595_v40 }
 0xfa3   :  { %v603_v42 = vrot.slane %v601_v41, 2 }
 0xfa5   :  { %604 = vrot.lane.b32.xlu0 %v603_v42, %s4280_s3 }
0x1017   :  { %v605_v43 = vpop.permute.xlu0 %604 }
0x1018   :  { %3151 = vmatmul.msk.bf16.vlgmr.msra.gmra.mxu0 %vm122_vm6, %v605_v43 }
0x1095   :  { %v618_v44 = vpop.f32.mrf.mxu0 }
0x1096   :  { %v623_v45 = vrot.slane %v618_v44, 2 }
0x1098   :  { %v625_v46 = vadd.f32 %v623_v45, %v4428_v8 }
0x109a   :  { %4151 = vtanh.f32 %v625_v46  ;;  %v3152_v49 = vmul.f32 -1.442695, %v625_v46 }
0x109c   :  { %4153 = vpow2.f32 %v3152_v49 }
0x109d   :  { %v620_v47 = vpop.f32.mrf.mxu0 }
0x10a0   :  { %v4152_v48 = vpop.eup %4151 }
0x10a1   :  { %651 = vrot.lane.b32.xlu1 %v4152_v48, %s4279_s2 }
0x10a2   :  { %v4154_v50 = vpop.eup %4153 }
0x10a3   :  { %v629_v51 = vadd.f32 1.0, %v4154_v50 }
0x10a5   :  { %4155 = vrcp.f32 %v629_v51  ;;  %v641_v56 = vand.u32 2147483648, %v629_v51  ;;  %vm635_vm1 = vweird.f32 %v629_v51  ;;  %v639_v13 = vand.u32 2147483647, %v629_v51 }
0x10a7   :  { %v642_v57 = vor.u32 1.1754944e-38, %v641_v56  ;;  %vm640_vm3 = vcmp.eq.f32.partialorder %v639_v13, 8.507059e+37 }
0x10a9   :  { %178 = vrot.lane.b32.xlu1 %v4391_v38, %s4280_s3 }
0x10ab   :  { %v4156_v52 = vpop.eup %4155 }
0x10ac   :  { %v631_v8 = vmul.f32 %v4156_v52, %v629_v51  ;;  %vm636_vm0 = vweird.f32 %v4156_v52 }
0x10ad   :  { %vm637_vm2 = vmor %vm635_vm1, %vm636_vm0 }
0x10ae   :  { %v632_v53 = vsub.f32 1.0, %v631_v8 }
0x10b0   :  { %v633_v54 = vmul.f32 %v4156_v52, %v632_v53 }
0x10b1   :  { %390 = vrot.lane.b32.xlu1 %v4421_v4, %s4280_s3 }
0x10b2   :  { %v634_v55 = vadd.f32 %v4156_v52, %v633_v54 }
0x10b4   :  { %v638_v38 = vsel %vm637_vm2, %v4156_v52, %v634_v55 }
0x10b5   :  { %v643_v58 = vsel %vm640_vm3, %v642_v57, %v638_v38 }
0x10b6   :  { %v649_v0 = vmul.f32 %v647_v63, %v643_v58 }
0x10b9   :  { %597 = vrot.lane.b32.xlu1 %v595_v40, %s4280_s3 }
0x1113   :  { %v652_v4 = vpop.permute.xlu1 %651 }
0x1114   :  { %v654_v59 = vmul.f32 %v652_v4, %v643_v58 }
0x1116   :  { %656 = vrot.lane.b32.xlu2 %v654_v59, %s4280_s3 }
0x111b   :  { %v179_v60 = vpop.permute.xlu1 %178 }
0x111c   :  { %182 = vst.msk [vmem:[#allocation2] sm:$0x3] %vm181_vm4, %v179_v60 }
0x111e   :  { %248 = vrot.lane.b32.xlu2 %v4401_v3, %s4280_s3 }
0x1123   :  { %v391_v61 = vpop.permute.xlu1 %390 }
0x1124   :  { %394 = vst.msk [vmem:[#allocation2] sm:$0xc0] %vm393_vm5, %v391_v61 }
0x1126   :  { %458 = vrot.lane.b32.xlu2 %v4434_v37, %s4280_s3  ;;  %v3908_v37 = vld [vmem:[%s5020_s5 + $0x8] sm:$0xff] }
0x1127   :  { %733 = vmatpush.bf16.msrb.mxu2 %v3908_v37  ;;  %796 = vmatpush.bf16.msra.mxu3 %v3908_v37 }
0x1128   :  { %866 = vmatpush.bf16.msrb.mxu0 %v3908_v37 }
0x112b   :  { %v598_v62 = vpop.permute.xlu1 %597  ;;  %734 = vmatpush.bf16.msrb.mxu2 %v3907_v10  ;;  %797 = vmatpush.bf16.msra.mxu3 %v3907_v10 }
0x112c   :  { %600 = vst.msk [vmem:[#allocation2 + $0x8] sm:$0x30] %vm322_vm7, %v598_v62  ;;  %867 = vmatpush.bf16.msrb.mxu0 %v3907_v10 }
0x112e   :  { %735 = vmatmul.bf16.vlgmr.msrb.gmra.mxu2 %v4278_v9  ;;  %v3905_v9 = vld [vmem:[%s5019_s4] sm:$0xff] }
0x112f   :  { %1006 = vmatpush.bf16.msra.mxu2 %v3908_v37  ;;  %1072 = vmatpush.bf16.msrb.mxu3 %v3908_v37 }
0x1130   :  { %1142 = vmatpush.bf16.msra.mxu0 %v3908_v37  ;;  %704 = vmatpush.bf16.msrb.mxu1 %v3905_v9 }
0x1133   :  { %1007 = vmatpush.bf16.msra.mxu2 %v3907_v10  ;;  %1073 = vmatpush.bf16.msrb.mxu3 %v3907_v10 }
0x1134   :  { %1143 = vmatpush.bf16.msra.mxu0 %v3907_v10  ;;  %936 = vmatpush.bf16.msra.mxu1 %v3908_v37 }
0x1138   :  { %937 = vmatpush.bf16.msra.mxu1 %v3907_v10 }
0x1170   :  { %v657_v1 = vpop.permute.xlu2 %656 }
0x1171   :  { %v659_v5 = vadd.f32 %v657_v1, %v649_v0 }
0x1173   :  { %4157 = vtanh.f32 %v659_v5 }
0x1178   :  { %v249_v6 = vpop.permute.xlu2 %248 }
0x1179   :  { %v4158_v7 = vpop.eup %4157  ;;  %252 = vst.msk [vmem:[#allocation2] sm:$0xc] %vm251_vm8, %v249_v6 }
0x117a   :  { %662 = vrot.lane.b32.xlu0 %v4158_v7, %s4279_s2 }
0x1180   :  { %v459_v3 = vpop.permute.xlu2 %458 }
0x1181   :  { %461 = vst.msk [vmem:[#allocation2 + $0x8] sm:$0x3] %vm181_vm4, %v459_v3 }
0x1182   :  { %319 = vrot.lane.b32.xlu0 %v4411_v36, %s4280_s3 }
0x118a   :  { %527 = vrot.lane.b32.xlu0 %v4444_v2, %s4280_s3 }
0x11b1   :  { %v736_v20 = vpop.f32.mrf.mxu2 }
0x11b9   :  { %v738_v21 = vpop.f32.mrf.mxu2 }
0x11ec   :  { %v663_v36 = vpop.permute.xlu0 %662 }
0x11ed   :  { %v665_v2 = vmul.f32 %v663_v36, %v643_v58 }
0x11ef   :  { %667 = vrot.lane.b32.xlu2 %v665_v2, %s4280_s3 }
0x11f4   :  { %v320_v12 = vpop.permute.xlu0 %319 }
0x11f5   :  { %323 = vst.msk [vmem:[#allocation2] sm:$0x30] %vm322_vm7, %v320_v12 }
0x11fc   :  { %v528_v14 = vpop.permute.xlu0 %527  ;;  %v671_v17 = vld [vmem:[#allocation2] sm:$0xff] }
0x11fd   :  { %530 = vst.msk [vmem:[#allocation2 + $0x8] sm:$0xc] %vm251_vm8, %v528_v14 }
0x1249   :  { %v668_v16 = vpop.permute.xlu2 %667 }
0x124a   :  { %670 = vst.msk [vmem:[#allocation2 + $0x8] sm:$0xc0] %vm393_vm5, %v668_v16 }
0x1251   :  { %v672_v18 = vld [vmem:[#allocation2 + $0x8] sm:$0xff] }
0x1252   :  { %v673_v19 = vpack.c.bf16 %v672_v18, %v671_v17 }
0x1254   :  { %3161 = vmatmul.msk.bf16.vlgmr.msrb.gmra.mxu1 %vm122_vm6, %v673_v19 }
0x1255   :  { %1212 = vmatpush.bf16.msrb.mxu1 %v3908_v37 }
0x1259   :  { %1213 = vmatpush.bf16.msrb.mxu1 %v3907_v10 }
0x12d1   :  { %v706_v23 = vpop.f32.mrf.mxu1 }
0x12d2   :  { %v4502_v11 = vadd.f32 %v4499_v22, %v706_v23 }
0x12d4   :  { %v740_v24 = vadd.f32 %v736_v20, %v4502_v11 }
0x12d6   :  { %4159 = vtanh.f32 %v740_v24  ;;  %v3170_v26 = vmul.f32 -1.442695, %v740_v24 }
0x12d8   :  { %4161 = vpow2.f32 %v3170_v26 }
0x12dc   :  { %v4160_v25 = vpop.eup %4159 }
0x12dd   :  { %763 = vrot.lane.b32.xlu0 %v4160_v25, %s4279_s2 }
0x12de   :  { %v4162_v27 = vpop.eup %4161 }
0x12df   :  { %v744_v28 = vadd.f32 1.0, %v4162_v27 }
0x12e1   :  { %4163 = vrcp.f32 %v744_v28  ;;  %v756_v34 = vand.u32 2147483648, %v744_v28  ;;  %vm750_vm10 = vweird.f32 %v744_v28  ;;  %v754_v35 = vand.u32 2147483647, %v744_v28 }
0x12e3   :  { %v757_v40 = vor.u32 1.1754944e-38, %v756_v34  ;;  %vm755_vm12 = vcmp.eq.f32.partialorder %v754_v35, 8.507059e+37 }
0x12e7   :  { %v4164_v29 = vpop.eup %4163 }
0x12e8   :  { %v746_v30 = vmul.f32 %v4164_v29, %v744_v28  ;;  %vm751_vm9 = vweird.f32 %v4164_v29 }
0x12e9   :  { %vm752_vm11 = vmor %vm750_vm10, %vm751_vm9 }
0x12ea   :  { %v747_v31 = vsub.f32 1.0, %v746_v30 }
0x12ec   :  { %v748_v32 = vmul.f32 %v4164_v29, %v747_v31 }
0x12ee   :  { %v749_v33 = vadd.f32 %v4164_v29, %v748_v32 }
0x12f0   :  { %v753_v39 = vsel %vm752_vm11, %v4164_v29, %v749_v33 }
0x12f1   :  { %v758_v42 = vsel %vm755_vm12, %v757_v40, %v753_v39 }
0x12f2   :  { %v761_v44 = vmul.f32 0.0, %v758_v42 }
0x134f   :  { %v764_v41 = vpop.permute.xlu0 %763 }
0x1350   :  { %v766_v43 = vmul.f32 %v764_v41, %v758_v42 }
0x1352   :  { %768 = vrot.lane.b32.xlu1 %v766_v43, %s4280_s3 }
0x13c4   :  { %v769_v45 = vpop.permute.xlu1 %768 }
0x13c5   :  { %v771_v46 = vadd.f32 %v769_v45, %v761_v44 }
0x13c7   :  { %4165 = vtanh.f32 %v771_v46  ;;  %v828_v7 = vrot.slane %v771_v46, 6 }
0x13cd   :  { %v4166_v47 = vpop.eup %4165 }
0x13ce   :  { %774 = vrot.lane.b32.xlu2 %v4166_v47, %s4279_s2 }
0x1428   :  { %v775_v48 = vpop.permute.xlu2 %774 }
0x1429   :  { %v4508_v49 = vmul.f32 %v775_v48, %v758_v42 }
0x142b   :  { %v783_v50 = vpack.c.bf16 %v4508_v49, %v4508_v49 }
0x142d   :  { %785 = vrot.lane.b32.xlu0 %v783_v50, %s4280_s3 }
0x149f   :  { %v786_v51 = vpop.permute.xlu0 %785 }
0x14a0   :  { %3171 = vmatmul.msk.bf16.vlgmr.msra.gmra.mxu3 %vm122_vm6, %v786_v51  ;;  %v708_v51 = vpop.f32.mrf.mxu1 }
0x1523   :  { %v799_v52 = vpop.f32.mrf.mxu3 }
0x1524   :  { %v804_v8 = vrot.slane %v799_v52, 6 }
0x1526   :  { %v806_v53 = vadd.f32 %v804_v8, %v4502_v11 }
0x1528   :  { %4167 = vtanh.f32 %v806_v53  ;;  %v3172_v56 = vmul.f32 -1.442695, %v806_v53 }
0x152a   :  { %4169 = vpow2.f32 %v3172_v56 }
0x152b   :  { %v801_v54 = vpop.f32.mrf.mxu3 }
0x152e   :  { %v4168_v55 = vpop.eup %4167 }
0x152f   :  { %832 = vrot.lane.b32.xlu1 %v4168_v55, %s4279_s2 }
0x1530   :  { %v4170_v13 = vpop.eup %4169 }
0x1531   :  { %v810_v38 = vadd.f32 1.0, %v4170_v13 }
0x1533   :  { %4171 = vrcp.f32 %v810_v38  ;;  %v822_v61 = vand.u32 2147483648, %v810_v38  ;;  %vm816_vm14 = vweird.f32 %v810_v38  ;;  %v820_v62 = vand.u32 2147483647, %v810_v38 }
0x1535   :  { %v823_v0 = vor.u32 1.1754944e-38, %v822_v61  ;;  %vm821_vm0 = vcmp.eq.f32.partialorder %v820_v62, 8.507059e+37 }
0x1539   :  { %v4172_v57 = vpop.eup %4171 }
0x153a   :  { %v812_v4 = vmul.f32 %v4172_v57, %v810_v38  ;;  %vm817_vm13 = vweird.f32 %v4172_v57 }
0x153b   :  { %vm818_vm15 = vmor %vm816_vm14, %vm817_vm13 }
0x153c   :  { %v813_v58 = vsub.f32 1.0, %v812_v4 }
0x153e   :  { %v814_v59 = vmul.f32 %v4172_v57, %v813_v58 }
0x1540   :  { %v815_v60 = vadd.f32 %v4172_v57, %v814_v59 }
0x1542   :  { %v819_v63 = vsel %vm818_vm15, %v4172_v57, %v815_v60 }
0x1543   :  { %v824_v5 = vsel %vm821_vm0, %v823_v0, %v819_v63 }
0x1544   :  { %v830_v3 = vmul.f32 %v828_v7, %v824_v5 }
0x15a1   :  { %v833_v1 = vpop.permute.xlu1 %832 }
0x15a2   :  { %v835_v6 = vmul.f32 %v833_v1, %v824_v5 }
0x15a4   :  { %837 = vrot.lane.b32.xlu2 %v835_v6, %s4280_s3 }
0x15fe   :  { %v838_v37 = vpop.permute.xlu2 %837 }
0x15ff   :  { %v840_v10 = vadd.f32 %v838_v37, %v830_v3 }
0x1601   :  { %4173 = vtanh.f32 %v840_v10  ;;  %v898_v40 = vrot.slane %v840_v10, 6 }
0x1607   :  { %v4174_v36 = vpop.eup %4173 }
0x1608   :  { %843 = vrot.lane.b32.xlu0 %v4174_v36, %s4279_s2 }
0x167a   :  { %v844_v2 = vpop.permute.xlu0 %843 }
0x167b   :  { %v4518_v12 = vmul.f32 %v844_v2, %v824_v5 }
0x167d   :  { %v852_v14 = vpack.c.bf16 %v4518_v12, %v4518_v12 }
0x167f   :  { %v854_v15 = vrot.slane %v852_v14, 1 }
0x1681   :  { %855 = vrot.lane.b32.xlu1 %v854_v15, %s4280_s3 }
0x16f3   :  { %v856_v9 = vpop.permute.xlu1 %855 }
0x16f4   :  { %3173 = vmatmul.msk.bf16.vlgmr.msrb.gmra.mxu0 %vm122_vm6, %v856_v9 }
0x1771   :  { %v869_v16 = vpop.f32.mrf.mxu0 }
0x1772   :  { %v874_v17 = vrot.slane %v869_v16, 4  ;;  %v4545_v16 = vadd.f32 %v4499_v22, %v708_v51 }
0x1774   :  { %v876_v18 = vadd.f32 %v874_v17, %v4502_v11 }
0x1776   :  { %4175 = vtanh.f32 %v876_v18  ;;  %v3174_v21 = vmul.f32 -1.442695, %v876_v18 }
0x1778   :  { %4177 = vpow2.f32 %v3174_v21 }
0x1779   :  { %v871_v19 = vpop.f32.mrf.mxu0 }
0x177c   :  { %v4176_v20 = vpop.eup %4175 }
0x177d   :  { %902 = vrot.lane.b32.xlu2 %v4176_v20, %s4279_s2 }
0x177e   :  { %v4178_v23 = vpop.eup %4177 }
0x177f   :  { %v880_v24 = vadd.f32 1.0, %v4178_v23 }
0x1781   :  { %4179 = vrcp.f32 %v880_v24  ;;  %v892_v30 = vand.u32 2147483648, %v880_v24  ;;  %vm886_vm2 = vweird.f32 %v880_v24  ;;  %v890_v31 = vand.u32 2147483647, %v880_v24 }
0x1783   :  { %v893_v33 = vor.u32 1.1754944e-38, %v892_v30  ;;  %vm891_vm9 = vcmp.eq.f32.partialorder %v890_v31, 8.507059e+37 }
0x1787   :  { %v4180_v25 = vpop.eup %4179 }
0x1788   :  { %v882_v26 = vmul.f32 %v4180_v25, %v880_v24  ;;  %vm887_vm1 = vweird.f32 %v4180_v25 }
0x1789   :  { %vm888_vm3 = vmor %vm886_vm2, %vm887_vm1 }
0x178a   :  { %v883_v27 = vsub.f32 1.0, %v882_v26 }
0x178c   :  { %v884_v28 = vmul.f32 %v4180_v25, %v883_v27 }
0x178e   :  { %v885_v29 = vadd.f32 %v4180_v25, %v884_v28 }
0x1790   :  { %v889_v32 = vsel %vm888_vm3, %v4180_v25, %v885_v29 }
0x1791   :  { %v894_v35 = vsel %vm891_vm9, %v893_v33, %v889_v32 }
0x1792   :  { %v900_v41 = vmul.f32 %v898_v40, %v894_v35 }
0x17d7   :  { %v903_v34 = vpop.permute.xlu2 %902 }
0x17d8   :  { %v905_v39 = vmul.f32 %v903_v34, %v894_v35 }
0x17da   :  { %907 = vrot.lane.b32.xlu0 %v905_v39, %s4280_s3 }
0x184c   :  { %v908_v42 = vpop.permute.xlu0 %907 }
0x184d   :  { %v910_v43 = vadd.f32 %v908_v42, %v900_v41 }
0x184f   :  { %4181 = vtanh.f32 %v910_v43  ;;  %v968_v6 = vrot.slane %v910_v43, 6 }
0x1855   :  { %v4182_v44 = vpop.eup %4181 }
0x1856   :  { %913 = vrot.lane.b32.xlu1 %v4182_v44, %s4279_s2 }
0x18c8   :  { %v914_v45 = vpop.permute.xlu1 %913 }
0x18c9   :  { %v4528_v46 = vmul.f32 %v914_v45, %v894_v35 }
0x18cb   :  { %v922_v47 = vpack.c.bf16 %v4528_v46, %v4528_v46 }
0x18cd   :  { %v924_v48 = vrot.slane %v922_v47, 2 }
0x18cf   :  { %925 = vrot.lane.b32.xlu2 %v924_v48, %s4280_s3 }
0x1929   :  { %v926_v50 = vpop.permute.xlu2 %925 }
0x192a   :  { %3175 = vmatmul.msk.bf16.vlgmr.msra.gmra.mxu1 %vm122_vm6, %v926_v50 }
0x19a7   :  { %v939_v52 = vpop.f32.mrf.mxu1 }
0x19a8   :  { %v944_v8 = vrot.slane %v939_v52, 2 }
0x19aa   :  { %v946_v53 = vadd.f32 %v944_v8, %v4502_v11 }
0x19ac   :  { %4183 = vtanh.f32 %v946_v53  ;;  %v3176_v56 = vmul.f32 -1.442695, %v946_v53 }
0x19ae   :  { %4185 = vpow2.f32 %v3176_v56 }
0x19af   :  { %v941_v54 = vpop.f32.mrf.mxu1 }
0x19b2   :  { %v4184_v55 = vpop.eup %4183 }
0x19b3   :  { %972 = vrot.lane.b32.xlu0 %v4184_v55, %s4279_s2 }
0x19b4   :  { %v4186_v13 = vpop.eup %4185 }
0x19b5   :  { %v950_v38 = vadd.f32 1.0, %v4186_v13 }
0x19b7   :  { %4187 = vrcp.f32 %v950_v38  ;;  %v962_v61 = vand.u32 2147483648, %v950_v38  ;;  %vm956_vm11 = vweird.f32 %v950_v38  ;;  %v960_v62 = vand.u32 2147483647, %v950_v38 }
0x19b9   :  { %v963_v63 = vor.u32 1.1754944e-38, %v962_v61  ;;  %vm961_vm13 = vcmp.eq.f32.partialorder %v960_v62, 8.507059e+37 }
0x19bd   :  { %v4188_v57 = vpop.eup %4187 }
0x19be   :  { %v952_v4 = vmul.f32 %v4188_v57, %v950_v38  ;;  %vm957_vm10 = vweird.f32 %v4188_v57 }
0x19bf   :  { %vm958_vm12 = vmor %vm956_vm11, %vm957_vm10 }
0x19c0   :  { %v953_v58 = vsub.f32 1.0, %v952_v4 }
0x19c2   :  { %v954_v59 = vmul.f32 %v4188_v57, %v953_v58 }
0x19c4   :  { %v955_v60 = vadd.f32 %v4188_v57, %v954_v59 }
0x19c6   :  { %v959_v11 = vsel %vm958_vm12, %v4188_v57, %v955_v60 }
0x19c7   :  { %v964_v1 = vsel %vm961_vm13, %v963_v63, %v959_v11 }
0x19c8   :  { %v970_v7 = vmul.f32 %v968_v6, %v964_v1 }
0x1a25   :  { %v973_v0 = vpop.permute.xlu0 %972 }
0x1a26   :  { %v975_v5 = vmul.f32 %v973_v0, %v964_v1 }
0x1a28   :  { %977 = vrot.lane.b32.xlu1 %v975_v5, %s4280_s3 }
0x1a9a   :  { %v978_v3 = vpop.permute.xlu1 %977 }
0x1a9b   :  { %v980_v37 = vadd.f32 %v978_v3, %v970_v7 }
0x1a9d   :  { %4189 = vtanh.f32 %v980_v37  ;;  %v1035_v39 = vrot.slane %v980_v37, 6 }
0x1aa3   :  { %v4190_v10 = vpop.eup %4189 }
0x1aa4   :  { %983 = vrot.lane.b32.xlu2 %v4190_v10, %s4279_s2 }
0x1afe   :  { %v984_v36 = vpop.permute.xlu2 %983 }
0x1aff   :  { %v4538_v2 = vmul.f32 %v984_v36, %v964_v1 }
0x1b01   :  { %v992_v14 = vpack.c.bf16 %v4538_v2, %v4538_v2 }
0x1b03   :  { %v994_v15 = vrot.slane %v992_v14, 3 }
0x1b05   :  { %995 = vrot.lane.b32.xlu0 %v994_v15, %s4280_s3 }
0x1b77   :  { %v996_v9 = vpop.permute.xlu0 %995 }
0x1b78   :  { %3177 = vmatmul.msk.bf16.vlgmr.msra.gmra.mxu2 %vm122_vm6, %v996_v9 }
0x1bfb   :  { %v1009_v17 = vpop.f32.mrf.mxu2 }
0x1bfc   :  { %v1013_v18 = vadd.f32 %v1009_v17, %v4545_v16 }
0x1bfe   :  { %4191 = vtanh.f32 %v1013_v18  ;;  %v3178_v21 = vmul.f32 -1.442695, %v1013_v18 }
0x1c00   :  { %4193 = vpow2.f32 %v3178_v21 }
0x1c03   :  { %v1011_v19 = vpop.f32.mrf.mxu2 }
0x1c04   :  { %v4192_v20 = vpop.eup %4191 }
0x1c05   :  { %1039 = vrot.lane.b32.xlu1 %v4192_v20, %s4279_s2 }
0x1c06   :  { %v4194_v23 = vpop.eup %4193 }
0x1c07   :  { %v1017_v24 = vadd.f32 1.0, %v4194_v23 }
0x1c09   :  { %4195 = vrcp.f32 %v1017_v24  ;;  %v1029_v22 = vand.u32 2147483648, %v1017_v24  ;;  %vm1023_vm15 = vweird.f32 %v1017_v24  ;;  %v1027_v30 = vand.u32 2147483647, %v1017_v24 }
0x1c0b   :  { %v1030_v32 = vor.u32 1.1754944e-38, %v1029_v22  ;;  %vm1028_vm1 = vcmp.eq.f32.partialorder %v1027_v30, 8.507059e+37 }
0x1c0f   :  { %v4196_v25 = vpop.eup %4195 }
0x1c10   :  { %v1019_v26 = vmul.f32 %v4196_v25, %v1017_v24  ;;  %vm1024_vm14 = vweird.f32 %v4196_v25 }
0x1c11   :  { %vm1025_vm0 = vmor %vm1023_vm15, %vm1024_vm14 }
0x1c12   :  { %v1020_v27 = vsub.f32 1.0, %v1019_v26 }
0x1c14   :  { %v1021_v28 = vmul.f32 %v4196_v25, %v1020_v27 }
0x1c16   :  { %v1022_v29 = vadd.f32 %v4196_v25, %v1021_v28 }
0x1c18   :  { %v1026_v31 = vsel %vm1025_vm0, %v4196_v25, %v1022_v29 }
0x1c19   :  { %v1031_v34 = vsel %vm1028_vm1, %v1030_v32, %v1026_v31 }
0x1c1a   :  { %v1037_v40 = vmul.f32 %v1035_v39, %v1031_v34 }
0x1c77   :  { %v1040_v33 = vpop.permute.xlu1 %1039 }
0x1c78   :  { %v1042_v35 = vmul.f32 %v1040_v33, %v1031_v34 }
0x1c7a   :  { %1044 = vrot.lane.b32.xlu2 %v1042_v35, %s4280_s3 }
0x1cd4   :  { %v1045_v41 = vpop.permute.xlu2 %1044 }
0x1cd5   :  { %v1047_v42 = vadd.f32 %v1045_v41, %v1037_v40 }
0x1cd7   :  { %4197 = vtanh.f32 %v1047_v42  ;;  %v1104_v1 = vrot.slane %v1047_v42, 6 }
0x1cdd   :  { %v4198_v43 = vpop.eup %4197 }
0x1cde   :  { %1050 = vrot.lane.b32.xlu0 %v4198_v43, %s4279_s2 }
0x1d50   :  { %v1051_v44 = vpop.permute.xlu0 %1050 }
0x1d51   :  { %v4551_v45 = vmul.f32 %v1051_v44, %v1031_v34 }
0x1d53   :  { %v1059_v47 = vpack.c.bf16 %v4551_v45, %v4551_v45 }
0x1d55   :  { %1061 = vrot.lane.b32.xlu1 %v1059_v47, %s4280_s3 }
0x1dc7   :  { %v1062_v48 = vpop.permute.xlu1 %1061 }
0x1dc8   :  { %3179 = vmatmul.msk.bf16.vlgmr.msrb.gmra.mxu3 %vm122_vm6, %v1062_v48 }
0x1e4b   :  { %v1075_v50 = vpop.f32.mrf.mxu3 }
0x1e4c   :  { %v1080_v51 = vrot.slane %v1075_v50, 6 }
0x1e4e   :  { %v1082_v52 = vadd.f32 %v1080_v51, %v4545_v16 }
0x1e50   :  { %4199 = vtanh.f32 %v1082_v52  ;;  %v3180_v54 = vmul.f32 -1.442695, %v1082_v52 }
0x1e52   :  { %4201 = vpow2.f32 %v3180_v54 }
0x1e53   :  { %v1077_v8 = vpop.f32.mrf.mxu3 }
0x1e56   :  { %v4200_v53 = vpop.eup %4199 }
0x1e57   :  { %1108 = vrot.lane.b32.xlu2 %v4200_v53, %s4279_s2 }
0x1e58   :  { %v4202_v55 = vpop.eup %4201 }
0x1e59   :  { %v1086_v56 = vadd.f32 1.0, %v4202_v55 }
0x1e5b   :  { %4203 = vrcp.f32 %v1086_v56  ;;  %v1098_v59 = vand.u32 2147483648, %v1086_v56  ;;  %vm1092_vm3 = vweird.f32 %v1086_v56  ;;  %v1096_v60 = vand.u32 2147483647, %v1086_v56 }
0x1e5d   :  { %v1099_v62 = vor.u32 1.1754944e-38, %v1098_v59  ;;  %vm1097_vm10 = vcmp.eq.f32.partialorder %v1096_v60, 8.507059e+37 }
0x1e61   :  { %v4204_v13 = vpop.eup %4203 }
0x1e62   :  { %v1088_v38 = vmul.f32 %v4204_v13, %v1086_v56  ;;  %vm1093_vm2 = vweird.f32 %v4204_v13 }
0x1e63   :  { %vm1094_vm9 = vmor %vm1092_vm3, %vm1093_vm2 }
0x1e64   :  { %v1089_v57 = vsub.f32 1.0, %v1088_v38 }
0x1e66   :  { %v1090_v4 = vmul.f32 %v4204_v13, %v1089_v57 }
0x1e68   :  { %v1091_v58 = vadd.f32 %v4204_v13, %v1090_v4 }
0x1e6a   :  { %v1095_v61 = vsel %vm1094_vm9, %v4204_v13, %v1091_v58 }
0x1e6b   :  { %v1100_v63 = vsel %vm1097_vm10, %v1099_v62, %v1095_v61 }
0x1e6c   :  { %v1106_v5 = vmul.f32 %v1104_v1, %v1100_v63 }
0x1eb1   :  { %v1109_v11 = vpop.permute.xlu2 %1108 }
0x1eb2   :  { %v1111_v0 = vmul.f32 %v1109_v11, %v1100_v63 }
0x1eb4   :  { %1113 = vrot.lane.b32.xlu0 %v1111_v0, %s4280_s3 }
0x1f26   :  { %v1114_v6 = vpop.permute.xlu0 %1113 }
0x1f27   :  { %v1116_v7 = vadd.f32 %v1114_v6, %v1106_v5 }
0x1f29   :  { %4205 = vtanh.f32 %v1116_v7  ;;  %v1174_v39 = vrot.slane %v1116_v7, 6 }
0x1f2f   :  { %v4206_v3 = vpop.eup %4205 }
0x1f30   :  { %1119 = vrot.lane.b32.xlu1 %v4206_v3, %s4279_s2 }
0x1fa2   :  { %v1120_v37 = vpop.permute.xlu1 %1119 }
0x1fa3   :  { %v4561_v10 = vmul.f32 %v1120_v37, %v1100_v63 }
0x1fa5   :  { %v1128_v36 = vpack.c.bf16 %v4561_v10, %v4561_v10 }
0x1fa7   :  { %v1130_v14 = vrot.slane %v1128_v36, 1 }
0x1fa9   :  { %1131 = vrot.lane.b32.xlu2 %v1130_v14, %s4280_s3 }
0x2003   :  { %v1132_v15 = vpop.permute.xlu2 %1131 }
0x2004   :  { %3181 = vmatmul.msk.bf16.vlgmr.msra.gmra.mxu0 %vm122_vm6, %v1132_v15 }
0x2081   :  { %v1145_v9 = vpop.f32.mrf.mxu0 }
0x2082   :  { %v1150_v17 = vrot.slane %v1145_v9, 4 }
0x2084   :  { %v1152_v18 = vadd.f32 %v1150_v17, %v4545_v16 }
0x2086   :  { %4207 = vtanh.f32 %v1152_v18  ;;  %v3182_v21 = vmul.f32 -1.442695, %v1152_v18  ;;  %v3219_v18 = vld [vmem:[%s5022_s7 + $0x40] sm:$0xf] }
0x2088   :  { %4209 = vpow2.f32 %v3182_v21  ;;  %v3227_v21 = vld [vmem:[%s5022_s7 + $0x48] sm:$0xf] }
0x2089   :  { %v1147_v19 = vpop.f32.mrf.mxu0 }
0x208c   :  { %v4208_v20 = vpop.eup %4207 }
0x208d   :  { %1178 = vrot.lane.b32.xlu0 %v4208_v20, %s4279_s2  ;;  %v3221_v20 = vld [vmem:[%s5022_s7 + $0x60] sm:$0xf0] }
0x208e   :  { %v4210_v23 = vpop.eup %4209 }
0x208f   :  { %v1156_v24 = vadd.f32 1.0, %v4210_v23  ;;  %v3922_v23 = vld [vmem:[%s5022_s7 + $0x64] sm:$0xf0] }
0x2091   :  { %4211 = vrcp.f32 %v1156_v24  ;;  %v1168_v22 = vand.u32 2147483648, %v1156_v24  ;;  %vm1162_vm12 = vweird.f32 %v1156_v24  ;;  %v1166_v30 = vand.u32 2147483647, %v1156_v24 }
0x2093   :  { %v1169_v32 = vor.u32 1.1754944e-38, %v1168_v22  ;;  %vm1167_vm14 = vcmp.eq.f32.partialorder %v1166_v30, 8.507059e+37  ;;  %v3913_v22 = vld [vmem:[%s5022_s7 + $0x1c] sm:$0xf0]  ;;  %v3909_v30 = vld [vmem:[%s5022_s7 + $0x4] sm:$0xf] }
0x2097   :  { %v4212_v25 = vpop.eup %4211 }
0x2098   :  { %v1158_v26 = vmul.f32 %v4212_v25, %v1156_v24  ;;  %vm1163_vm11 = vweird.f32 %v4212_v25 }
0x2099   :  { %vm1164_vm13 = vmor %vm1162_vm12, %vm1163_vm11 }
0x209a   :  { %v1159_v27 = vsub.f32 1.0, %v1158_v26  ;;  %v3918_v26 = vld [vmem:[%s5022_s7 + $0x4c] sm:$0xf] }
0x209c   :  { %v1160_v28 = vmul.f32 %v4212_v25, %v1159_v27  ;;  %v3229_v27 = vld [vmem:[%s5022_s7 + $0x68] sm:$0xf0] }
0x209e   :  { %v1161_v29 = vadd.f32 %v4212_v25, %v1160_v28  ;;  %v3187_v28 = vld [vmem:[%s5022_s7] sm:$0xf] }
0x20a0   :  { %v1165_v31 = vsel %vm1164_vm13, %v4212_v25, %v1161_v29  ;;  %v3228_v25 = vor.u32 %v3922_v23, %v3227_v21  ;;  %v3232_v29 = vor.u32 %v3918_v26, %v3229_v27  ;;  %v3957_v21 = vld [vmem:[#allocation4 + $0x100] sm:$0xf0]  ;;  %v3539_v23 = vld [vmem:[#allocation4 + $0x230] sm:$0xf]  ;;  %v3679_v27 = vld [vmem:[#allocation4 + $0x348] sm:$0xf] }
0x20a1   :  { %v1170_v34 = vsel %vm1167_vm14, %v1169_v32, %v1165_v31  ;;  %v3189_v31 = vld [vmem:[%s5022_s7 + $0x20] sm:$0xf0]  ;;  %v3188_v32 = vor.u32 %v3913_v22, %v3187_v28  ;;  %v4032_v28 = vld [vmem:[#allocation4 + $0x358] sm:$0xf0] }
0x20a2   :  { %v1176_v40 = vmul.f32 %v1174_v39, %v1170_v34  ;;  %1404 = vmatpush.bf16.msrb.mxu0 %v3228_v25  ;;  %v3910_v39 = vld [vmem:[%s5022_s7 + $0xc] sm:$0xf]  ;;  %1418 = vmatpush.bf16.msra.mxu1 %v3232_v29  ;;  %v3839_v29 = vld [vmem:[#allocation4 + $0x488] sm:$0xf]  ;;  %v4072_v22 = vld [vmem:[#allocation4 + $0x498] sm:$0xf0] }
0x20ff   :  { %v1179_v33 = vpop.permute.xlu0 %1178 }
0x2100   :  { %v1181_v35 = vmul.f32 %v1179_v33, %v1170_v34  ;;  %v3192_v33 = vor.u32 %v3909_v30, %v3189_v31 }
0x2102   :  { %1183 = vrot.lane.b32.xlu1 %v1181_v35, %s4280_s3  ;;  %v3914_v35 = vld [vmem:[%s5022_s7 + $0x24] sm:$0xf0] }
0x2174   :  { %v1184_v41 = vpop.permute.xlu1 %1183 }
0x2175   :  { %v1186_v42 = vadd.f32 %v1184_v41, %v1176_v40  ;;  %v3197_v41 = vld [vmem:[%s5022_s7 + $0x28] sm:$0xf0] }
0x2177   :  { %4213 = vtanh.f32 %v1186_v42  ;;  %v1244_v6 = vrot.slane %v1186_v42, 6  ;;  %v3200_v42 = vor.u32 %v3910_v39, %v3197_v41  ;;  %v3680_v39 = vor.u32 %v4032_v28, %v3679_v27  ;;  %v3659_v41 = vld [vmem:[#allocation4 + $0x320] sm:$0xf]  ;;  %v4080_v27 = vld [vmem:[#allocation4 + $0x4dc] sm:$0xf] }
0x2179   :  { %1419 = vmatpush.bf16.msra.mxu1 %v3200_v42  ;;  %v4027_v42 = vld [vmem:[#allocation4 + $0x330] sm:$0xf0] }
0x217d   :  { %v4214_v43 = vpop.eup %4213 }
0x217e   :  { %1189 = vrot.lane.b32.xlu2 %v4214_v43, %s4279_s2  ;;  %v3235_v43 = vld [vmem:[%s5022_s7 + $0x50] sm:$0xf] }
0x21d8   :  { %v1190_v44 = vpop.permute.xlu2 %1189 }
0x21d9   :  { %v1192_v47 = vmul.f32 %v1190_v44, %v1170_v34  ;;  %v3195_v34 = vld [vmem:[%s5022_s7 + $0x8] sm:$0xf]  ;;  %v3923_v44 = vld [vmem:[%s5022_s7 + $0x6c] sm:$0xf0] }
0x21da   :  { %v3196_v40 = vor.u32 %v3914_v35, %v3195_v34  ;;  %v3519_v34 = vld [vmem:[#allocation4 + $0x208] sm:$0xf]  ;;  %v3992_v35 = vld [vmem:[#allocation4 + $0x218] sm:$0xf0] }
0x21db   :  { %v1198_v48 = vpack.c.bf16 %v1192_v47, %v1192_v47 }
0x21dc   :  { %1405 = vmatpush.bf16.msrb.mxu0 %v3196_v40  ;;  %v3840_v40 = vor.u32 %v4072_v22, %v3839_v29  ;;  %v3881_v29 = vld [vmem:[#allocation4 + $0x4ec] sm:$0xf0]  ;;  %v3279_v22 = vld [vmem:[#allocation4 + $0x28] sm:$0xf] }
0x21dd   :  { %v1200_v50 = vrot.slane %v1198_v48, 2  ;;  %v3236_v48 = vor.u32 %v3923_v44, %v3235_v43  ;;  %v3819_v43 = vld [vmem:[#allocation4 + $0x460] sm:$0xf]  ;;  %v4067_v44 = vld [vmem:[#allocation4 + $0x470] sm:$0xf0] }
0x21df   :  { %1201 = vrot.lane.b32.xlu0 %v1200_v50, %s4280_s3  ;;  %v3237_v50 = vld [vmem:[%s5022_s7 + $0x70] sm:$0xf0] }
0x2251   :  { %v1202_v51 = vpop.permute.xlu0 %1201 }
0x2252   :  { %3183 = vmatmul.msk.bf16.vlgmr.msrb.gmra.mxu1 %vm122_vm6, %v1202_v51  ;;  %v3243_v51 = vld [vmem:[%s5022_s7 + $0x58] sm:$0xf] }
0x22cf   :  { %v1215_v52 = vpop.f32.mrf.mxu1 }
0x22d0   :  { %v1220_v8 = vrot.slane %v1215_v52, 2  ;;  %v3924_v52 = vld [vmem:[%s5022_s7 + $0x74] sm:$0xf0] }
0x22d2   :  { %v1222_v53 = vadd.f32 %v1220_v8, %v4545_v16 }
0x22d4   :  { %4215 = vtanh.f32 %v1222_v53  ;;  %v3184_v56 = vmul.f32 -1.442695, %v1222_v53  ;;  %v3244_v53 = vor.u32 %v3924_v52, %v3243_v51  ;;  %v3947_v51 = vld [vmem:[#allocation4 + $0xb0] sm:$0xf0]  ;;  %v3499_v52 = vld [vmem:[#allocation4 + $0x1e0] sm:$0xf] }
0x22d6   :  { %4217 = vpow2.f32 %v3184_v56  ;;  %v3203_v56 = vld [vmem:[%s5022_s7 + $0x10] sm:$0xf]  ;;  %1460 = vmatpush.bf16.msra.mxu0 %v3244_v53  ;;  %v3660_v53 = vor.u32 %v4027_v42, %v3659_v41  ;;  %v4075_v41 = vld [vmem:[#allocation4 + $0x4b4] sm:$0xf] }
0x22d7   :  { %v1217_v54 = vpop.f32.mrf.mxu1 }
0x22d8   :  { %v3920_v54 = vld [vmem:[%s5022_s7 + $0x5c] sm:$0xf] }
0x22da   :  { %v4216_v55 = vpop.eup %4215 }
0x22db   :  { %1248 = vrot.lane.b32.xlu1 %v4216_v55, %s4279_s2  ;;  %v3245_v55 = vld [vmem:[%s5022_s7 + $0x78] sm:$0xf0] }
0x22dc   :  { %v4218_v13 = vpop.eup %4217 }
0x22dd   :  { %v1226_v38 = vadd.f32 1.0, %v4218_v13  ;;  %v3248_v13 = vor.u32 %v3920_v54, %v3245_v55  ;;  %v3820_v54 = vor.u32 %v4067_v44, %v3819_v43  ;;  %v3639_v55 = vld [vmem:[#allocation4 + $0x2f8] sm:$0xf]  ;;  %v3861_v43 = vld [vmem:[#allocation4 + $0x4c4] sm:$0xf0] }
0x22de   :  { %v3259_v44 = vld [vmem:[#allocation4] sm:$0xf] }
0x22df   :  { %4219 = vrcp.f32 %v1226_v38  ;;  %v1238_v60 = vand.u32 2147483648, %v1226_v38  ;;  %vm1232_vm0 = vweird.f32 %v1226_v38  ;;  %v1236_v61 = vand.u32 2147483647, %v1226_v38  ;;  %1474 = vmatpush.bf16.msrb.mxu1 %v3248_v13  ;;  %v3799_v13 = vld [vmem:[#allocation4 + $0x438] sm:$0xf] }
0x22e1   :  { %v1239_v62 = vor.u32 1.1754944e-38, %v1238_v60  ;;  %vm1237_vm2 = vcmp.eq.f32.partialorder %v1236_v61, 8.507059e+37  ;;  %v3916_v60 = vld [vmem:[%s5022_s7 + $0x34] sm:$0xf0]  ;;  %v3912_v61 = vld [vmem:[%s5022_s7 + $0x1c] sm:$0xf] }
0x22e3   :  { %779 = vrot.lane.b32.xlu1 %v4508_v49, %s4280_s3 }
0x22e5   :  { %v4220_v57 = vpop.eup %4219 }
0x22e6   :  { %v1228_v16 = vmul.f32 %v4220_v57, %v1226_v38  ;;  %vm1233_vm15 = vweird.f32 %v4220_v57  ;;  %v3915_v38 = vld [vmem:[%s5022_s7 + $0x2c] sm:$0xf0] }
0x22e7   :  { %vm1234_vm1 = vmor %vm1232_vm0, %vm1233_vm15 }
0x22e8   :  { %v1229_v4 = vsub.f32 1.0, %v1228_v16  ;;  %v3205_v16 = vld [vmem:[%s5022_s7 + $0x30] sm:$0xf0] }
0x22ea   :  { %v1230_v58 = vmul.f32 %v4220_v57, %v1229_v4  ;;  %v3204_v4 = vor.u32 %v3915_v38, %v3203_v56  ;;  %v4022_v56 = vld [vmem:[#allocation4 + $0x308] sm:$0xf0] }
0x22eb   :  { %988 = vrot.lane.b32.xlu1 %v4538_v2, %s4280_s3  ;;  %v4062_v38 = vld [vmem:[#allocation4 + $0x448] sm:$0xf0] }
0x22ec   :  { %v1231_v59 = vadd.f32 %v4220_v57, %v1230_v58 }
0x22ee   :  { %v1235_v49 = vsel %vm1234_vm1, %v4220_v57, %v1231_v59  ;;  %v3911_v57 = vld [vmem:[%s5022_s7 + $0x14] sm:$0xf]  ;;  %v3211_v59 = vld [vmem:[%s5022_s7 + $0x18] sm:$0xf] }
0x22ef   :  { %v1240_v11 = vsel %vm1237_vm2, %v1239_v62, %v1235_v49  ;;  %v3208_v58 = vor.u32 %v3911_v57, %v3205_v16  ;;  %v3212_v49 = vor.u32 %v3916_v60, %v3211_v59  ;;  %v3213_v62 = vld [vmem:[%s5022_s7 + $0x38] sm:$0xf0]  ;;  %v3479_v59 = vld [vmem:[#allocation4 + $0x1b8] sm:$0xf]  ;;  %v3982_v60 = vld [vmem:[#allocation4 + $0x1c8] sm:$0xf0] }
0x22f0   :  { %v1246_v7 = vmul.f32 %v1244_v6, %v1240_v11  ;;  %v3399_v6 = vld [vmem:[#allocation4 + $0x118] sm:$0xf] }
0x22f1   :  { %1461 = vmatpush.bf16.msra.mxu0 %v3212_v49  ;;  %v3800_v49 = vor.u32 %v4062_v38, %v3799_v13 }
0x22f3   :  { %1194 = vrot.lane.b32.xlu1 %v1192_v47, %s4280_s3  ;;  %v3919_v47 = vld [vmem:[%s5022_s7 + $0x54] sm:$0xf] }
0x22f4   :  { %v3240_v8 = vor.u32 %v3919_v47, %v3237_v50  ;;  %v3339_v50 = vld [vmem:[#allocation4 + $0xa0] sm:$0xf] }
0x22f5   :  { %v3340_v57 = vor.u32 %v3947_v51, %v3339_v50  ;;  %v3419_v51 = vld [vmem:[#allocation4 + $0x140] sm:$0xf] }
0x234d   :  { %v1249_v2 = vpop.permute.xlu1 %1248 }
0x234e   :  { %v1251_v63 = vmul.f32 %v1249_v2, %v1240_v11  ;;  %v3216_v2 = vor.u32 %v3912_v61, %v3213_v62  ;;  %v3640_v61 = vor.u32 %v4022_v56, %v3639_v55  ;;  %v3619_v62 = vld [vmem:[#allocation4 + $0x2d0] sm:$0xf]  ;;  %v4000_v55 = vld [vmem:[#allocation4 + $0x25c] sm:$0xf] }
0x234f   :  { %v3561_v56 = vld [vmem:[#allocation4 + $0x26c] sm:$0xf0] }
0x2350   :  { %1253 = vrot.lane.b32.xlu2 %v1251_v63, %s4280_s3  ;;  %1475 = vmatpush.bf16.msrb.mxu1 %v3216_v2  ;;  %v3719_v63 = vld [vmem:[#allocation4 + $0x398] sm:$0xf]  ;;  %v4017_v2 = vld [vmem:[#allocation4 + $0x2e0] sm:$0xf0]  ;;  %v3564_v38 = vor.u32 %v4000_v55, %v3561_v56 }
0x2351   :  { %v4005_v55 = vld [vmem:[#allocation4 + $0x284] sm:$0xf]  ;;  %v3581_v56 = vld [vmem:[#allocation4 + $0x294] sm:$0xf0] }
0x2355   :  { %v780_v0 = vpop.permute.xlu1 %779 }
0x2356   :  { %782 = vst.msk [vmem:[#allocation3] sm:$0x3] %vm181_vm4, %v780_v0  ;;  %v4042_v0 = vld [vmem:[#allocation4 + $0x3a8] sm:$0xf0] }
0x2358   :  { %848 = vrot.lane.b32.xlu2 %v4518_v12, %s4280_s3 }
0x235d   :  { %v989_v1 = vpop.permute.xlu1 %988 }
0x235e   :  { %991 = vst.msk [vmem:[#allocation3 + $0x4] sm:$0xc0] %vm393_vm5, %v989_v1  ;;  %v3879_v1 = vld [vmem:[#allocation4 + $0x4d8] sm:$0xf] }
0x2360   :  { %1055 = vrot.lane.b32.xlu2 %v4551_v45, %s4280_s3 }
0x2365   :  { %v1195_v5 = vpop.permute.xlu1 %1194 }
0x2366   :  { %1197 = vst.msk [vmem:[#allocation3 + $0x2] sm:$0x30] %vm322_vm7, %v1195_v5  ;;  %v4082_v5 = vld [vmem:[#allocation4 + $0x4e8] sm:$0xf0] }
0x23aa   :  { %v1254_v3 = vpop.permute.xlu2 %1253 }
0x23ab   :  { %v1256_v37 = vadd.f32 %v1254_v3, %v1246_v7  ;;  %v3962_v7 = vld [vmem:[#allocation4 + $0x128] sm:$0xf0]  ;;  %v3559_v3 = vld [vmem:[#allocation4 + $0x258] sm:$0xf] }
0x23ad   :  { %4221 = vtanh.f32 %v1256_v37  ;;  %v4002_v37 = vld [vmem:[#allocation4 + $0x268] sm:$0xf0] }
0x23b2   :  { %v849_v36 = vpop.permute.xlu2 %848 }
0x23b3   :  { %v4222_v14 = vpop.eup %4221  ;;  %851 = vst.msk [vmem:[#allocation3 + $0x6] sm:$0xc] %vm251_vm8, %v849_v36 }
0x23b4   :  { %1259 = vrot.lane.b32.xlu0 %v4222_v14, %s4279_s2 }
0x23ba   :  { %v1056_v12 = vpop.permute.xlu2 %1055 }
0x23bb   :  { %1058 = vst.msk [vmem:[#allocation3 + $0x4] sm:$0x3] %vm181_vm4, %v1056_v12  ;;  %vm3106_vm4 = vcmask 9216  }
0x23bc   :  { %918 = vrot.lane.b32.xlu0 %v4528_v46, %s4280_s3  ;;  %v3921_v46 = vld [vmem:[%s5022_s7 + $0x5c] sm:$0xf0] }
0x23bd   :  { %v3220_v19 = vor.u32 %v3921_v46, %v3219_v18  ;;  %v3859_v18 = vld [vmem:[#allocation4 + $0x4b0] sm:$0xf]  ;;  %v4077_v46 = vld [vmem:[#allocation4 + $0x4c0] sm:$0xf0] }
0x23be   :  { %v3860_v26 = vor.u32 %v4077_v46, %v3859_v18  ;;  %v3579_v46 = vld [vmem:[#allocation4 + $0x280] sm:$0xf] }
0x23bf   :  { %1376 = vmatpush.bf16.msrb.mxu2 %v3220_v19  ;;  %v3560_v19 = vor.u32 %v4002_v37, %v3559_v3  ;;  %v4012_v3 = vld [vmem:[#allocation4 + $0x2b8] sm:$0xf0]  ;;  %v3759_v37 = vld [vmem:[#allocation4 + $0x3e8] sm:$0xf] }
0x23c3   :  { %1377 = vmatpush.bf16.msrb.mxu2 %v3188_v32  ;;  %v3359_v32 = vld [vmem:[#allocation4 + $0xc8] sm:$0xf] }
0x23c4   :  { %1124 = vrot.lane.b32.xlu0 %v4561_v10, %s4280_s3  ;;  %v3917_v10 = vld [vmem:[%s5022_s7 + $0x44] sm:$0xf]  ;;  %s4281_s7 = smov [#allocation7]  }
0x23c5   :  { %v3224_v24 = vor.u32 %v3917_v10, %v3221_v20  ;;  %v3400_v10 = vor.u32 %v3962_v7, %v3399_v6  ;;  %v3379_v20 = vld [vmem:[#allocation4 + $0xf0] sm:$0xf]  ;;  %v3599_v7 = vld [vmem:[#allocation4 + $0x2a8] sm:$0xf]  ;;  %s3113_s17 = sshll.u32 %s4281_s7, 4  ;;  %s3114_s17 = int_to_ptr.vmem [resolvable:$true] %s3113_s17 }
0x23c6   :  { %v3380_v30 = vor.u32 %v3957_v21, %v3379_v20  ;;  %v3739_v21 = vld [vmem:[#allocation4 + $0x3c0] sm:$0xf] }
0x23c7   :  { %1390 = vmatpush.bf16.msra.mxu3 %v3224_v24  ;;  %1432 = vmatpush.bf16.msra.mxu2 %v3236_v48  ;;  %v3997_v24 = vld [vmem:[#allocation4 + $0x240] sm:$0xf0]  ;;  %v3520_v48 = vor.u32 %v3992_v35, %v3519_v34  ;;  %v3972_v34 = vld [vmem:[#allocation4 + $0x178] sm:$0xf0] }
0x23c8   :  { %v3540_v31 = vor.u32 %v3997_v24, %v3539_v23  ;;  %v4047_v23 = vld [vmem:[#allocation4 + $0x3d0] sm:$0xf0] }
0x23c9   :  { %v3740_v24 = vor.u32 %v4047_v23, %v3739_v21  ;;  %v3341_v21 = vld [vmem:[#allocation4 + $0xb4] sm:$0xf0]  ;;  %v3985_v23 = vld [vmem:[#allocation4 + $0x1e4] sm:$0xf] }
0x23cb   :  { %1391 = vmatpush.bf16.msra.mxu3 %v3192_v33  ;;  %1433 = vmatpush.bf16.msra.mxu2 %v3204_v4  ;;  %v3952_v33 = vld [vmem:[#allocation4 + $0xd8] sm:$0xf0]  ;;  %v3319_v4 = vld [vmem:[#allocation4 + $0x78] sm:$0xf] }
0x23cc   :  { %v3360_v47 = vor.u32 %v3952_v33, %v3359_v32  ;;  %v3439_v33 = vld [vmem:[#allocation4 + $0x168] sm:$0xf] }
0x23cd   :  { %v3440_v35 = vor.u32 %v3972_v34, %v3439_v33  ;;  %v3321_v33 = vld [vmem:[#allocation4 + $0x8c] sm:$0xf0]  ;;  %v3980_v34 = vld [vmem:[#allocation4 + $0x1bc] sm:$0xf] }
0x23cf   :  { %1446 = vmatpush.bf16.msrb.mxu3 %v3240_v8  ;;  %v3987_v8 = vld [vmem:[#allocation4 + $0x1f0] sm:$0xf0] }
0x23d0   :  { %v3500_v16 = vor.u32 %v3987_v8, %v3499_v52  ;;  %v3967_v52 = vld [vmem:[#allocation4 + $0x150] sm:$0xf0]  ;;  %v3960_v8 = vld [vmem:[#allocation4 + $0x11c] sm:$0xf] }
0x23d3   :  { %1447 = vmatpush.bf16.msrb.mxu3 %v3208_v58  ;;  %v3942_v58 = vld [vmem:[#allocation4 + $0x88] sm:$0xf0] }
0x2426   :  { %v1260_v45 = vpop.permute.xlu0 %1259 }
0x2427   :  { %v1262_v15 = vmul.f32 %v1260_v45, %v1240_v11  ;;  %v3720_v45 = vor.u32 %v4042_v0, %v3719_v63  ;;  %v4057_v63 = vld [vmem:[#allocation4 + $0x420] sm:$0xf0]  ;;  %v3320_v0 = vor.u32 %v3942_v58, %v3319_v4  ;;  %v4070_v4 = vld [vmem:[#allocation4 + $0x48c] sm:$0xf] }
0x2429   :  { %1264 = vrot.lane.b32.xlu2 %v1262_v15, %s4280_s3  ;;  %v3880_v15 = vor.u32 %v4082_v5, %v3879_v1  ;;  %v3480_v1 = vor.u32 %v3982_v60, %v3479_v59  ;;  %v3620_v5 = vor.u32 %v4017_v2, %v3619_v62  ;;  %v3841_v59 = vld [vmem:[#allocation4 + $0x49c] sm:$0xf0]  ;;  %v3995_v62 = vld [vmem:[#allocation4 + $0x234] sm:$0xf] }
0x242a   :  { %v3844_v60 = vor.u32 %v4070_v4, %v3841_v59  ;;  %v3741_v4 = vld [vmem:[#allocation4 + $0x3d4] sm:$0xf0]  ;;  %v3930_v59 = vld [vmem:[#allocation4 + $0x2c] sm:$0xf] }
0x242e   :  { %v919_v9 = vpop.permute.xlu0 %918 }
0x242f   :  { %921 = vst.msk [vmem:[#allocation3 - $0x2] sm:$0x30] %vm322_vm7, %v919_v9  ;;  %v3699_v9 = vld [vmem:[#allocation4 + $0x370] sm:$0xf] }
0x2436   :  { %v1125_v17 = vpop.permute.xlu0 %1124  ;;  %v1268_v36 = vld [vmem:[#allocation3] sm:$0xff] }
0x2437   :  { %1127 = vst.msk [vmem:[#allocation3 + $0xa] sm:$0xc] %vm251_vm8, %v1125_v17  ;;  %v4037_v17 = vld [vmem:[#allocation4 + $0x380] sm:$0xf0] }
0x2438   :  { %v3700_v25 = vor.u32 %v4037_v17, %v3699_v9  ;;  %v3937_v9 = vld [vmem:[#allocation4 + $0x60] sm:$0xf0]  ;;  %v3459_v17 = vld [vmem:[#allocation4 + $0x190] sm:$0xf] }
0x2483   :  { %v1265_v11 = vpop.permute.xlu2 %1264 }
0x2484   :  { %1267 = vst.msk [vmem:[#allocation3 + $0x8] sm:$0xc0] %vm393_vm5, %v1265_v11  ;;  %v3779_v11 = vld [vmem:[#allocation4 + $0x410] sm:$0xf] }
0x2485   :  { %v3780_v6 = vor.u32 %v4057_v63, %v3779_v11  ;;  %v3541_v11 = vld [vmem:[#allocation4 + $0x244] sm:$0xf0] }
0x2486   :  { %v3544_v63 = vor.u32 %v3995_v62, %v3541_v11  ;;  %v3441_v62 = vld [vmem:[#allocation4 + $0x17c] sm:$0xf0] }
0x248b   :  { %v1269_v14 = vld [vmem:[#allocation3 + $0x8] sm:$0xff] }
0x248c   :  { %v4695_v12 = vpack.c.bf16 %v1269_v14, %v1268_v36  ;;  %v3600_v36 = vor.u32 %v4012_v3, %v3599_v7  ;;  %v4052_v14 = vld [vmem:[#allocation4 + $0x3f8] sm:$0xf0]  ;;  %v3821_v7 = vld [vmem:[#allocation4 + $0x474] sm:$0xf0] }
0x248e   :  { %3249 = vmatmul.msk.bf16.vlgmr.msrb.gmra.mxu2 %vm122_vm6, %v4695_v12  ;;  %3250 = vmatmul.msk.bf16.vlgmr.msra.gmra.mxu3 %vm122_vm6, %v4695_v12 }
0x248f   :  { %3251 = vmatmul.msk.bf16.vlgmr.msrb.gmra.mxu0 %vm122_vm6, %v4695_v12  ;;  %3252 = vmatmul.msk.bf16.vlgmr.msra.gmra.mxu1 %vm122_vm6, %v4695_v12 }
0x2490   :  { %2578 = vmatpush.bf16.msrb.mxu0 %v3720_v45  ;;  %2591 = vmatpush.bf16.msra.mxu1 %v3880_v15  ;;  %v3760_v45 = vor.u32 %v4052_v14, %v3759_v37  ;;  %v3299_v15 = vld [vmem:[#allocation4 + $0x50] sm:$0xf]  ;;  %v3950_v37 = vld [vmem:[#allocation4 + $0xcc] sm:$0xf] }
0x2491   :  { %2552 = vmatpush.bf16.msrb.mxu2 %v3400_v10  ;;  %2565 = vmatpush.bf16.msra.mxu3 %v3560_v19  ;;  %v3300_v18 = vor.u32 %v3937_v9, %v3299_v15  ;;  %v4007_v10 = vld [vmem:[#allocation4 + $0x290] sm:$0xf0]  ;;  %v3990_v14 = vld [vmem:[#allocation4 + $0x20c] sm:$0xf]  ;;  %v3521_v15 = vld [vmem:[#allocation4 + $0x21c] sm:$0xf0] }
0x2492   :  { %v3580_v20 = vor.u32 %v4007_v10, %v3579_v46  ;;  %v3524_v9 = vor.u32 %v3990_v14, %v3521_v15  ;;  %v3801_v10 = vld [vmem:[#allocation4 + $0x44c] sm:$0xf0] }
0x2494   :  { %2579 = vmatpush.bf16.msrb.mxu0 %v3700_v25  ;;  %2592 = vmatpush.bf16.msra.mxu1 %v3860_v26  ;;  %v4040_v25 = vld [vmem:[#allocation4 + $0x39c] sm:$0xf]  ;;  %v3721_v26 = vld [vmem:[#allocation4 + $0x3ac] sm:$0xf0] }
0x2495   :  { %2553 = vmatpush.bf16.msrb.mxu2 %v3380_v30  ;;  %2566 = vmatpush.bf16.msra.mxu3 %v3540_v31  ;;  %v3724_v28 = vor.u32 %v4040_v25, %v3721_v26  ;;  %v3932_v30 = vld [vmem:[#allocation4 + $0x38] sm:$0xf0]  ;;  %v3884_v31 = vor.u32 %v4080_v27, %v3881_v29  ;;  %v3501_v25 = vld [vmem:[#allocation4 + $0x1f4] sm:$0xf0]  ;;  %v4015_v27 = vld [vmem:[#allocation4 + $0x2d4] sm:$0xf] }
0x2496   :  { %v3280_v32 = vor.u32 %v3932_v30, %v3279_v22  ;;  %v3504_v26 = vor.u32 %v3985_v23, %v3501_v25  ;;  %v4055_v29 = vld [vmem:[#allocation4 + $0x414] sm:$0xf]  ;;  %v3781_v30 = vld [vmem:[#allocation4 + $0x424] sm:$0xf0] }
0x2498   :  { %2580 = vmatpush.bf16.msrb.mxu0 %v3680_v39  ;;  %2593 = vmatpush.bf16.msra.mxu1 %v3840_v40  ;;  %v4035_v39 = vld [vmem:[#allocation4 + $0x374] sm:$0xf]  ;;  %v3701_v40 = vld [vmem:[#allocation4 + $0x384] sm:$0xf0] }
0x2499   :  { %2554 = vmatpush.bf16.msrb.mxu2 %v3360_v47  ;;  %2567 = vmatpush.bf16.msra.mxu3 %v3520_v48  ;;  %v3704_v42 = vor.u32 %v4035_v39, %v3701_v40  ;;  %v3927_v47 = vld [vmem:[#allocation4 + $0x10] sm:$0xf0]  ;;  %v3864_v48 = vor.u32 %v4075_v41, %v3861_v43  ;;  %v3481_v39 = vld [vmem:[#allocation4 + $0x1cc] sm:$0xf0]  ;;  %v4010_v41 = vld [vmem:[#allocation4 + $0x2ac] sm:$0xf] }
0x249a   :  { %v3260_v50 = vor.u32 %v3927_v47, %v3259_v44  ;;  %v3484_v40 = vor.u32 %v3980_v34, %v3481_v39  ;;  %v4050_v44 = vld [vmem:[#allocation4 + $0x3ec] sm:$0xf]  ;;  %v3761_v47 = vld [vmem:[#allocation4 + $0x3fc] sm:$0xf0]  ;;  %v4083_v39 = vld [vmem:[#allocation4 + $0x4f0] sm:$0xf0] }
0x249c   :  { %2581 = vmatpush.bf16.msrb.mxu0 %v3660_v53  ;;  %2594 = vmatpush.bf16.msra.mxu1 %v3820_v54  ;;  %v3420_v53 = vor.u32 %v3967_v52, %v3419_v51  ;;  %v3401_v54 = vld [vmem:[#allocation4 + $0x12c] sm:$0xf0]  ;;  %v3301_v51 = vld [vmem:[#allocation4 + $0x64] sm:$0xf0]  ;;  %v3975_v52 = vld [vmem:[#allocation4 + $0x194] sm:$0xf] }
0x249d   :  { %2555 = vmatpush.bf16.msrb.mxu2 %v3340_v57  ;;  %2568 = vmatpush.bf16.msra.mxu3 %v3500_v16  ;;  %v3404_v13 = vor.u32 %v3960_v8, %v3401_v54  ;;  %v4030_v57 = vld [vmem:[#allocation4 + $0x34c] sm:$0xf]  ;;  %v3681_v16 = vld [vmem:[#allocation4 + $0x35c] sm:$0xf0] }
0x249e   :  { %3253 = vmatmul.msk.bf16.vlgmr.msra.gmra.mxu2 %vm122_vm6, %v4695_v12  ;;  %3254 = vmatmul.msk.bf16.vlgmr.msrb.gmra.mxu3 %vm122_vm6, %v4695_v12  ;;  %v3684_v58 = vor.u32 %v4030_v57, %v3681_v16  ;;  %v3584_v16 = vor.u32 %v4005_v55, %v3581_v56  ;;  %v4038_v55 = vld [vmem:[#allocation4 + $0x388] sm:$0xf0]  ;;  %v3867_v56 = vld [vmem:[#allocation4 + $0x4b8] sm:$0xf] }
0x249f   :  { %3255 = vmatmul.msk.bf16.vlgmr.msra.gmra.mxu0 %vm122_vm6, %v4695_v12  ;;  %3256 = vmatmul.msk.bf16.vlgmr.msrb.gmra.mxu1 %vm122_vm6, %v4695_v12  ;;  %v3977_v12 = vld [vmem:[#allocation4 + $0x1a0] sm:$0xf0]  ;;  %vm2818_vm6 = vcmask 64512  }
0x24a0   :  { %2582 = vmatpush.bf16.msrb.mxu0 %v3640_v61  ;;  %2595 = vmatpush.bf16.msra.mxu1 %v3800_v49  ;;  %v3460_v19 = vor.u32 %v3977_v12, %v3459_v17  ;;  %v3955_v61 = vld [vmem:[#allocation4 + $0xf4] sm:$0xf]  ;;  %v3381_v49 = vld [vmem:[#allocation4 + $0x104] sm:$0xf0]  ;;  %v4020_v17 = vld [vmem:[#allocation4 + $0x2fc] sm:$0xf] }
0x24a1   :  { %2556 = vmatpush.bf16.msrb.mxu2 %v3320_v0  ;;  %2569 = vmatpush.bf16.msra.mxu3 %v3480_v1  ;;  %v3384_v2 = vor.u32 %v3955_v61, %v3381_v49  ;;  %v4025_v0 = vld [vmem:[#allocation4 + $0x324] sm:$0xf]  ;;  %v3661_v1 = vld [vmem:[#allocation4 + $0x334] sm:$0xf0]  ;;  %v4060_v12 = vld [vmem:[#allocation4 + $0x43c] sm:$0xf] }
0x24a2   :  { %v3970_v61 = vld [vmem:[#allocation4 + $0x16c] sm:$0xf] }
0x24a4   :  { %2583 = vmatpush.bf16.msrb.mxu0 %v3620_v5  ;;  %2596 = vmatpush.bf16.msra.mxu1 %v3780_v6  ;;  %v4065_v5 = vld [vmem:[#allocation4 + $0x464] sm:$0xf]  ;;  %v3664_v6 = vor.u32 %v4025_v0, %v3661_v1  ;;  %v3261_v1 = vld [vmem:[#allocation4 + $0x14] sm:$0xf0] }
0x24a5   :  { %2557 = vmatpush.bf16.msrb.mxu2 %v3300_v18  ;;  %2570 = vmatpush.bf16.msra.mxu3 %v3460_v19  ;;  %v3824_v3 = vor.u32 %v4065_v5, %v3821_v7  ;;  %v3641_v18 = vld [vmem:[#allocation4 + $0x30c] sm:$0xf0]  ;;  %v3804_v19 = vor.u32 %v4060_v12, %v3801_v10  ;;  %v3925_v0 = vld [vmem:[#allocation4 + $0x4] sm:$0xf]  ;;  %v3421_v7 = vld [vmem:[#allocation4 + $0x154] sm:$0xf0] }
0x24a6   :  { %v3644_v46 = vor.u32 %v4020_v17, %v3641_v18  ;;  %v3264_v5 = vor.u32 %v3925_v0, %v3261_v1  ;;  %v1494_v12 = vld [vmem:[%s5023_s8] sm:$0xf]  ;;  %v4073_v0 = vld [vmem:[#allocation4 + $0x4a0] sm:$0xf0] }
0x24a7   :  { %v1498_v10 = vperm.slane %v1494_v12, 2  ;;  %v1497_v34 = vperm.slane %v1494_v12, 1 }
0x24a8   :  { %2584 = vmatpush.bf16.msrb.mxu0 %v3600_v36  ;;  %2597 = vmatpush.bf16.msra.mxu1 %v3760_v45  ;;  %v3361_v36 = vld [vmem:[#allocation4 + $0xdc] sm:$0xf0] }
0x24a9   :  { %2558 = vmatpush.bf16.msrb.mxu2 %v3280_v32  ;;  %2571 = vmatpush.bf16.msra.mxu3 %v3440_v35  ;;  %v3364_v45 = vor.u32 %v3950_v37, %v3361_v36  ;;  %v3940_v32 = vld [vmem:[#allocation4 + $0x7c] sm:$0xf] }
0x24aa   :  { %v3324_v35 = vor.u32 %v3940_v32, %v3321_v33  ;;  %v1496_v32 = vperm.slane %v1494_v12, 0 }
0x24ac   :  { %2585 = vmatpush.bf16.msrb.mxu0 %v3580_v20  ;;  %2598 = vmatpush.bf16.msra.mxu1 %v3740_v24  ;;  %v3945_v20 = vld [vmem:[#allocation4 + $0xa4] sm:$0xf] }
0x24ad   :  { %2559 = vmatpush.bf16.msrb.mxu2 %v3260_v50  ;;  %2572 = vmatpush.bf16.msra.mxu3 %v3420_v53  ;;  %v3344_v24 = vor.u32 %v3945_v20, %v3341_v21  ;;  %v3935_v50 = vld [vmem:[#allocation4 + $0x54] sm:$0xf]  ;;  %v3461_v53 = vld [vmem:[#allocation4 + $0x1a4] sm:$0xf0]  ;;  %v1499_v20 = vperm.slane %v1494_v12, 3 }
0x24ae   :  { %v3304_v8 = vor.u32 %v3935_v50, %v3301_v51  ;;  %v3464_v54 = vor.u32 %v3975_v52, %v3461_v53  ;;  %v4068_v12 = vld [vmem:[#allocation4 + $0x478] sm:$0xf0] }
0x24b0   :  { %2630 = vmatpush.bf16.msra.mxu0 %v3724_v28  ;;  %2643 = vmatpush.bf16.msrb.mxu1 %v3884_v31  ;;  %v3621_v28 = vld [vmem:[#allocation4 + $0x2e4] sm:$0xf0]  ;;  %v3784_v31 = vor.u32 %v4055_v29, %v3781_v30  ;;  %v4043_v29 = vld [vmem:[#allocation4 + $0x3b0] sm:$0xf0] }
0x24b1   :  { %2604 = vmatpush.bf16.msra.mxu2 %v3404_v13  ;;  %2617 = vmatpush.bf16.msrb.mxu3 %v3564_v38  ;;  %v3624_v22 = vor.u32 %v4015_v27, %v3621_v28  ;;  %v4045_v13 = vld [vmem:[#allocation4 + $0x3c4] sm:$0xf]  ;;  %v3727_v28 = vld [vmem:[#allocation4 + $0x3a0] sm:$0xf] }
0x24b2   :  { %v3728_v51 = vor.u32 %v4043_v29, %v3727_v28  ;;  %v3807_v28 = vld [vmem:[#allocation4 + $0x440] sm:$0xf]  ;;  %v4063_v29 = vld [vmem:[#allocation4 + $0x450] sm:$0xf0] }
0x24b4   :  { %2631 = vmatpush.bf16.msra.mxu0 %v3704_v42  ;;  %2644 = vmatpush.bf16.msrb.mxu1 %v3864_v48  ;;  %v3601_v42 = vld [vmem:[#allocation4 + $0x2bc] sm:$0xf0]  ;;  %v3764_v48 = vor.u32 %v4050_v44, %v3761_v47 }
0x24b5   :  { %2605 = vmatpush.bf16.msra.mxu2 %v3384_v2  ;;  %2618 = vmatpush.bf16.msrb.mxu3 %v3544_v63  ;;  %v3604_v43 = vor.u32 %v4010_v41, %v3601_v42  ;;  %v3444_v2 = vor.u32 %v3970_v61, %v3441_v62 }
0x24b8   :  { %2632 = vmatpush.bf16.msra.mxu0 %v3684_v58  ;;  %2645 = vmatpush.bf16.msrb.mxu1 %v3844_v60  ;;  %v3744_v58 = vor.u32 %v4045_v13, %v3741_v4  ;;  %v3281_v60 = vld [vmem:[#allocation4 + $0x3c] sm:$0xf0]  ;;  %v4078_v13 = vld [vmem:[#allocation4 + $0x4c8] sm:$0xf0]  ;;  %v3963_v4 = vld [vmem:[#allocation4 + $0x130] sm:$0xf0] }
0x24b9   :  { %2606 = vmatpush.bf16.msra.mxu2 %v3364_v45  ;;  %2619 = vmatpush.bf16.msrb.mxu3 %v3524_v9  ;;  %v3284_v49 = vor.u32 %v3930_v59, %v3281_v60  ;;  %v4003_v59 = vld [vmem:[#allocation4 + $0x270] sm:$0xf0]  ;;  %v3868_v62 = vor.u32 %v4078_v13, %v3867_v56  ;;  %v3607_v56 = vld [vmem:[#allocation4 + $0x2b0] sm:$0xf]  ;;  %v4013_v13 = vld [vmem:[#allocation4 + $0x2c0] sm:$0xf0] }
0x24bc   :  { %2633 = vmatpush.bf16.msra.mxu0 %v3664_v6  ;;  %2646 = vmatpush.bf16.msrb.mxu1 %v3824_v3  ;;  %v3965_v6 = vld [vmem:[#allocation4 + $0x144] sm:$0xf] }
0x24bd   :  { %2607 = vmatpush.bf16.msra.mxu2 %v3344_v24  ;;  %2620 = vmatpush.bf16.msrb.mxu3 %v3504_v26  ;;  %v3424_v36 = vor.u32 %v3965_v6, %v3421_v7 }
0x24c0   :  { %2634 = vmatpush.bf16.msra.mxu0 %v3644_v46  ;;  %2647 = vmatpush.bf16.msrb.mxu1 %v3804_v19 }
0x24c1   :  { %2608 = vmatpush.bf16.msra.mxu2 %v3324_v35  ;;  %2621 = vmatpush.bf16.msrb.mxu3 %v3484_v40  ;;  %v3887_v35 = vld [vmem:[#allocation4 + $0x4e0] sm:$0xf] }
0x24c2   :  { %v3888_v52 = vor.u32 %v4083_v39, %v3887_v35  ;;  %v3808_v39 = vor.u32 %v4063_v29, %v3807_v28  ;;  %v3427_v28 = vld [vmem:[#allocation4 + $0x148] sm:$0xf]  ;;  %v3968_v29 = vld [vmem:[#allocation4 + $0x158] sm:$0xf0] }
0x24c4   :  { %2635 = vmatpush.bf16.msra.mxu0 %v3624_v22  ;;  %2648 = vmatpush.bf16.msrb.mxu1 %v3784_v31 }
0x24c5   :  { %2609 = vmatpush.bf16.msra.mxu2 %v3304_v8  ;;  %2622 = vmatpush.bf16.msrb.mxu3 %v3464_v54  ;;  %v3707_v8 = vld [vmem:[#allocation4 + $0x378] sm:$0xf] }
0x24c8   :  { %2636 = vmatpush.bf16.msra.mxu0 %v3604_v43  ;;  %2649 = vmatpush.bf16.msrb.mxu1 %v3764_v48 }
0x24c9   :  { %2610 = vmatpush.bf16.msra.mxu2 %v3284_v49  ;;  %2623 = vmatpush.bf16.msrb.mxu3 %v3444_v2  ;;  %v3708_v49 = vor.u32 %v4038_v55, %v3707_v8  ;;  %v3687_v2 = vld [vmem:[#allocation4 + $0x350] sm:$0xf] }
0x24cc   :  { %2637 = vmatpush.bf16.msra.mxu0 %v3584_v16  ;;  %2650 = vmatpush.bf16.msrb.mxu1 %v3744_v58  ;;  %v3407_v16 = vld [vmem:[#allocation4 + $0x120] sm:$0xf] }
0x24cd   :  { %2611 = vmatpush.bf16.msra.mxu2 %v3264_v5  ;;  %2624 = vmatpush.bf16.msrb.mxu3 %v3424_v36  ;;  %v3567_v58 = vld [vmem:[#allocation4 + $0x260] sm:$0xf]  ;;  %v3408_v6 = vor.u32 %v3963_v4, %v3407_v16  ;;  %v3547_v36 = vld [vmem:[#allocation4 + $0x238] sm:$0xf] }
0x24ce   :  { %v3568_v7 = vor.u32 %v4003_v59, %v3567_v58  ;;  %v3307_v58 = vld [vmem:[#allocation4 + $0x58] sm:$0xf]  ;;  %v3938_v59 = vld [vmem:[#allocation4 + $0x68] sm:$0xf0] }
0x250c   :  { %v1407_v38 = vpop.f32.mrf.mxu0  ;;  %v1421_v57 = vpop.f32.mrf.mxu1 }
0x2511   :  { %v1379_v11 = vpop.f32.mrf.mxu2  ;;  %v1393_v63 = vpop.f32.mrf.mxu3 }
0x2514   :  { %v1409_v3 = vpop.f32.mrf.mxu0  ;;  %v1423_v37 = vpop.f32.mrf.mxu1 }
0x2519   :  { %v1381_v14 = vpop.f32.mrf.mxu2  ;;  %v1395_v45 = vpop.f32.mrf.mxu3 }
0x251c   :  { %v1463_v15 = vpop.f32.mrf.mxu0  ;;  %v1477_v9 = vpop.f32.mrf.mxu1 }
0x251d   :  { %v1484_v21 = vmax.f32 %v1407_v38, %v1463_v15  ;;  %v1485_v23 = vmax.f32 %v1421_v57, %v1477_v9  ;;  %v3667_v9 = vld [vmem:[#allocation4 + $0x328] sm:$0xf] }
0x2521   :  { %v1435_v17 = vpop.f32.mrf.mxu2  ;;  %v1449_v18 = vpop.f32.mrf.mxu3 }
0x2522   :  { %v1482_v40 = vmax.f32 %v1379_v11, %v1435_v17  ;;  %v1483_v41 = vmax.f32 %v1393_v63, %v1449_v18  ;;  %v4033_v11 = vld [vmem:[#allocation4 + $0x360] sm:$0xf0]  ;;  %v3847_v63 = vld [vmem:[#allocation4 + $0x490] sm:$0xf]  ;;  %v4028_v17 = vld [vmem:[#allocation4 + $0x338] sm:$0xf0] }
0x2523   :  { %v3848_v15 = vor.u32 %v4073_v0, %v3847_v63  ;;  %v3827_v18 = vld [vmem:[#allocation4 + $0x468] sm:$0xf]  ;;  %v4048_v0 = vld [vmem:[#allocation4 + $0x3d8] sm:$0xf0] }
0x2524   :  { %v1465_v46 = vpop.f32.mrf.mxu0  ;;  %v1479_v19 = vpop.f32.mrf.mxu1  ;;  %v3747_v63 = vld [vmem:[#allocation4 + $0x3c8] sm:$0xf] }
0x2525   :  { %v1488_v24 = vmax.f32 %v1409_v3, %v1465_v46  ;;  %v1489_v25 = vmax.f32 %v1423_v37, %v1479_v19  ;;  %v3387_v3 = vld [vmem:[#allocation4 + $0xf8] sm:$0xf]  ;;  %v3958_v37 = vld [vmem:[#allocation4 + $0x108] sm:$0xf0]  ;;  %v3367_v19 = vld [vmem:[#allocation4 + $0xd0] sm:$0xf] }
0x2526   :  { %v3388_v46 = vor.u32 %v3958_v37, %v3387_v3  ;;  %v3308_v3 = vor.u32 %v3938_v59, %v3307_v58  ;;  %v3951_v58 = vld [vmem:[#allocation4 + $0xd4] sm:$0xf]  ;;  %v3369_v59 = vld [vmem:[#allocation4 + $0xe4] sm:$0xf0] }
0x2527   :  { %v1492_v26 = vmax.f32 %v1484_v21, %v1488_v24  ;;  %v1493_v27 = vmax.f32 %v1485_v23, %v1489_v25  ;;  %v3527_v21 = vld [vmem:[#allocation4 + $0x210] sm:$0xf]  ;;  %v3993_v23 = vld [vmem:[#allocation4 + $0x220] sm:$0xf0]  ;;  %v3668_v24 = vor.u32 %v4028_v17, %v3667_v9  ;;  %v3828_v25 = vor.u32 %v4068_v12, %v3827_v18 }
0x2528   :  { %v3447_v9 = vld [vmem:[#allocation4 + $0x170] sm:$0xf]  ;;  %v3973_v17 = vld [vmem:[#allocation4 + $0x180] sm:$0xf0]  ;;  %v3748_v12 = vor.u32 %v4048_v0, %v3747_v63  ;;  %v3809_v0 = vld [vmem:[#allocation4 + $0x454] sm:$0xf0] }
0x2529   :  { %v1506_v22 = vadd.f32 %v1498_v10, %v1492_v26  ;;  %v1507_v30 = vadd.f32 %v1499_v20, %v1493_v27  ;;  %v1437_v31 = vpop.f32.mrf.mxu2  ;;  %v1451_v33 = vpop.f32.mrf.mxu3  ;;  %v3953_v20 = vld [vmem:[#allocation4 + $0xe0] sm:$0xf0]  ;;  %v3647_v26 = vld [vmem:[#allocation4 + $0x300] sm:$0xf]  ;;  %v4023_v27 = vld [vmem:[#allocation4 + $0x310] sm:$0xf0] }
0x252a   :  { %v1486_v42 = vmax.f32 %v1381_v14, %v1437_v31  ;;  %v1487_v43 = vmax.f32 %v1395_v45, %v1451_v33  ;;  %v3998_v14 = vld [vmem:[#allocation4 + $0x248] sm:$0xf0]  ;;  %v3688_v45 = vor.u32 %v4033_v11, %v3687_v2  ;;  %v3347_v31 = vld [vmem:[#allocation4 + $0xa8] sm:$0xf]  ;;  %v3648_v35 = vor.u32 %v4023_v27, %v3647_v26  ;;  %v4008_v11 = vld [vmem:[#allocation4 + $0x298] sm:$0xf0] }
0x252b   :  { %v1510_v44 = vmax.f32 %v1506_v22, 0.0  ;;  %v1511_v47 = vmax.f32 %v1507_v30, 0.0  ;;  %v3548_v10 = vor.u32 %v3998_v14, %v3547_v36  ;;  %v3368_v22 = vor.u32 %v3953_v20, %v3367_v19  ;;  %v3507_v33 = vld [vmem:[#allocation4 + $0x1e8] sm:$0xf]  ;;  %v4081_v36 = vld [vmem:[#allocation4 + $0x4e4] sm:$0xf] }
0x252c   :  { %v1490_v48 = vmax.f32 %v1482_v40, %v1486_v42  ;;  %v1491_v50 = vmax.f32 %v1483_v41, %v1487_v43  ;;  %v3528_v30 = vor.u32 %v3993_v23, %v3527_v21  ;;  %v3627_v40 = vld [vmem:[#allocation4 + $0x2d8] sm:$0xf]  ;;  %v4018_v41 = vld [vmem:[#allocation4 + $0x2e8] sm:$0xf0]  ;;  %v3587_v2 = vld [vmem:[#allocation4 + $0x288] sm:$0xf] }
0x252d   :  { %v4716_v53 = vpack.c.bf16 %v1510_v44, %v1510_v44  ;;  %v4718_v54 = vpack.c.bf16 %v1511_v47, %v1511_v47  ;;  %v3787_v42 = vld [vmem:[#allocation4 + $0x418] sm:$0xf]  ;;  %v4058_v43 = vld [vmem:[#allocation4 + $0x428] sm:$0xf0]  ;;  %v3628_v8 = vor.u32 %v4018_v41, %v3627_v40  ;;  %v3588_v18 = vor.u32 %v4008_v11, %v3587_v2  ;;  %v4036_v19 = vld [vmem:[#allocation4 + $0x37c] sm:$0xf] }
0x252e   :  { %v1504_v38 = vadd.f32 %v1496_v32, %v1490_v48  ;;  %v1505_v57 = vadd.f32 %v1497_v34, %v1491_v50  ;;  %v3948_v32 = vld [vmem:[#allocation4 + $0xb8] sm:$0xf0]  ;;  %v3327_v48 = vld [vmem:[#allocation4 + $0x80] sm:$0xf]  ;;  %v3943_v50 = vld [vmem:[#allocation4 + $0x90] sm:$0xf0]  ;;  %v3788_v55 = vor.u32 %v4058_v43, %v3787_v42  ;;  %v3428_v40 = vor.u32 %v3968_v29, %v3427_v28 }
0x252f   :  { %2586 = vmatmul.bf16.vlgmr.msrb.gmra.mxu0 %v4716_v53  ;;  %2599 = vmatmul.bf16.vlgmr.msra.gmra.mxu1 %v4718_v54  ;;  %v3988_v34 = vld [vmem:[#allocation4 + $0x1f8] sm:$0xf0]  ;;  %v3348_v44 = vor.u32 %v3948_v32, %v3347_v31  ;;  %v3328_v16 = vor.u32 %v3943_v50, %v3327_v48  ;;  %v3889_v14 = vld [vmem:[#allocation4 + $0x4f4] sm:$0xf0]  ;;  %v3709_v20 = vld [vmem:[#allocation4 + $0x38c] sm:$0xf0] }
0x2530   :  { %v1508_v60 = vmax.f32 %v1504_v38, 0.0  ;;  %v1509_v61 = vmax.f32 %v1505_v57, 0.0  ;;  %2682 = vmatpush.bf16.msrb.mxu0 %v3728_v51  ;;  %2695 = vmatpush.bf16.msra.mxu1 %v3888_v52  ;;  %v3508_v47 = vor.u32 %v3988_v34, %v3507_v33  ;;  %v3487_v51 = vld [vmem:[#allocation4 + $0x1c0] sm:$0xf]  ;;  %v3983_v52 = vld [vmem:[#allocation4 + $0x1d0] sm:$0xf0]  ;;  %v3712_v33 = vor.u32 %v4036_v19, %v3709_v20 }
0x2531   :  { %v3767_v38 = vld [vmem:[#allocation4 + $0x3f0] sm:$0xf]  ;;  %v4053_v57 = vld [vmem:[#allocation4 + $0x400] sm:$0xf0]  ;;  %v3488_v4 = vor.u32 %v3983_v52, %v3487_v51  ;;  %v4076_v21 = vld [vmem:[#allocation4 + $0x4bc] sm:$0xf] }
0x2532   :  { %v4722_v1 = vpack.c.bf16 %v1508_v60, %v1508_v60  ;;  %v4724_v5 = vpack.c.bf16 %v1509_v61, %v1509_v61  ;;  %v3467_v60 = vld [vmem:[#allocation4 + $0x198] sm:$0xf]  ;;  %v3978_v61 = vld [vmem:[#allocation4 + $0x1a8] sm:$0xf0]  ;;  %v3267_v26 = vld [vmem:[#allocation4 + $0x8] sm:$0xf] }
0x2533   :  { %v3468_v37 = vor.u32 %v3978_v61, %v3467_v60  ;;  %v3928_v27 = vld [vmem:[#allocation4 + $0x18] sm:$0xf0]  ;;  %v4001_v31 = vld [vmem:[#allocation4 + $0x264] sm:$0xf]  ;;  %v3569_v32 = vld [vmem:[#allocation4 + $0x274] sm:$0xf0] }
0x2534   :  { %2683 = vmatpush.bf16.msrb.mxu0 %v3708_v49  ;;  %2696 = vmatpush.bf16.msra.mxu1 %v3868_v62  ;;  %v3608_v49 = vor.u32 %v4013_v13, %v3607_v56  ;;  %v3768_v62 = vor.u32 %v4053_v57, %v3767_v38  ;;  %v3689_v41 = vld [vmem:[#allocation4 + $0x364] sm:$0xf0]  ;;  %v4071_v42 = vld [vmem:[#allocation4 + $0x494] sm:$0xf]  ;;  %v3956_v48 = vld [vmem:[#allocation4 + $0xfc] sm:$0xf] }
0x2535   :  { %2560 = vmatmul.bf16.vlgmr.msrb.gmra.mxu2 %v4722_v1  ;;  %2573 = vmatmul.bf16.vlgmr.msra.gmra.mxu3 %v4724_v5  ;;  %v3849_v43 = vld [vmem:[#allocation4 + $0x4a4] sm:$0xf0]  ;;  %v3389_v50 = vld [vmem:[#allocation4 + $0x10c] sm:$0xf0]  ;;  %v3996_v51 = vld [vmem:[#allocation4 + $0x23c] sm:$0xf] }
0x2536   :  { %2656 = vmatpush.bf16.msrb.mxu2 %v3408_v6  ;;  %2669 = vmatpush.bf16.msra.mxu3 %v3568_v7  ;;  %v4041_v6 = vld [vmem:[#allocation4 + $0x3a4] sm:$0xf]  ;;  %v3729_v7 = vld [vmem:[#allocation4 + $0x3b4] sm:$0xf0]  ;;  %v3549_v52 = vld [vmem:[#allocation4 + $0x24c] sm:$0xf0] }
0x2537   :  { %v4026_v56 = vld [vmem:[#allocation4 + $0x32c] sm:$0xf]  ;;  %v3669_v13 = vld [vmem:[#allocation4 + $0x33c] sm:$0xf0]  ;;  %v3991_v60 = vld [vmem:[#allocation4 + $0x214] sm:$0xf] }
0x2538   :  { %2684 = vmatpush.bf16.msrb.mxu0 %v3688_v45  ;;  %2697 = vmatpush.bf16.msra.mxu1 %v3848_v15  ;;  %v3287_v45 = vld [vmem:[#allocation4 + $0x30] sm:$0xf]  ;;  %v3933_v15 = vld [vmem:[#allocation4 + $0x40] sm:$0xf0]  ;;  %v4066_v38 = vld [vmem:[#allocation4 + $0x46c] sm:$0xf] }
0x2539   :  { %v3288_v23 = vor.u32 %v3933_v15, %v3287_v45  ;;  %v3829_v57 = vld [vmem:[#allocation4 + $0x47c] sm:$0xf0]  ;;  %v3529_v61 = vld [vmem:[#allocation4 + $0x224] sm:$0xf0]  ;;  %v4021_v2 = vld [vmem:[#allocation4 + $0x304] sm:$0xf] }
0x253a   :  { %2657 = vmatpush.bf16.msrb.mxu2 %v3388_v46  ;;  %2670 = vmatpush.bf16.msra.mxu3 %v3548_v10  ;;  %v3732_v46 = vor.u32 %v4041_v6, %v3729_v7  ;;  %v3892_v10 = vor.u32 %v4081_v36, %v3889_v14  ;;  %v3649_v11 = vld [vmem:[#allocation4 + $0x314] sm:$0xf0]  ;;  %v4061_v63 = vld [vmem:[#allocation4 + $0x444] sm:$0xf]  ;;  %v3372_v6 = vor.u32 %v3951_v58, %v3369_v59  ;;  %v3986_v36 = vld [vmem:[#allocation4 + $0x1ec] sm:$0xf] }
0x253b   :  { %v3532_v7 = vor.u32 %v3991_v60, %v3529_v61  ;;  %v3509_v14 = vld [vmem:[#allocation4 + $0x1fc] sm:$0xf0]  ;;  %v3652_v45 = vor.u32 %v4021_v2, %v3649_v11  ;;  %v3812_v15 = vor.u32 %v4061_v63, %v3809_v0  ;;  %v3941_v19 = vld [vmem:[#allocation4 + $0x84] sm:$0xf]  ;;  %v3329_v20 = vld [vmem:[#allocation4 + $0x94] sm:$0xf0] }
0x253c   :  { %2685 = vmatpush.bf16.msrb.mxu0 %v3668_v24  ;;  %2698 = vmatpush.bf16.msra.mxu1 %v3828_v25  ;;  %v3448_v24 = vor.u32 %v3973_v17, %v3447_v9  ;;  %v3869_v25 = vld [vmem:[#allocation4 + $0x4cc] sm:$0xf0]  ;;  %v4016_v9 = vld [vmem:[#allocation4 + $0x2dc] sm:$0xf]  ;;  %v4051_v28 = vld [vmem:[#allocation4 + $0x3f4] sm:$0xf] }
0x253d   :  { %v3872_v34 = vor.u32 %v4076_v21, %v3869_v25  ;;  %v3629_v17 = vld [vmem:[#allocation4 + $0x2ec] sm:$0xf0]  ;;  %v3981_v21 = vld [vmem:[#allocation4 + $0x1c4] sm:$0xf]  ;;  %v3769_v29 = vld [vmem:[#allocation4 + $0x404] sm:$0xf0] }
0x253e   :  { %2658 = vmatpush.bf16.msrb.mxu2 %v3368_v22  ;;  %2671 = vmatpush.bf16.msra.mxu3 %v3528_v30  ;;  %v3961_v22 = vld [vmem:[#allocation4 + $0x124] sm:$0xf]  ;;  %v3409_v30 = vld [vmem:[#allocation4 + $0x134] sm:$0xf0]  ;;  %v3715_v58 = vld [vmem:[#allocation4 + $0x380] sm:$0xf] }
0x253f   :  { %2638 = vmatmul.bf16.vlgmr.msra.gmra.mxu0 %v4716_v53  ;;  %2651 = vmatmul.bf16.vlgmr.msrb.gmra.mxu1 %v4718_v54  ;;  %v4039_v59 = vld [vmem:[#allocation4 + $0x390] sm:$0xf0]  ;;  %v3875_v60 = vld [vmem:[#allocation4 + $0x4c0] sm:$0xf]  ;;  %v3926_v2 = vld [vmem:[#allocation4 + $0xc] sm:$0xf] }
0x2540   :  { %2686 = vmatpush.bf16.msrb.mxu0 %v3648_v35  ;;  %2699 = vmatpush.bf16.msra.mxu1 %v3808_v39  ;;  %v4031_v35 = vld [vmem:[#allocation4 + $0x354] sm:$0xf]  ;;  %v3268_v39 = vor.u32 %v3928_v27, %v3267_v26  ;;  %v3609_v27 = vld [vmem:[#allocation4 + $0x2c4] sm:$0xf0]  ;;  %v3269_v11 = vld [vmem:[#allocation4 + $0x1c] sm:$0xf0] }
0x2541   :  { %v4011_v26 = vld [vmem:[#allocation4 + $0x2b4] sm:$0xf]  ;;  %v3966_v63 = vld [vmem:[#allocation4 + $0x14c] sm:$0xf]  ;;  %v3429_v0 = vld [vmem:[#allocation4 + $0x15c] sm:$0xf0] }
0x2542   :  { %2659 = vmatpush.bf16.msrb.mxu2 %v3348_v44  ;;  %2672 = vmatpush.bf16.msra.mxu3 %v3508_v47  ;;  %v3412_v44 = vor.u32 %v3961_v22, %v3409_v30  ;;  %v3572_v47 = vor.u32 %v4001_v31, %v3569_v32  ;;  %v3332_v22 = vor.u32 %v3941_v19, %v3329_v20  ;;  %v3936_v31 = vld [vmem:[#allocation4 + $0x5c] sm:$0xf]  ;;  %v3309_v32 = vld [vmem:[#allocation4 + $0x6c] sm:$0xf0]  ;;  %v3395_v19 = vld [vmem:[#allocation4 + $0x100] sm:$0xf] }
0x2543   :  { %v3959_v20 = vld [vmem:[#allocation4 + $0x110] sm:$0xf0] }
0x2544   :  { %2687 = vmatpush.bf16.msrb.mxu0 %v3628_v8  ;;  %2700 = vmatpush.bf16.msra.mxu1 %v3788_v55  ;;  %v3692_v8 = vor.u32 %v4031_v35, %v3689_v41  ;;  %v3852_v55 = vor.u32 %v4071_v42, %v3849_v43  ;;  %v3612_v35 = vor.u32 %v4011_v26, %v3609_v27  ;;  %v3589_v41 = vld [vmem:[#allocation4 + $0x29c] sm:$0xf0]  ;;  %v4046_v42 = vld [vmem:[#allocation4 + $0x3cc] sm:$0xf]  ;;  %v3675_v26 = vld [vmem:[#allocation4 + $0x330] sm:$0xf] }
0x2545   :  { %2612 = vmatmul.bf16.vlgmr.msra.gmra.mxu2 %v4722_v1  ;;  %2625 = vmatmul.bf16.vlgmr.msrb.gmra.mxu3 %v4724_v5  ;;  %v3749_v43 = vld [vmem:[#allocation4 + $0x3dc] sm:$0xf0]  ;;  %v4029_v27 = vld [vmem:[#allocation4 + $0x340] sm:$0xf0] }
0x2546   :  { %2660 = vmatpush.bf16.msrb.mxu2 %v3328_v16  ;;  %2673 = vmatpush.bf16.msra.mxu3 %v3488_v4  ;;  %v3392_v16 = vor.u32 %v3956_v48, %v3389_v50  ;;  %v3552_v4 = vor.u32 %v3996_v51, %v3549_v52  ;;  %v3312_v48 = vor.u32 %v3936_v31, %v3309_v32  ;;  %v3895_v51 = vld [vmem:[#allocation4 + $0x4e8] sm:$0xf]  ;;  %v4084_v52 = vld [vmem:[#allocation4 + $0x4f8] sm:$0xf0]  ;;  %v3375_v31 = vld [vmem:[#allocation4 + $0xd8] sm:$0xf] }
0x2547   :  { %v3954_v32 = vld [vmem:[#allocation4 + $0xe8] sm:$0xf0] }
0x2548   :  { %2688 = vmatpush.bf16.msrb.mxu0 %v3608_v49  ;;  %2701 = vmatpush.bf16.msra.mxu1 %v3768_v62  ;;  %v3672_v49 = vor.u32 %v4026_v56, %v3669_v13  ;;  %v3832_v62 = vor.u32 %v4066_v38, %v3829_v57  ;;  %v3971_v56 = vld [vmem:[#allocation4 + $0x174] sm:$0xf]  ;;  %v3449_v13 = vld [vmem:[#allocation4 + $0x184] sm:$0xf0]  ;;  %v3752_v57 = vor.u32 %v4046_v42, %v3749_v43 }
0x2549   :  { %v3376_v42 = vor.u32 %v3954_v32, %v3375_v31 }
0x254a   :  { %2661 = vmatpush.bf16.msrb.mxu2 %v3308_v3  ;;  %2674 = vmatpush.bf16.msra.mxu3 %v3468_v37  ;;  %v3946_v3 = vld [vmem:[#allocation4 + $0xac] sm:$0xf]  ;;  %v3349_v37 = vld [vmem:[#allocation4 + $0xbc] sm:$0xf0] }
0x254c   :  { %2689 = vmatpush.bf16.msrb.mxu0 %v3588_v18  ;;  %2702 = vmatpush.bf16.msra.mxu1 %v3748_v12  ;;  %v4056_v18 = vld [vmem:[#allocation4 + $0x41c] sm:$0xf]  ;;  %v3789_v12 = vld [vmem:[#allocation4 + $0x42c] sm:$0xf0] }
0x254d   :  { %v3792_v25 = vor.u32 %v4056_v18, %v3789_v12 }
0x254e   :  { %2662 = vmatpush.bf16.msrb.mxu2 %v3288_v23  ;;  %2675 = vmatpush.bf16.msra.mxu3 %v3448_v24  ;;  %v3489_v23 = vld [vmem:[#allocation4 + $0x1d4] sm:$0xf0]  ;;  %v3632_v24 = vor.u32 %v4016_v9, %v3629_v17  ;;  %v4034_v17 = vld [vmem:[#allocation4 + $0x368] sm:$0xf0] }
0x254f   :  { %2690 = vmatmul.bf16.vlgmr.msrb.gmra.mxu0 %v4716_v53  ;;  %2703 = vmatmul.bf16.vlgmr.msra.gmra.mxu1 %v4718_v54  ;;  %v3492_v30 = vor.u32 %v3981_v21, %v3489_v23  ;;  %v3695_v9 = vld [vmem:[#allocation4 + $0x358] sm:$0xf]  ;;  %v3555_v21 = vld [vmem:[#allocation4 + $0x240] sm:$0xf]  ;;  %v3999_v23 = vld [vmem:[#allocation4 + $0x250] sm:$0xf0] }
0x2550   :  { %2734 = vmatpush.bf16.msra.mxu0 %v3732_v46  ;;  %2747 = vmatpush.bf16.msrb.mxu1 %v3892_v10  ;;  %v3352_v46 = vor.u32 %v3946_v3, %v3349_v37  ;;  %v3512_v10 = vor.u32 %v3986_v36, %v3509_v14  ;;  %v3575_v3 = vld [vmem:[#allocation4 + $0x268] sm:$0xf]  ;;  %v4004_v37 = vld [vmem:[#allocation4 + $0x278] sm:$0xf0]  ;;  %v3716_v36 = vor.u32 %v4039_v59, %v3715_v58 }
0x2551   :  { %v3576_v12 = vor.u32 %v4004_v37, %v3575_v3  ;;  %v3335_v58 = vld [vmem:[#allocation4 + $0x88] sm:$0xf]  ;;  %v3944_v59 = vld [vmem:[#allocation4 + $0x98] sm:$0xf0]  ;;  %v3315_v3 = vld [vmem:[#allocation4 + $0x60] sm:$0xf] }
0x2552   :  { %2663 = vmatpush.bf16.msrb.mxu2 %v3268_v39  ;;  %2676 = vmatpush.bf16.msra.mxu3 %v3428_v40  ;;  %v3772_v39 = vor.u32 %v4051_v28, %v3769_v29  ;;  %v4006_v40 = vld [vmem:[#allocation4 + $0x28c] sm:$0xf]  ;;  %v3396_v28 = vor.u32 %v3959_v20, %v3395_v19  ;;  %v3556_v29 = vor.u32 %v3999_v23, %v3555_v21  ;;  %v3939_v37 = vld [vmem:[#allocation4 + $0x70] sm:$0xf0]  ;;  %v3295_v19 = vld [vmem:[#allocation4 + $0x38] sm:$0xf] }
0x2553   :  { %v3592_v38 = vor.u32 %v4006_v40, %v3589_v41  ;;  %v3655_v40 = vld [vmem:[#allocation4 + $0x308] sm:$0xf]  ;;  %v4024_v41 = vld [vmem:[#allocation4 + $0x318] sm:$0xf0]  ;;  %v3934_v20 = vld [vmem:[#allocation4 + $0x48] sm:$0xf0] }
0x2554   :  { %2735 = vmatpush.bf16.msra.mxu0 %v3712_v33  ;;  %2748 = vmatpush.bf16.msrb.mxu1 %v3872_v34  ;;  %v3976_v33 = vld [vmem:[#allocation4 + $0x19c] sm:$0xf]  ;;  %v3469_v34 = vld [vmem:[#allocation4 + $0x1ac] sm:$0xf0]  ;;  %v3455_v21 = vld [vmem:[#allocation4 + $0x178] sm:$0xf] }
0x2555   :  { %2664 = vmatmul.bf16.vlgmr.msrb.gmra.mxu2 %v4722_v1  ;;  %2677 = vmatmul.bf16.vlgmr.msra.gmra.mxu3 %v4724_v5  ;;  %v3472_v50 = vor.u32 %v3976_v33, %v3469_v34  ;;  %v3535_v33 = vld [vmem:[#allocation4 + $0x218] sm:$0xf]  ;;  %v3994_v34 = vld [vmem:[#allocation4 + $0x228] sm:$0xf0] }
0x2556   :  { %2708 = vmatpush.bf16.msra.mxu2 %v3412_v44  ;;  %2721 = vmatpush.bf16.msrb.mxu3 %v3572_v47  ;;  %v3735_v44 = vld [vmem:[#allocation4 + $0x3a8] sm:$0xf]  ;;  %v4044_v47 = vld [vmem:[#allocation4 + $0x3b8] sm:$0xf0]  ;;  %v3536_v43 = vor.u32 %v3994_v34, %v3535_v33  ;;  %v3974_v23 = vld [vmem:[#allocation4 + $0x188] sm:$0xf0] }
0x2558   :  { %2736 = vmatpush.bf16.msra.mxu0 %v3692_v8  ;;  %2749 = vmatpush.bf16.msrb.mxu1 %v3852_v55  ;;  %v3931_v8 = vld [vmem:[#allocation4 + $0x34] sm:$0xf]  ;;  %v3289_v55 = vld [vmem:[#allocation4 + $0x44] sm:$0xf0] }
0x2559   :  { %v3292_v61 = vor.u32 %v3931_v8, %v3289_v55  ;;  %v3656_v8 = vor.u32 %v4024_v41, %v3655_v40 }
0x255a   :  { %2709 = vmatpush.bf16.msra.mxu2 %v3392_v16  ;;  %2722 = vmatpush.bf16.msrb.mxu3 %v3552_v4  ;;  %v3736_v16 = vor.u32 %v4044_v47, %v3735_v44  ;;  %v3896_v4 = vor.u32 %v4084_v52, %v3895_v51  ;;  %v3815_v44 = vld [vmem:[#allocation4 + $0x448] sm:$0xf]  ;;  %v4064_v47 = vld [vmem:[#allocation4 + $0x458] sm:$0xf0]  ;;  %v3515_v51 = vld [vmem:[#allocation4 + $0x1f0] sm:$0xf] }
0x255b   :  { %v3989_v52 = vld [vmem:[#allocation4 + $0x200] sm:$0xf0]  ;;  %v3816_v55 = vor.u32 %v4064_v47, %v3815_v44 }
0x255c   :  { %2737 = vmatpush.bf16.msra.mxu0 %v3672_v49  ;;  %2750 = vmatpush.bf16.msrb.mxu1 %v3832_v62  ;;  %v3452_v49 = vor.u32 %v3971_v56, %v3449_v13  ;;  %v4079_v62 = vld [vmem:[#allocation4 + $0x4d0] sm:$0xf0]  ;;  %v3635_v56 = vld [vmem:[#allocation4 + $0x2e0] sm:$0xf] }
0x255d   :  { %v3876_v14 = vor.u32 %v4079_v62, %v3875_v60  ;;  %v4019_v13 = vld [vmem:[#allocation4 + $0x2f0] sm:$0xf0]  ;;  %v3495_v60 = vld [vmem:[#allocation4 + $0x1c8] sm:$0xf] }
0x255e   :  { %2710 = vmatpush.bf16.msra.mxu2 %v3372_v6  ;;  %2723 = vmatpush.bf16.msrb.mxu3 %v3532_v7  ;;  %v3415_v6 = vld [vmem:[#allocation4 + $0x128] sm:$0xf]  ;;  %v3964_v7 = vld [vmem:[#allocation4 + $0x138] sm:$0xf0] }
0x255f   :  { %v3416_v18 = vor.u32 %v3964_v7, %v3415_v6  ;;  %v3775_v6 = vld [vmem:[#allocation4 + $0x3f8] sm:$0xf]  ;;  %v4054_v7 = vld [vmem:[#allocation4 + $0x408] sm:$0xf0] }
0x2560   :  { %2738 = vmatpush.bf16.msra.mxu0 %v3652_v45  ;;  %2751 = vmatpush.bf16.msrb.mxu1 %v3812_v15  ;;  %v3272_v45 = vor.u32 %v3926_v2, %v3269_v11  ;;  %v3432_v15 = vor.u32 %v3966_v63, %v3429_v0  ;;  %v3615_v2 = vld [vmem:[#allocation4 + $0x2b8] sm:$0xf]  ;;  %v4014_v11 = vld [vmem:[#allocation4 + $0x2c8] sm:$0xf0]  ;;  %v3336_v63 = vor.u32 %v3944_v59, %v3335_v58 }
0x2562   :  { %2711 = vmatpush.bf16.msra.mxu2 %v3352_v46  ;;  %2724 = vmatpush.bf16.msrb.mxu3 %v3512_v10  ;;  %v3855_v46 = vld [vmem:[#allocation4 + $0x498] sm:$0xf]  ;;  %v4074_v10 = vld [vmem:[#allocation4 + $0x4a8] sm:$0xf0] }
0x2564   :  { %2739 = vmatpush.bf16.msra.mxu0 %v3632_v24  ;;  %2752 = vmatpush.bf16.msrb.mxu1 %v3792_v25  ;;  %v3696_v24 = vor.u32 %v4034_v17, %v3695_v9  ;;  %v3856_v25 = vor.u32 %v4074_v10, %v3855_v46  ;;  %v3595_v9 = vld [vmem:[#allocation4 + $0x290] sm:$0xf]  ;;  %v4009_v17 = vld [vmem:[#allocation4 + $0x2a0] sm:$0xf0] }
0x2565   :  { %v3755_v46 = vld [vmem:[#allocation4 + $0x3d0] sm:$0xf]  ;;  %v4049_v10 = vld [vmem:[#allocation4 + $0x3e0] sm:$0xf0] }
0x2566   :  { %2712 = vmatpush.bf16.msra.mxu2 %v3332_v22  ;;  %2725 = vmatpush.bf16.msrb.mxu3 %v3492_v30  ;;  %v3835_v22 = vld [vmem:[#allocation4 + $0x470] sm:$0xf]  ;;  %v4069_v30 = vld [vmem:[#allocation4 + $0x480] sm:$0xf0] }
0x2568   :  { %2740 = vmatpush.bf16.msra.mxu0 %v3612_v35  ;;  %2753 = vmatpush.bf16.msrb.mxu1 %v3772_v39  ;;  %v3676_v35 = vor.u32 %v4029_v27, %v3675_v26  ;;  %v3836_v39 = vor.u32 %v4069_v30, %v3835_v22  ;;  %v3296_v26 = vor.u32 %v3934_v20, %v3295_v19  ;;  %v3435_v22 = vld [vmem:[#allocation4 + $0x150] sm:$0xf]  ;;  %v3969_v30 = vld [vmem:[#allocation4 + $0x160] sm:$0xf0] }
0x2569   :  { %v3456_v27 = vor.u32 %v3974_v23, %v3455_v21  ;;  %v3436_v32 = vor.u32 %v3969_v30, %v3435_v22  ;;  %v2935_v22 = vld [vmem:[%s5027_s12 + $0x68] sm:$0xff]  ;;  %v2953_v30 = vld [vmem:[%s5027_s12 + $0xf8] sm:$0xff] }
0x256a   :  { %2713 = vmatpush.bf16.msra.mxu2 %v3312_v48  ;;  %2726 = vmatpush.bf16.msrb.mxu3 %v3472_v50  ;;  %v3355_v48 = vld [vmem:[#allocation4 + $0xb0] sm:$0xf]  ;;  %v3949_v50 = vld [vmem:[#allocation4 + $0xc0] sm:$0xf0] }
0x256c   :  { %2741 = vmatpush.bf16.msra.mxu0 %v3592_v38  ;;  %2754 = vmatpush.bf16.msrb.mxu1 %v3752_v57  ;;  %v3356_v38 = vor.u32 %v3949_v50, %v3355_v48  ;;  %v3516_v57 = vor.u32 %v3989_v52, %v3515_v51 }
0x256e   :  { %2714 = vmatpush.bf16.msra.mxu2 %v3292_v61  ;;  %2727 = vmatpush.bf16.msrb.mxu3 %v3452_v49  ;;  %v3984_v61 = vld [vmem:[#allocation4 + $0x1d8] sm:$0xf0]  ;;  %v3636_v49 = vor.u32 %v4019_v13, %v3635_v56 }
0x256f   :  { %2742 = vmatmul.bf16.vlgmr.msra.gmra.mxu0 %v4716_v53  ;;  %2755 = vmatmul.bf16.vlgmr.msrb.gmra.mxu1 %v4718_v54  ;;  %v3496_v0 = vor.u32 %v3984_v61, %v3495_v60 }
0x2570   :  { %2786 = vmatpush.bf16.msrb.mxu0 %v3736_v16  ;;  %2799 = vmatpush.bf16.msra.mxu1 %v3896_v4  ;;  %v3795_v16 = vld [vmem:[#allocation4 + $0x420] sm:$0xf]  ;;  %v4059_v4 = vld [vmem:[#allocation4 + $0x430] sm:$0xf0] }
0x2571   :  { %v3796_v62 = vor.u32 %v4059_v4, %v3795_v16 }
0x2572   :  { %2715 = vmatpush.bf16.msra.mxu2 %v3272_v45  ;;  %2728 = vmatpush.bf16.msrb.mxu3 %v3432_v15  ;;  %v3616_v45 = vor.u32 %v4014_v11, %v3615_v2  ;;  %v3776_v15 = vor.u32 %v4054_v7, %v3775_v6 }
0x2574   :  { %2787 = vmatpush.bf16.msrb.mxu0 %v3716_v36  ;;  %2800 = vmatpush.bf16.msra.mxu1 %v3876_v14  ;;  %v3475_v36 = vld [vmem:[#allocation4 + $0x1a0] sm:$0xf]  ;;  %v3979_v14 = vld [vmem:[#allocation4 + $0x1b0] sm:$0xf0] }
0x2575   :  { %2716 = vmatmul.bf16.vlgmr.msra.gmra.mxu2 %v4722_v1  ;;  %2729 = vmatmul.bf16.vlgmr.msrb.gmra.mxu3 %v4724_v5 }
0x2576   :  { %2760 = vmatpush.bf16.msrb.mxu2 %v3416_v18  ;;  %2773 = vmatpush.bf16.msra.mxu3 %v3576_v12  ;;  %v3316_v18 = vor.u32 %v3939_v37, %v3315_v3  ;;  %v3476_v12 = vor.u32 %v3979_v14, %v3475_v36 }
0x2578   :  { %2788 = vmatpush.bf16.msrb.mxu0 %v3696_v24  ;;  %2801 = vmatpush.bf16.msra.mxu1 %v3856_v25  ;;  %v3596_v24 = vor.u32 %v4009_v17, %v3595_v9  ;;  %v3756_v25 = vor.u32 %v4049_v10, %v3755_v46 }
0x257a   :  { %2761 = vmatpush.bf16.msrb.mxu2 %v3396_v28  ;;  %2774 = vmatpush.bf16.msra.mxu3 %v3556_v29  ;;  %v3275_v28 = vld [vmem:[#allocation4 + $0x10] sm:$0xf]  ;;  %v3929_v29 = vld [vmem:[#allocation4 + $0x20] sm:$0xf0] }
0x257b   :  { %v3276_v31 = vor.u32 %v3929_v29, %v3275_v28  ;;  %v2937_v28 = vld [vmem:[%s5027_s12 + $0x78] sm:$0xff]  ;;  %v2936_v29 = vld [vmem:[%s5027_s12 + $0x70] sm:$0xff] }
0x257c   :  { %2789 = vmatpush.bf16.msrb.mxu0 %v3676_v35  ;;  %2802 = vmatpush.bf16.msra.mxu1 %v3836_v39  ;;  %v4747_v35 = vld [vmem:[%s5025_s10] sm:$0x1f] }
0x257d   :  { %v1710_v41 = vperm.slane %v4747_v35, 0  ;;  %v1712_v11 = vperm.slane %v4747_v35, 2  ;;  %v1713_v46 = vperm.slane %v4747_v35, 3 }
0x257e   :  { %2762 = vmatpush.bf16.msrb.mxu2 %v3376_v42  ;;  %2775 = vmatpush.bf16.msra.mxu3 %v3536_v43 }
0x2580   :  { %2790 = vmatpush.bf16.msrb.mxu0 %v3656_v8  ;;  %2803 = vmatpush.bf16.msra.mxu1 %v3816_v55  ;;  %v1711_v55 = vperm.slane %v4747_v35, 1 }
0x2582   :  { %2763 = vmatpush.bf16.msrb.mxu2 %v3356_v38  ;;  %2776 = vmatpush.bf16.msra.mxu3 %v3516_v57 }
0x2584   :  { %2791 = vmatpush.bf16.msrb.mxu0 %v3636_v49  ;;  %2804 = vmatpush.bf16.msra.mxu1 %v3796_v62 }
0x2586   :  { %2764 = vmatpush.bf16.msrb.mxu2 %v3336_v63  ;;  %2777 = vmatpush.bf16.msra.mxu3 %v3496_v0  ;;  %v4755_v63 = vld [vmem:[%s5026_s11] sm:$0x3] }
0x2588   :  { %2792 = vmatpush.bf16.msrb.mxu0 %v3616_v45  ;;  %2805 = vmatpush.bf16.msra.mxu1 %v3776_v15 }
0x258a   :  { %2765 = vmatpush.bf16.msrb.mxu2 %v3316_v18  ;;  %2778 = vmatpush.bf16.msra.mxu3 %v3476_v12 }
0x258c   :  { %2793 = vmatpush.bf16.msrb.mxu0 %v3596_v24  ;;  %2806 = vmatpush.bf16.msra.mxu1 %v3756_v25 }
0x258e   :  { %2766 = vmatpush.bf16.msrb.mxu2 %v3296_v26  ;;  %2779 = vmatpush.bf16.msra.mxu3 %v3456_v27 }
0x258f   :  { %2794 = vmatmul.bf16.vlgmr.msrb.gmra.mxu0 %v4716_v53  ;;  %2807 = vmatmul.bf16.vlgmr.msra.gmra.mxu1 %v4718_v54 }
0x2590   :  { %3006 = vmatpush.msrb.mxu1 %v2937_v28  ;;  %v2979_v28 = vld [vmem:[%s5027_s12 + $0x1c8] sm:$0xff] }
0x2592   :  { %2767 = vmatpush.bf16.msrb.mxu2 %v3276_v31  ;;  %2780 = vmatpush.bf16.msra.mxu3 %v3436_v32  ;;  %v2934_v31 = vld [vmem:[%s5027_s12 + $0x60] sm:$0xff]  ;;  %v2952_v32 = vld [vmem:[%s5027_s12 + $0xf0] sm:$0xff] }
0x2593   :  { %3007 = vmatpush.msrb.mxu1 %v2936_v29  ;;  %v2996_v29 = vld [vmem:[%s5027_s12 + $0x250] sm:$0xff] }
0x2595   :  { %2768 = vmatmul.bf16.vlgmr.msrb.gmra.mxu2 %v4722_v1  ;;  %2781 = vmatmul.bf16.vlgmr.msra.gmra.mxu3 %v4724_v5 }
0x2596   :  { %3008 = vmatpush.msrb.mxu1 %v2935_v22  ;;  %v2941_v22 = vld [vmem:[%s5027_s12 + $0x98] sm:$0xff] }
0x2598   :  { %3009 = vmatpush.msrb.mxu1 %v2934_v31  ;;  %v2978_v31 = vld [vmem:[%s5027_s12 + $0x1c0] sm:$0xff] }
0x25ac   :  { %v2587_v33 = vpop.f32.mrf.mxu0  ;;  %v2600_v34 = vpop.f32.mrf.mxu1 }
0x25b4   :  { %v2589_v39 = vpop.f32.mrf.mxu0  ;;  %v2602_v40 = vpop.f32.mrf.mxu1 }
0x25b5   :  { %v2968_v39 = vld [vmem:[%s5027_s12 + $0x170] sm:$0xff]  ;;  %v2933_v40 = vld [vmem:[%s5027_s12 + $0x58] sm:$0xff] }
0x25b6   :  { %3010 = vmatpush.msrb.mxu1 %v2933_v40  ;;  %v2994_v40 = vld [vmem:[%s5027_s12 + $0x240] sm:$0xff] }
0x25b8   :  { %v2561_v53 = vpop.f32.mrf.mxu2  ;;  %v2574_v42 = vpop.f32.mrf.mxu3 }
0x25b9   :  { %v2562_v54 = vadd.f32 %v2561_v53, %v1710_v41  ;;  %v2967_v41 = vld [vmem:[%s5027_s12 + $0x168] sm:$0xff]  ;;  %v2950_v53 = vld [vmem:[%s5027_s12 + $0xe0] sm:$0xff] }
0x25bb   :  { %v2575_v43 = vadd.f32 %v2574_v42, %v2562_v54  ;;  %v2932_v42 = vld [vmem:[%s5027_s12 + $0x50] sm:$0xff]  ;;  %v2966_v54 = vld [vmem:[%s5027_s12 + $0x160] sm:$0xff] }
0x25bc   :  { %v2639_v44 = vpop.f32.mrf.mxu0  ;;  %v2652_v47 = vpop.f32.mrf.mxu1  ;;  %3011 = vmatpush.msrb.mxu1 %v2932_v42  ;;  %v2976_v42 = vld [vmem:[%s5027_s12 + $0x1b0] sm:$0xff] }
0x25bd   :  { %v2588_v1 = vadd.f32 %v2587_v33, %v2575_v43  ;;  %v2969_v33 = vld [vmem:[%s5027_s12 + $0x178] sm:$0xff] }
0x25bf   :  { %v2601_v48 = vadd.f32 %v2600_v34, %v2588_v1  ;;  %v2951_v34 = vld [vmem:[%s5027_s12 + $0xe8] sm:$0xff] }
0x25c0   :  { %v2563_v5 = vpop.f32.mrf.mxu2  ;;  %v2576_v50 = vpop.f32.mrf.mxu3  ;;  %v2931_v1 = vld [vmem:[%s5027_s12 + $0x48] sm:$0xff] }
0x25c1   :  { %v2812_v51 = vmax.f32 %v2601_v48, 0.0  ;;  %v2965_v48 = vld [vmem:[%s5027_s12 + $0x158] sm:$0xff]  ;;  %v2948_v5 = vld [vmem:[%s5027_s12 + $0xd0] sm:$0xff]  ;;  %v2930_v50 = vld [vmem:[%s5027_s12 + $0x40] sm:$0xff]  ;;  %3012 = vmatpush.msrb.mxu1 %v2931_v1 }
0x25c2   :  { %v2992_v1 = vld [vmem:[%s5027_s12 + $0x230] sm:$0xff] }
0x25c3   :  { %2837 = vmatpush.msrb.mxu3 %v2812_v51  ;;  %v2964_v51 = vld [vmem:[%s5027_s12 + $0x150] sm:$0xff]  ;;  %3013 = vmatpush.msrb.mxu1 %v2930_v50  ;;  %v2991_v50 = vld [vmem:[%s5027_s12 + $0x228] sm:$0xff] }
0x25c4   :  { %v2641_v52 = vpop.f32.mrf.mxu0  ;;  %v2654_v8 = vpop.f32.mrf.mxu1  ;;  %3897 = vmatmul.msk.f32.vlgmr.msrb.gmra.mxu3 %vm2818_vm6, %v4755_v63 }
0x25c5   :  { %v2947_v52 = vld [vmem:[%s5027_s12 + $0xc8] sm:$0xff]  ;;  %v2929_v8 = vld [vmem:[%s5027_s12 + $0x38] sm:$0xff] }
0x25c6   :  { %3014 = vmatpush.msrb.mxu1 %v2929_v8  ;;  %v2972_v8 = vld [vmem:[%s5027_s12 + $0x190] sm:$0xff] }
0x25c8   :  { %v2613_v56 = vpop.f32.mrf.mxu2  ;;  %v2626_v13 = vpop.f32.mrf.mxu3 }
0x25c9   :  { %v2614_v38 = vadd.f32 %v2613_v56, %v1711_v55  ;;  %v2963_v55 = vld [vmem:[%s5027_s12 + $0x148] sm:$0xff]  ;;  %v2946_v56 = vld [vmem:[%s5027_s12 + $0xc0] sm:$0xff] }
0x25cb   :  { %v2627_v57 = vadd.f32 %v2626_v13, %v2614_v38  ;;  %v2928_v13 = vld [vmem:[%s5027_s12 + $0x30] sm:$0xff]  ;;  %v2962_v38 = vld [vmem:[%s5027_s12 + $0x140] sm:$0xff] }
0x25cc   :  { %v2691_v16 = vpop.f32.mrf.mxu0  ;;  %v2704_v4 = vpop.f32.mrf.mxu1  ;;  %3015 = vmatpush.msrb.mxu1 %v2928_v13  ;;  %v2988_v13 = vld [vmem:[%s5027_s12 + $0x210] sm:$0xff] }
0x25cd   :  { %v2640_v58 = vadd.f32 %v2639_v44, %v2627_v57 }
0x25cf   :  { %v2653_v59 = vadd.f32 %v2652_v47, %v2640_v58  ;;  %v2949_v47 = vld [vmem:[%s5027_s12 + $0xd8] sm:$0xff] }
0x25d0   :  { %v2615_v60 = vpop.f32.mrf.mxu2  ;;  %v2628_v61 = vpop.f32.mrf.mxu3  ;;  %v2945_v58 = vld [vmem:[%s5027_s12 + $0xb8] sm:$0xff] }
0x25d1   :  { %v2813_v49 = vmax.f32 %v2653_v59, 0.0  ;;  %v2927_v59 = vld [vmem:[%s5027_s12 + $0x28] sm:$0xff]  ;;  %v2961_v60 = vld [vmem:[%s5027_s12 + $0x138] sm:$0xff] }
0x25d2   :  { %3016 = vmatpush.msrb.mxu1 %v2927_v59  ;;  %v2986_v59 = vld [vmem:[%s5027_s12 + $0x200] sm:$0xff] }
0x25d3   :  { %2857 = vmatpush.msra.mxu3 %v2813_v49 }
0x25d4   :  { %v2693_v62 = vpop.f32.mrf.mxu0  ;;  %v2706_v2 = vpop.f32.mrf.mxu1  ;;  %3898 = vmatmul.msk.f32.vlgmr.msra.gmra.mxu3 %vm2818_vm6, %v4755_v63 }
0x25d5   :  { %v2926_v62 = vld [vmem:[%s5027_s12 + $0x20] sm:$0xff]  ;;  %v2960_v2 = vld [vmem:[%s5027_s12 + $0x130] sm:$0xff] }
0x25d6   :  { %3017 = vmatpush.msrb.mxu1 %v2926_v62 }
0x25d8   :  { %v2665_v0 = vpop.f32.mrf.mxu2  ;;  %v2678_v6 = vpop.f32.mrf.mxu3 }
0x25d9   :  { %v2666_v7 = vadd.f32 %v2665_v0, %v1712_v11  ;;  %v2943_v0 = vld [vmem:[%s5027_s12 + $0xa8] sm:$0xff] }
0x25db   :  { %v2679_v3 = vadd.f32 %v2678_v6, %v2666_v7  ;;  %v2925_v6 = vld [vmem:[%s5027_s12 + $0x18] sm:$0xff] }
0x25dc   :  { %3018 = vmatpush.msrb.mxu1 %v2925_v6 }
0x25dd   :  { %v2692_v37 = vadd.f32 %v2691_v16, %v2679_v3  ;;  %v2924_v3 = vld [vmem:[%s5027_s12 + $0x10] sm:$0xff] }
0x25de   :  { %3019 = vmatpush.msrb.mxu1 %v2924_v3 }
0x25df   :  { %v2705_v36 = vadd.f32 %v2704_v4, %v2692_v37  ;;  %v1714_v4 = vperm.slane %v4747_v35, 4  ;;  %v2944_v35 = vld [vmem:[%s5027_s12 + $0xb0] sm:$0xff] }
0x25e0   :  { %v2667_v14 = vpop.f32.mrf.mxu2  ;;  %v2680_v45 = vpop.f32.mrf.mxu3 }
0x25e1   :  { %v2814_v15 = vmax.f32 %v2705_v36, 0.0  ;;  %v2923_v36 = vld [vmem:[%s5027_s12 + $0x8] sm:$0xff] }
0x25e2   :  { %3020 = vmatpush.msrb.mxu1 %v2923_v36 }
0x25e3   :  { %2877 = vmatpush.msra.mxu2 %v2814_v15 }
0x25e4   :  { %3899 = vmatmul.msk.f32.vlgmr.msra.gmra.mxu2 %vm2818_vm6, %v4755_v63 }
0x25e5   :  { %3026 = vmatpush.msrb.mxu2 %v2953_v30  ;;  %v2958_v30 = vld [vmem:[%s5027_s12 + $0x120] sm:$0xff] }
0x25e7   :  { %3027 = vmatpush.msrb.mxu2 %v2952_v32  ;;  %v2995_v32 = vld [vmem:[%s5027_s12 + $0x248] sm:$0xff] }
0x25e9   :  { %3028 = vmatpush.msrb.mxu2 %v2951_v34  ;;  %v2957_v34 = vld [vmem:[%s5027_s12 + $0x118] sm:$0xff] }
0x25eb   :  { %3029 = vmatpush.msrb.mxu2 %v2950_v53  ;;  %v2956_v53 = vld [vmem:[%s5027_s12 + $0x110] sm:$0xff] }
0x25ec   :  { %v2743_v9 = vpop.f32.mrf.mxu0  ;;  %v2756_v17 = vpop.f32.mrf.mxu1 }
0x25ed   :  { %3030 = vmatpush.msrb.mxu2 %v2949_v47  ;;  %v2975_v47 = vld [vmem:[%s5027_s12 + $0x1a8] sm:$0xff] }
0x25ef   :  { %3031 = vmatpush.msrb.mxu2 %v2948_v5  ;;  %v2974_v5 = vld [vmem:[%s5027_s12 + $0x1a0] sm:$0xff] }
0x25f1   :  { %3032 = vmatpush.msrb.mxu2 %v2947_v52  ;;  %v2990_v52 = vld [vmem:[%s5027_s12 + $0x220] sm:$0xff] }
0x25f3   :  { %3033 = vmatpush.msrb.mxu2 %v2946_v56  ;;  %v2971_v56 = vld [vmem:[%s5027_s12 + $0x188] sm:$0xff] }
0x25f4   :  { %v2745_v18 = vpop.f32.mrf.mxu0  ;;  %v2758_v12 = vpop.f32.mrf.mxu1 }
0x25f5   :  { %3034 = vmatpush.msrb.mxu2 %v2945_v58  ;;  %v3001_v18 = vld [vmem:[%s5027_s12 + $0x278] sm:$0xff] }
0x25f6   :  { %v2985_v12 = vld [vmem:[%s5027_s12 + $0x1f8] sm:$0xff] }
0x25f7   :  { %3035 = vmatpush.msrb.mxu2 %v2944_v35 }
0x25f8   :  { %v2717_v10 = vpop.f32.mrf.mxu2  ;;  %v2730_v19 = vpop.f32.mrf.mxu3 }
0x25f9   :  { %v2718_v20 = vadd.f32 %v2717_v10, %v1713_v46  ;;  %3036 = vmatpush.msrb.mxu2 %v2943_v0  ;;  %v3000_v46 = vld [vmem:[%s5027_s12 + $0x270] sm:$0xff] }
0x25fa   :  { %v2984_v10 = vld [vmem:[%s5027_s12 + $0x1f0] sm:$0xff] }
0x25fb   :  { %v2731_v21 = vadd.f32 %v2730_v19, %v2718_v20  ;;  %v2999_v19 = vld [vmem:[%s5027_s12 + $0x268] sm:$0xff] }
0x25fc   :  { %v2983_v20 = vld [vmem:[%s5027_s12 + $0x1e8] sm:$0xff] }
0x25fd   :  { %v2744_v23 = vadd.f32 %v2743_v9, %v2731_v21  ;;  %v2922_v9 = vld [vmem:[%s5027_s12] sm:$0xff] }
0x25fe   :  { %3021 = vmatpush.msrb.mxu1 %v2922_v9  ;;  %v2982_v21 = vld [vmem:[%s5027_s12 + $0x1e0] sm:$0xff] }
0x25ff   :  { %v2757_v24 = vadd.f32 %v2756_v17, %v2744_v23  ;;  %v2997_v23 = vld [vmem:[%s5027_s12 + $0x258] sm:$0xff] }
0x2600   :  { %v2719_v25 = vpop.f32.mrf.mxu2  ;;  %v2732_v26 = vpop.f32.mrf.mxu3  ;;  %3086 = vmatpush.msra.mxu1 %v3001_v18 }
0x2601   :  { %v2815_v27 = vmax.f32 %v2757_v24, 0.0  ;;  %v2981_v24 = vld [vmem:[%s5027_s12 + $0x1d8] sm:$0xff]  ;;  %v2980_v25 = vld [vmem:[%s5027_s12 + $0x1d0] sm:$0xff]  ;;  %v2942_v26 = vld [vmem:[%s5027_s12 + $0xa0] sm:$0xff] }
0x2602   :  { %3087 = vmatpush.msra.mxu1 %v3000_v46  ;;  %3037 = vmatpush.msrb.mxu2 %v2942_v26 }
0x2603   :  { %2897 = vmatpush.msrb.mxu3 %v2815_v27  ;;  %v2959_v27 = vld [vmem:[%s5027_s12 + $0x128] sm:$0xff] }
0x2604   :  { %3900 = vmatmul.msk.f32.vlgmr.msrb.gmra.mxu3 %vm2818_vm6, %v4755_v63  ;;  %3088 = vmatpush.msra.mxu1 %v2999_v19 }
0x2605   :  { %3046 = vmatpush.msra.mxu3 %v2969_v33  ;;  %v2940_v33 = vld [vmem:[%s5027_s12 + $0x90] sm:$0xff]  ;;  %3038 = vmatpush.msrb.mxu2 %v2941_v22 }
0x2607   :  { %3047 = vmatpush.msra.mxu3 %v2968_v39  ;;  %v2977_v39 = vld [vmem:[%s5027_s12 + $0x1b8] sm:$0xff]  ;;  %3039 = vmatpush.msrb.mxu2 %v2940_v33 }
0x2609   :  { %3048 = vmatpush.msra.mxu3 %v2967_v41  ;;  %v2939_v41 = vld [vmem:[%s5027_s12 + $0x88] sm:$0xff] }
0x260a   :  { %3040 = vmatpush.msrb.mxu2 %v2939_v41 }
0x260b   :  { %3049 = vmatpush.msra.mxu3 %v2966_v54  ;;  %v2993_v54 = vld [vmem:[%s5027_s12 + $0x238] sm:$0xff] }
0x260c   :  { %v2795_v43 = vpop.f32.mrf.mxu0  ;;  %v2808_v44 = vpop.f32.mrf.mxu1 }
0x260d   :  { %3050 = vmatpush.msra.mxu3 %v2965_v48  ;;  %v2954_v48 = vld [vmem:[%s5027_s12 + $0x100] sm:$0xff] }
0x260f   :  { %3051 = vmatpush.msra.mxu3 %v2964_v51  ;;  %v2973_v51 = vld [vmem:[%s5027_s12 + $0x198] sm:$0xff] }
0x2611   :  { %3052 = vmatpush.msra.mxu3 %v2963_v55  ;;  %v2989_v55 = vld [vmem:[%s5027_s12 + $0x218] sm:$0xff] }
0x2613   :  { %3053 = vmatpush.msra.mxu3 %v2962_v38 }
0x2614   :  { %v2797_v57 = vpop.f32.mrf.mxu0  ;;  %v2810_v16 = vpop.f32.mrf.mxu1 }
0x2615   :  { %3054 = vmatpush.msra.mxu3 %v2961_v60  ;;  %v2970_v16 = vld [vmem:[%s5027_s12 + $0x180] sm:$0xff] }
0x2617   :  { %3055 = vmatpush.msra.mxu3 %v2960_v2 }
0x2618   :  { %v2769_v61 = vpop.f32.mrf.mxu2  ;;  %v2782_v49 = vpop.f32.mrf.mxu3 }
0x2619   :  { %v2770_v11 = vadd.f32 %v2769_v61, %v1714_v4  ;;  %3056 = vmatpush.msra.mxu3 %v2959_v27  ;;  %v2987_v4 = vld [vmem:[%s5027_s12 + $0x208] sm:$0xff]  ;;  %v4094_v61 = vld [vmem:[%s5028_s13] ss:$0 sm:$0xff] }
0x261b   :  { %v2783_v7 = vadd.f32 %v2782_v49, %v2770_v11  ;;  %3057 = vmatpush.msra.mxu3 %v2958_v30 }
0x261d   :  { %v2796_v37 = vadd.f32 %v2795_v43, %v2783_v7  ;;  %3058 = vmatpush.msra.mxu3 %v2957_v34  ;;  %v2938_v43 = vld [vmem:[%s5027_s12 + $0x80] sm:$0xff] }
0x261e   :  { %3041 = vmatpush.msrb.mxu2 %v2938_v43 }
0x261f   :  { %v2809_v14 = vadd.f32 %v2808_v44, %v2796_v37  ;;  %3059 = vmatpush.msra.mxu3 %v2956_v53  ;;  %v2955_v44 = vld [vmem:[%s5027_s12 + $0x108] sm:$0xff] }
0x2620   :  { %v2771_v45 = vpop.f32.mrf.mxu2  ;;  %v2784_v15 = vpop.f32.mrf.mxu3 }
0x2621   :  { %v2816_v17 = vmax.f32 %v2809_v14, 0.0  ;;  %3060 = vmatpush.msra.mxu3 %v2955_v44 }
0x2623   :  { %2917 = vmatpush.msra.mxu0 %v2816_v17  ;;  %3061 = vmatpush.msra.mxu3 %v2954_v48 }
0x2624   :  { %3901 = vmatmul.msk.f32.vlgmr.msra.gmra.mxu0 %vm2818_vm6, %v4755_v63  ;;  %v2998_v63 = vld [vmem:[%s5027_s12 + $0x260] sm:$0xff] }
0x2625   :  { %3066 = vmatpush.msrb.mxu0 %v2985_v12  ;;  %3089 = vmatpush.msra.mxu1 %v2998_v63 }
0x2627   :  { %3067 = vmatpush.msrb.mxu0 %v2984_v10  ;;  %3090 = vmatpush.msra.mxu1 %v2997_v23 }
0x2629   :  { %3068 = vmatpush.msrb.mxu0 %v2983_v20  ;;  %3091 = vmatpush.msra.mxu1 %v2996_v29 }
0x262b   :  { %3069 = vmatpush.msrb.mxu0 %v2982_v21  ;;  %3092 = vmatpush.msra.mxu1 %v2995_v32 }
0x262d   :  { %3070 = vmatpush.msrb.mxu0 %v2981_v24  ;;  %3093 = vmatpush.msra.mxu1 %v2994_v40 }
0x262f   :  { %3071 = vmatpush.msrb.mxu0 %v2980_v25  ;;  %3094 = vmatpush.msra.mxu1 %v2993_v54 }
0x2631   :  { %3072 = vmatpush.msrb.mxu0 %v2979_v28  ;;  %3095 = vmatpush.msra.mxu1 %v2992_v1 }
0x2633   :  { %3073 = vmatpush.msrb.mxu0 %v2978_v31  ;;  %3096 = vmatpush.msra.mxu1 %v2991_v50 }
0x2635   :  { %3074 = vmatpush.msrb.mxu0 %v2977_v39  ;;  %3097 = vmatpush.msra.mxu1 %v2990_v52 }
0x2637   :  { %3075 = vmatpush.msrb.mxu0 %v2976_v42  ;;  %3098 = vmatpush.msra.mxu1 %v2989_v55 }
0x2639   :  { %3076 = vmatpush.msrb.mxu0 %v2975_v47  ;;  %3099 = vmatpush.msra.mxu1 %v2988_v13 }
0x263b   :  { %3077 = vmatpush.msrb.mxu0 %v2974_v5  ;;  %3100 = vmatpush.msra.mxu1 %v2987_v4 }
0x263d   :  { %3078 = vmatpush.msrb.mxu0 %v2973_v51  ;;  %3101 = vmatpush.msra.mxu1 %v2986_v59 }
0x263f   :  { %3079 = vmatpush.msrb.mxu0 %v2972_v8 }
0x2641   :  { %3080 = vmatpush.msrb.mxu0 %v2971_v56 }
0x2643   :  { %3081 = vmatpush.msrb.mxu0 %v2970_v16 }
0x2647   :  { %v2839_v38 = vpop.f32.mrf.mxu3 }
0x2648   :  { %3022 = vmatmul.f32.vlgmr.msrb.gmra.mxu1 %v2839_v38 }
0x2657   :  { %v2859_v57 = vpop.f32.mrf.mxu3 }
0x2658   :  { %3042 = vmatmul.f32.vlgmr.msrb.gmra.mxu2 %v2859_v57 }
0x2667   :  { %v2879_v58 = vpop.f32.mrf.mxu2 }
0x2668   :  { %3062 = vmatmul.f32.vlgmr.msra.gmra.mxu3 %v2879_v58 }
0x2687   :  { %v2899_v60 = vpop.f32.mrf.mxu3 }
0x2688   :  { %3082 = vmatmul.f32.vlgmr.msrb.gmra.mxu0 %v2899_v60 }
0x26a1   :  { %v2919_v35 = vpop.f32.mrf.mxu0 }
0x26a2   :  { %3102 = vmatmul.f32.vlgmr.msra.gmra.mxu1 %v2919_v35 }
0x26c5   :  { %v3023_v49 = vpop.f32.mrf.mxu1 }
0x26c6   :  { %v3024_v62 = vadd.f32 %v4094_v61, %v3023_v49 }
0x26db   :  { %v3043_v2 = vpop.f32.mrf.mxu2 }
0x26dc   :  { %v3044_v11 = vadd.f32 %v3043_v2, %v3024_v62 }
0x26eb   :  { %v3063_v0 = vpop.f32.mrf.mxu3 }
0x26ec   :  { %v3064_v6 = vadd.f32 %v3063_v0, %v3044_v11 }
0x2705   :  { %v3083_v7 = vpop.f32.mrf.mxu0 }
0x2706   :  { %v3084_v3 = vadd.f32 %v3083_v7, %v3064_v6 }
0x271f   :  { %v3103_v37 = vpop.f32.mrf.mxu1 }
0x2720   :  { %v3104_v36 = vadd.f32 %v3103_v37, %v3084_v3 }
0x2722   :  { %3107 = vst.msk [vmem:[#allocation7] sm:$0x3] %vm3106_vm4, %v3104_v36 }
0x2723   :  { %3118 = dma.vmem_to_hbm [thread:$0]  %s3114_s17, 32, %s3116_s18, [#allocation6]  }
0x2724   :  { %4273 = dma.done.wait [#allocation6], 32  }
0x2725   :  { %4274 = vsyncadd [#allocation6], 4294967264 }
0x2726   :  { %3123 = vsyncpa [#allocation5], 1 }
0x2727   :  { %3124 = vsyncpa [#allocation6], 1 }

</bundles_post_ra>
